<compile_context>
chip_gen: v5e
topology: v5e:2x2
jax: 0.10.0
libtpu: 0.0.40
codegen_flags: <defaults>
</compile_context>

<pallas_src>
import numpy as np
import jax
import jax.numpy as jnp
from jax.experimental import pallas as pl
from jax.experimental.pallas import tpu as pltpu


# ----------------------------------------------------------------------------
# Fused Pallas kernel: full diffractive decoder + crop + readout (per group)
# ----------------------------------------------------------------------------
def fused_dd_kernel(ur_ref, ui_ref,
                    wyf_r_ref, wyf_i_ref, wyf_s_ref,
                    wyi_r_ref, wyi_i_ref, wyi_s_ref,
                    wxf_r_ref, wxf_i_ref, wxf_s_ref,
                    wxi_r_ref, wxi_i_ref, wxi_s_ref,
                    hr_ref, hi_ref, tr_ref, ti_ref,
                    py_ref, pxbd_ref,
                    out_ref):
    f32 = jnp.float32

    # 3-multiplication (Karatsuba) complex matmuls.  The constant-side sum
    # (W_r + W_i) is precomputed on the host (the *_s refs), so only one
    # field-sized VPU add remains per complex matmul.  Constant refs are
    # indexed at the point of use (inside the dot) so Mosaic can schedule each
    # vld next to its MXU push instead of holding four (128,128) constants
    # live across the whole kernel.
    def cmm_left(wr_ref, wi_ref, ws_ref, br, bi):
        # (W_r + i W_i) @ (b_r + i b_i)
        t1 = jnp.dot(wr_ref[...], br, preferred_element_type=f32)
        t2 = jnp.dot(wi_ref[...], bi, preferred_element_type=f32)
        t3 = jnp.dot(ws_ref[...], br + bi, preferred_element_type=f32)
        return t1 - t2, t3 - t1 - t2

    def cmm_right(ar, ai, wr_ref, wi_ref, ws_ref):
        # (a_r + i a_i) @ (W_r + i W_i)
        t1 = jnp.dot(ar, wr_ref[...], preferred_element_type=f32)
        t2 = jnp.dot(ai, wi_ref[...], preferred_element_type=f32)
        t3 = jnp.dot(ar + ai, ws_ref[...], preferred_element_type=f32)
        return t1 - t2, t3 - t1 - t2

    def prop(ar, ai, p):
        # forward 2-D DFT:  WyBD @ U @ WxBD  (block-diag keeps the 2-D packed
        # slab layout; no in-kernel reshape / transpose)
        vr, vi = cmm_left(wyf_r_ref, wyf_i_ref, wyf_s_ref, ar, ai)
        vr, vi = cmm_right(vr, vi, wxf_r_ref, wxf_i_ref, wxf_s_ref)
        # angular-spectrum transfer function (per wavelength, group layout)
        h_r = hr_ref[p]
        h_i = hi_ref[p]
        t_r = vr * h_r - vi * h_i
        t_i = vr * h_i + vi * h_r
        # inverse 2-D DFT (1/(Ny*Nx) folded into the inverse matrices)
        wr, wi = cmm_left(wyi_r_ref, wyi_i_ref, wyi_s_ref, t_r, t_i)
        wr, wi = cmm_right(wr, wi, wxi_r_ref, wxi_i_ref, wxi_s_ref)
        return wr, wi

    n_masks = tr_ref.shape[0]

    ur = ur_ref[...]
    ui = ui_ref[...]

    # DD chain: prop, (mask, prop) * num_masks  — statically unrolled
    ur, ui = prop(ur, ui, 0)
    for m in range(n_masks):
        t_r = tr_ref[m]
        t_i = ti_ref[m]
        ur, ui = ur * t_r - ui * t_i, ur * t_i + ui * t_r
        ur, ui = prop(ur, ui, m + 1)

    # readout: |U| -> (center-crop + avg-pool) = (PyBD @ |U|) @ PxBD -> square
    # (left-then-right association: ~2.7x fewer FLOPs, lane-dense intermediate)
    mag = jnp.sqrt(ur * ur + ui * ui)
    pooled = jnp.dot(jnp.dot(py_ref[...], mag, preferred_element_type=f32),
                     pxbd_ref[...], preferred_element_type=f32)
    out_ref[...] = pooled * pooled


# ----------------------------------------------------------------------------
# Host-side constant construction
# ----------------------------------------------------------------------------
def pack_slots_to_groups(a, n_groups, gs, gl):
    """(n_groups*gs*gl, H, W) slot-major -> (n_groups, gs*H, gl*W) 2-D slabs."""
    ns, h, w = a.shape
    a = a.reshape(n_groups, gs, gl, h, w)
    a = jnp.transpose(a, (0, 1, 3, 2, 4))
    return a.reshape(n_groups, gs * h, gl * w)


def _dft(n):
    j = np.arange(n)
    return np.exp(-2j * np.pi * np.outer(j, j) / n)


def build_dft_constants(ny, nx, gs, gl):
    """Block-diag DFT matrices for the 2-D packed group slab + Karatsuba sums."""
    wy_f = np.kron(np.eye(gs), _dft(ny))
    wy_i = np.kron(np.eye(gs), np.conj(_dft(ny)) / ny)
    wx_f = np.kron(np.eye(gl), _dft(nx))
    wx_i = np.kron(np.eye(gl), np.conj(_dft(nx)) / nx)

    c = {}
    for name, m in (("wyf", wy_f), ("wyi", wy_i), ("wxf", wx_f), ("wxi", wx_i)):
        r = np.ascontiguousarray(np.real(m)).astype(np.float32)
        i = np.ascontiguousarray(np.imag(m)).astype(np.float32)
        c[name + "_r"] = jnp.asarray(r)
        c[name + "_i"] = jnp.asarray(i)
        c[name + "_s"] = jnp.asarray(r + i)      # precomputed Karatsuba sum
    return c


def transfer_function(wlength_vc, ridx_air, ny, nx, dx, dy, prop_z):
    """Angular-spectrum transfer function, unshifted-DFT frequency ordering."""
    fy = np.fft.fftfreq(ny, d=dy)
    fx = np.fft.fftfreq(nx, d=dx)
    ky = 2.0 * np.pi * fy
    kx = 2.0 * np.pi * fx
    hrs, his = [], []
    for lam in wlength_vc:
        k0 = 2.0 * np.pi * ridx_air / lam
        kz_sq = k0 ** 2 - kx[None, :] ** 2 - ky[:, None] ** 2
        ok = (kz_sq > 0).astype(np.float64)
        kz = np.sqrt(np.maximum(kz_sq, 0.0))
        hrs.append(np.cos(kz * prop_z) * ok)
        his.append(np.sin(kz * prop_z) * ok)
    return np.stack(hrs), np.stack(his)          # (C, Ny, Nx) each


def mask_transmission_groups(h_learn, mask_base_thick, wlength_vc, ridx_mask,
                             ridx_air, attenu_factor, total_y, total_x,
                             pair_channel, n_groups, gs, gl):
    """Thickness -> complex transmission, full aperture, per-group slab layout."""
    my, mx = h_learn.shape
    t = mask_base_thick + h_learn
    trs, tis = [], []
    for lam in wlength_vc:
        phase = 2.0 * np.pi * (ridx_mask - ridx_air) * t / lam
        amp = jnp.exp(-attenu_factor * t)
        trs.append(amp * jnp.cos(phase))
        tis.append(amp * jnp.sin(phase))
    tr = jnp.stack(trs).astype(jnp.float32)      # (C, my, mx)
    ti = jnp.stack(tis).astype(jnp.float32)
    py_ = total_y // 2 - my // 2
    px_ = total_x // 2 - mx // 2
    # outside the mask aperture the field passes unchanged (transmission = 1)
    tr = jnp.pad(tr, ((0, 0), (py_, py_), (px_, px_)), constant_values=1.0)
    ti = jnp.pad(ti, ((0, 0), (py_, py_), (px_, px_)), constant_values=0.0)
    ch = jnp.asarray(pair_channel)
    return (pack_slots_to_groups(tr[ch], n_groups, gs, gl),
            pack_slots_to_groups(ti[ch], n_groups, gs, gl))


def build_pool_matrices(total_y, total_x, obj_y, obj_x, img_size, gs, gl):
    """Center-crop + avg-pool folded into PyBD (gs*img, gs*Ny), PxBD (gl*Nx, gl*img)."""
    kpy = obj_y // img_size
    kpx = obj_x // img_size
    cy0 = total_y // 2 - obj_y // 2
    cx0 = total_x // 2 - obj_x // 2
    py = np.zeros((img_size, total_y), np.float32)
    for i in range(img_size):
        py[i, cy0 + kpy * i: cy0 + kpy * (i + 1)] = 1.0 / kpy
    px = np.zeros((total_x, img_size), np.float32)
    for j in range(img_size):
        px[cx0 + kpx * j: cx0 + kpx * (j + 1), j] = 1.0 / kpx
    py_bd = np.kron(np.eye(gs, dtype=np.float32), py)
    px_bd = np.kron(np.eye(gl, dtype=np.float32), px)
    return jnp.asarray(py_bd), jnp.asarray(px_bd)


# ----------------------------------------------------------------------------
# Forward pass
# ----------------------------------------------------------------------------
def model_forward(x, params, consts, cfg):
    B, C, img, _ = x.shape
    total_x, total_y = cfg["total_x_num"], cfg["total_y_num"]
    obj_x, obj_y = cfg["obj_x_num"], cfg["obj_y_num"]
    gs, gl, n_groups = cfg["GS"], cfg["GL"], cfg["n_groups"]
    n_slots = n_groups * gs * gl

    # ---- Digital encoder (plain jnp: 1x1 conv over channels + tanh) ----
    # TODO(synk): Digital_Encoder source not provided; synthetic 1x1 conv+tanh.
    y = jnp.einsum('bchw,cd->bdhw', x, params["enc_w"]) \
        + params["enc_b"].reshape(1, -1, 1, 1)
    x_enc = jnp.tanh(y)
    scale = params["scale"]

    # ---- img_preprocess: phase encode, complexify ----
    alpha = 1.0
    x_ph = jnp.clip(x_enc * alpha * np.pi + alpha * np.pi,
                    0.0, 2.0 * alpha * np.pi)
    re = jnp.cos(x_ph)
    im = jnp.sin(x_ph)

    # ---- resize_phase_complex: nearest upsample + zero pad.
    #      (F.pad(t, (pad_y, pad_y, pad_x, pad_x)) in the reference pads the
    #      last dim by pad_y and the second-to-last by pad_x — kept as-is;
    #      harmless here because the aperture is square.)
    uy = obj_y // img
    ux = obj_x // img
    re = jnp.repeat(jnp.repeat(re, uy, axis=2), ux, axis=3)
    im = jnp.repeat(jnp.repeat(im, uy, axis=2), ux, axis=3)
    pad_x = total_x // 2 - obj_x // 2
    pad_y = total_y // 2 - obj_y // 2
    re = jnp.pad(re, ((0, 0), (0, 0), (pad_x, pad_x), (pad_y, pad_y)))
    im = jnp.pad(im, ((0, 0), (0, 0), (pad_x, pad_x), (pad_y, pad_y)))

    # ---- pack (b,c) fields into 2-D group slabs; padded slots are zero ----
    def to_groups(a):
        a = a.reshape(B * C, total_y, total_x).astype(jnp.float32)
        a = jnp.pad(a, ((0, n_slots - B * C), (0, 0), (0, 0)))
        return pack_slots_to_groups(a, n_groups, gs, gl)

    ur = to_groups(re)
    ui = to_groups(im)

    gsny, glnx = gs * total_y, gl * total_x
    n_props = consts["hr"].shape[1]
    n_masks = consts["tr"].shape[1]

    def full_spec(shape):
        return pl.BlockSpec(shape, lambda g: (0,) * len(shape))

    field_spec = pl.BlockSpec((None, gsny, glnx), lambda g: (g, 0, 0))
    h_spec = pl.BlockSpec((None, n_props, gsny, glnx), lambda g: (g, 0, 0, 0))
    t_spec = pl.BlockSpec((None, n_masks, gsny, glnx), lambda g: (g, 0, 0, 0))
    wy_spec = full_spec((gsny, gsny))
    wx_spec = full_spec((glnx, glnx))

    # ---- ONE fused Pallas kernel per group: full DD chain + crop + readout ----
    out_slab = pl.pallas_call(
        fused_dd_kernel,
        out_shape=jax.ShapeDtypeStruct((n_groups, gs * img, gl * img),
                                       jnp.float32),
        grid=(n_groups,),
        in_specs=[
            field_spec, field_spec,
            wy_spec, wy_spec, wy_spec,      # Wy forward  r / i / r+i
            wy_spec, wy_spec, wy_spec,      # Wy inverse
            wx_spec, wx_spec, wx_spec,      # Wx forward
            wx_spec, wx_spec, wx_spec,      # Wx inverse
            h_spec, h_spec,                 # H real / imag  (per prop step)
            t_spec, t_spec,                 # mask transmission real / imag
            full_spec((gs * img, gsny)),    # PyBD
            full_spec((glnx, gl * img)),    # PxBD
        ],
        out_specs=pl.BlockSpec((None, gs * img, gl * img),
                               lambda g: (g, 0, 0)),
        compiler_params=pltpu.CompilerParams(
            dimension_semantics=("parallel",)),
    )(ur, ui,
      consts["wyf_r"], consts["wyf_i"], consts["wyf_s"],
      consts["wyi_r"], consts["wyi_i"], consts["wyi_s"],
      consts["wxf_r"], consts["wxf_i"], consts["wxf_s"],
      consts["wxi_r"], consts["wxi_i"], consts["wxi_s"],
      consts["hr"], consts["hi"], consts["tr"], consts["ti"],
      consts["py"], consts["pxbd"])

    # ---- unpack (n_groups, gs*img, gl*img) -> (B, C, img, img) ----
    out = out_slab.reshape(n_groups, gs, img, gl, img)
    out = jnp.transpose(out, (0, 1, 3, 2, 4)).reshape(n_slots, img, img)
    output = out[:B * C].reshape(B, C, img, img)
    return output, scale


# ----------------------------------------------------------------------------
# Main
# ----------------------------------------------------------------------------
if __name__ == "__main__":
    # --- module hyper-parameters (small, consistent with the forward pass) ---
    img_size = 8
    in_channel = 3
    num_classes = 0
    c_light = 3.0e8
    num_masks = 2
    wlength_vc = [450e-9, 550e-9, 650e-9]      # one wavelength per channel
    ridx_air = 1.0
    ridx_mask = 1.5
    attenu_factor = 0.0
    total_x_num = total_y_num = 32
    mask_x_num = mask_y_num = 16
    mask_base_thick = 1.0e-6
    dx = dy = 1.0e-6
    object_mask_dist = mask_mask_dist = mask_sensor_dist = 50.0e-6
    obj_x_num = obj_y_num = 16
    B = 2

    # 2-D (b, c)-slot packing per grid group:
    #   GL * total_x_num = 128 lanes (lane-dense, Wx block-diag 128x128)
    #   GS * total_y_num = 64 rows   (M = 64 for the Wy matmuls)
    # B*C = 6 -> one group of 8 slots with 2 zero-padded slots at this config;
    # at realistic batch sizes pick B*C a multiple of GS*GL to avoid padding.
    GS, GL = 2, 4
    G = GS * GL
    BC = B * in_channel
    n_groups = -(-BC // G)                      # ceil -> 1 group here
    n_slots = n_groups * G
    # slot -> channel map (padded slots get channel 0; their field is zero so
    # the value is irrelevant through the linear DD chain)
    pair_channel = np.array([(p % in_channel) if p < BC else 0
                             for p in range(n_slots)], dtype=np.int32)

    key = jax.random.PRNGKey(0)
    k_in, k_w, k_m1, k_m2 = jax.random.split(key, 4)

    # parameters (deterministic)
    params = {
        "enc_w": (0.5 * jax.random.normal(k_w, (in_channel, in_channel))
                  ).astype(jnp.float32),
        "enc_b": jnp.zeros((1, in_channel), jnp.float32),
        "scale": jnp.float32(1.0),
    }
    mask_h = [
        jax.random.uniform(k_m1, (mask_y_num, mask_x_num),
                           minval=0.0, maxval=1e-6).astype(jnp.float32),
        jax.random.uniform(k_m2, (mask_y_num, mask_x_num),
                           minval=0.0, maxval=1e-6).astype(jnp.float32),
    ]

    # --- precomputed constants (DFTs, transfer functions, masks, pooling) ---
    consts = build_dft_constants(total_y_num, total_x_num, GS, GL)

    prop_dists = ([object_mask_dist] + [mask_mask_dist] * (num_masks - 1)
                  + [mask_sensor_dist])
    hr_groups, hi_groups = [], []
    for z in prop_dists:
        hr_c, hi_c = transfer_function(wlength_vc, ridx_air, total_y_num,
                                       total_x_num, dx, dy, z)
        hr_s = jnp.asarray(hr_c[pair_channel].astype(np.float32))
        hi_s = jnp.asarray(hi_c[pair_channel].astype(np.float32))
        hr_groups.append(pack_slots_to_groups(hr_s, n_groups, GS, GL))
        hi_groups.append(pack_slots_to_groups(hi_s, n_groups, GS, GL))
    consts["hr"] = jnp.stack(hr_groups, axis=1)   # (ng, n_props, 64, 128)
    consts["hi"] = jnp.stack(hi_groups, axis=1)

    tr_groups, ti_groups = [], []
    for h in mask_h:
        trg, tig = mask_transmission_groups(
            h, mask_base_thick, wlength_vc, ridx_mask, ridx_air, attenu_factor,
            total_y_num, total_x_num, pair_channel, n_groups, GS, GL)
        tr_groups.append(trg)
        ti_groups.append(tig)
    consts["tr"] = jnp.stack(tr_groups, axis=1)   # (ng, n_masks, 64, 128)
    consts["ti"] = jnp.stack(ti_groups, axis=1)

    consts["py"], consts["pxbd"] = build_pool_matrices(
        total_y_num, total_x_num, obj_y_num, obj_x_num, img_size, GS, GL)

    cfg = {"img_size": img_size, "total_x_num": total_x_num,
           "total_y_num": total_y_num, "obj_x_num": obj_x_num,
           "obj_y_num": obj_y_num, "GS": GS, "GL": GL, "n_groups": n_groups}

    x = jax.random.uniform(k_in, (B, in_channel, img_size, img_size),
                           dtype=jnp.float32)

    fwd = jax.jit(lambda xx: model_forward(xx, params, consts, cfg))
    output, scale = fwd(x)
    output = jax.block_until_ready(output)
    scale = jax.block_until_ready(scale)

    assert output.shape == (B, in_channel, img_size, img_size)
    assert bool(jnp.all(jnp.isfinite(output)))
    print("KERNEL_OK")
</pallas_src>

<mosaic_0001>
module attributes {stable_mosaic.version = 11 : i64} {
  func.func @fused_dd_kernel(%arg0: i32, %arg1: memref<1x64x128xf32, #tpu.memory_space<vmem>>, %arg2: memref<1x64x128xf32, #tpu.memory_space<vmem>>, %arg3: memref<64x64xf32, #tpu.memory_space<vmem>>, %arg4: memref<64x64xf32, #tpu.memory_space<vmem>>, %arg5: memref<64x64xf32, #tpu.memory_space<vmem>>, %arg6: memref<64x64xf32, #tpu.memory_space<vmem>>, %arg7: memref<64x64xf32, #tpu.memory_space<vmem>>, %arg8: memref<64x64xf32, #tpu.memory_space<vmem>>, %arg9: memref<128x128xf32, #tpu.memory_space<vmem>>, %arg10: memref<128x128xf32, #tpu.memory_space<vmem>>, %arg11: memref<128x128xf32, #tpu.memory_space<vmem>>, %arg12: memref<128x128xf32, #tpu.memory_space<vmem>>, %arg13: memref<128x128xf32, #tpu.memory_space<vmem>>, %arg14: memref<128x128xf32, #tpu.memory_space<vmem>>, %arg15: memref<1x3x64x128xf32, #tpu.memory_space<vmem>>, %arg16: memref<1x3x64x128xf32, #tpu.memory_space<vmem>>, %arg17: memref<1x2x64x128xf32, #tpu.memory_space<vmem>>, %arg18: memref<1x2x64x128xf32, #tpu.memory_space<vmem>>, %arg19: memref<16x64xf32, #tpu.memory_space<vmem>>, %arg20: memref<128x32xf32, #tpu.memory_space<vmem>>, %arg21: memref<1x16x32xf32, #tpu.memory_space<vmem>>) attributes {dimension_semantics = [#tpu.dimension_semantics<parallel>], iteration_bounds = array<i64: 1>, scalar_prefetch = 0 : i64, scratch_operands = 0 : i64, tpu.core_type = #tpu.core_type<tc>, window_params = [{transform_indices = @transform_0, window_bounds = array<i64: 1, 64, 128>}, {transform_indices = @transform_1, window_bounds = array<i64: 1, 64, 128>}, {pipeline_mode = #tpu.pipeline_mode<synchronous>, transform_indices = @transform_2, window_bounds = array<i64: 64, 64>}, {pipeline_mode = #tpu.pipeline_mode<synchronous>, transform_indices = @transform_3, window_bounds = array<i64: 64, 64>}, {pipeline_mode = #tpu.pipeline_mode<synchronous>, transform_indices = @transform_4, window_bounds = array<i64: 64, 64>}, {pipeline_mode = #tpu.pipeline_mode<synchronous>, transform_indices = @transform_5, window_bounds = array<i64: 64, 64>}, {pipeline_mode = #tpu.pipeline_mode<synchronous>, transform_indices = @transform_6, window_bounds = array<i64: 64, 64>}, {pipeline_mode = #tpu.pipeline_mode<synchronous>, transform_indices = @transform_7, window_bounds = array<i64: 64, 64>}, {pipeline_mode = #tpu.pipeline_mode<synchronous>, transform_indices = @transform_8, window_bounds = array<i64: 128, 128>}, {pipeline_mode = #tpu.pipeline_mode<synchronous>, transform_indices = @transform_9, window_bounds = array<i64: 128, 128>}, {pipeline_mode = #tpu.pipeline_mode<synchronous>, transform_indices = @transform_10, window_bounds = array<i64: 128, 128>}, {pipeline_mode = #tpu.pipeline_mode<synchronous>, transform_indices = @transform_11, window_bounds = array<i64: 128, 128>}, {pipeline_mode = #tpu.pipeline_mode<synchronous>, transform_indices = @transform_12, window_bounds = array<i64: 128, 128>}, {pipeline_mode = #tpu.pipeline_mode<synchronous>, transform_indices = @transform_13, window_bounds = array<i64: 128, 128>}, {transform_indices = @transform_14, window_bounds = array<i64: 1, 3, 64, 128>}, {transform_indices = @transform_15, window_bounds = array<i64: 1, 3, 64, 128>}, {transform_indices = @transform_16, window_bounds = array<i64: 1, 2, 64, 128>}, {transform_indices = @transform_17, window_bounds = array<i64: 1, 2, 64, 128>}, {pipeline_mode = #tpu.pipeline_mode<synchronous>, transform_indices = @transform_18, window_bounds = array<i64: 16, 64>}, {pipeline_mode = #tpu.pipeline_mode<synchronous>, transform_indices = @transform_19, window_bounds = array<i64: 128, 32>}, {transform_indices = @transform_20, window_bounds = array<i64: 1, 16, 32>}]} {
    %c0 = arith.constant 0 : index
    %c0_0 = arith.constant 0 : index
    %c0_1 = arith.constant 0 : index
    %0 = vector.load %arg1[%c0, %c0_0, %c0_1] : memref<1x64x128xf32, #tpu.memory_space<vmem>>, vector<1x64x128xf32>
    %1 = vector.shape_cast %0 : vector<1x64x128xf32> to vector<64x128xf32>
    %c0_2 = arith.constant 0 : index
    %c0_3 = arith.constant 0 : index
    %c0_4 = arith.constant 0 : index
    %2 = vector.load %arg2[%c0_2, %c0_3, %c0_4] : memref<1x64x128xf32, #tpu.memory_space<vmem>>, vector<1x64x128xf32>
    %3 = vector.shape_cast %2 : vector<1x64x128xf32> to vector<64x128xf32>
    %c0_5 = arith.constant 0 : index
    %c0_6 = arith.constant 0 : index
    %4 = vector.load %arg3[%c0_5, %c0_6] : memref<64x64xf32, #tpu.memory_space<vmem>>, vector<64x64xf32>
    %cst = arith.constant dense<0.000000e+00> : vector<64x128xf32>
    %5 = tpu.matmul %4, %1, %cst {dimension_numbers = #tpu.dot_dimension_numbers<[1], [0], [0], [1], [0, 0, 1, 1], [], []>} : vector<64x64xf32>, vector<64x128xf32>, vector<64x128xf32> -> vector<64x128xf32>
    %c0_7 = arith.constant 0 : index
    %c0_8 = arith.constant 0 : index
    %6 = vector.load %arg4[%c0_7, %c0_8] : memref<64x64xf32, #tpu.memory_space<vmem>>, vector<64x64xf32>
    %cst_9 = arith.constant dense<0.000000e+00> : vector<64x128xf32>
    %7 = tpu.matmul %6, %3, %cst_9 {dimension_numbers = #tpu.dot_dimension_numbers<[1], [0], [0], [1], [0, 0, 1, 1], [], []>} : vector<64x64xf32>, vector<64x128xf32>, vector<64x128xf32> -> vector<64x128xf32>
    %c0_10 = arith.constant 0 : index
    %c0_11 = arith.constant 0 : index
    %8 = vector.load %arg5[%c0_10, %c0_11] : memref<64x64xf32, #tpu.memory_space<vmem>>, vector<64x64xf32>
    %9 = arith.addf %1, %3 : vector<64x128xf32>
    %cst_12 = arith.constant dense<0.000000e+00> : vector<64x128xf32>
    %10 = tpu.matmul %8, %9, %cst_12 {dimension_numbers = #tpu.dot_dimension_numbers<[1], [0], [0], [1], [0, 0, 1, 1], [], []>} : vector<64x64xf32>, vector<64x128xf32>, vector<64x128xf32> -> vector<64x128xf32>
    %11 = arith.subf %5, %7 : vector<64x128xf32>
    %12 = arith.subf %10, %5 : vector<64x128xf32>
    %13 = arith.subf %12, %7 : vector<64x128xf32>
    %c0_13 = arith.constant 0 : index
    %c0_14 = arith.constant 0 : index
    %14 = vector.load %arg9[%c0_13, %c0_14] : memref<128x128xf32, #tpu.memory_space<vmem>>, vector<128x128xf32>
    %cst_15 = arith.constant dense<0.000000e+00> : vector<64x128xf32>
    %15 = tpu.matmul %11, %14, %cst_15 {dimension_numbers = #tpu.dot_dimension_numbers<[1], [0], [0], [1], [0, 0, 1, 1], [], []>} : vector<64x128xf32>, vector<128x128xf32>, vector<64x128xf32> -> vector<64x128xf32>
    %c0_16 = arith.constant 0 : index
    %c0_17 = arith.constant 0 : index
    %16 = vector.load %arg10[%c0_16, %c0_17] : memref<128x128xf32, #tpu.memory_space<vmem>>, vector<128x128xf32>
    %cst_18 = arith.constant dense<0.000000e+00> : vector<64x128xf32>
    %17 = tpu.matmul %13, %16, %cst_18 {dimension_numbers = #tpu.dot_dimension_numbers<[1], [0], [0], [1], [0, 0, 1, 1], [], []>} : vector<64x128xf32>, vector<128x128xf32>, vector<64x128xf32> -> vector<64x128xf32>
    %18 = arith.addf %11, %13 : vector<64x128xf32>
    %c0_19 = arith.constant 0 : index
    %c0_20 = arith.constant 0 : index
    %19 = vector.load %arg11[%c0_19, %c0_20] : memref<128x128xf32, #tpu.memory_space<vmem>>, vector<128x128xf32>
    %cst_21 = arith.constant dense<0.000000e+00> : vector<64x128xf32>
    %20 = tpu.matmul %18, %19, %cst_21 {dimension_numbers = #tpu.dot_dimension_numbers<[1], [0], [0], [1], [0, 0, 1, 1], [], []>} : vector<64x128xf32>, vector<128x128xf32>, vector<64x128xf32> -> vector<64x128xf32>
    %21 = arith.subf %15, %17 : vector<64x128xf32>
    %22 = arith.subf %20, %15 : vector<64x128xf32>
    %23 = arith.subf %22, %17 : vector<64x128xf32>
    %c0_22 = arith.constant 0 : index
    %c0_23 = arith.constant 0 : index
    %c0_24 = arith.constant 0 : index
    %c0_25 = arith.constant 0 : index
    %24 = vector.load %arg15[%c0_22, %c0_23, %c0_24, %c0_25] : memref<1x3x64x128xf32, #tpu.memory_space<vmem>>, vector<1x1x64x128xf32>
    %25 = vector.shape_cast %24 : vector<1x1x64x128xf32> to vector<64x128xf32>
    %c0_26 = arith.constant 0 : index
    %c0_27 = arith.constant 0 : index
    %c0_28 = arith.constant 0 : index
    %c0_29 = arith.constant 0 : index
    %26 = vector.load %arg16[%c0_26, %c0_27, %c0_28, %c0_29] : memref<1x3x64x128xf32, #tpu.memory_space<vmem>>, vector<1x1x64x128xf32>
    %27 = vector.shape_cast %26 : vector<1x1x64x128xf32> to vector<64x128xf32>
    %28 = arith.mulf %21, %25 : vector<64x128xf32>
    %29 = arith.mulf %23, %27 : vector<64x128xf32>
    %30 = arith.subf %28, %29 : vector<64x128xf32>
    %31 = arith.mulf %21, %27 : vector<64x128xf32>
    %32 = arith.mulf %23, %25 : vector<64x128xf32>
    %33 = arith.addf %31, %32 : vector<64x128xf32>
    %c0_30 = arith.constant 0 : index
    %c0_31 = arith.constant 0 : index
    %34 = vector.load %arg6[%c0_30, %c0_31] : memref<64x64xf32, #tpu.memory_space<vmem>>, vector<64x64xf32>
    %cst_32 = arith.constant dense<0.000000e+00> : vector<64x128xf32>
    %35 = tpu.matmul %34, %30, %cst_32 {dimension_numbers = #tpu.dot_dimension_numbers<[1], [0], [0], [1], [0, 0, 1, 1], [], []>} : vector<64x64xf32>, vector<64x128xf32>, vector<64x128xf32> -> vector<64x128xf32>
    %c0_33 = arith.constant 0 : index
    %c0_34 = arith.constant 0 : index
    %36 = vector.load %arg7[%c0_33, %c0_34] : memref<64x64xf32, #tpu.memory_space<vmem>>, vector<64x64xf32>
    %cst_35 = arith.constant dense<0.000000e+00> : vector<64x128xf32>
    %37 = tpu.matmul %36, %33, %cst_35 {dimension_numbers = #tpu.dot_dimension_numbers<[1], [0], [0], [1], [0, 0, 1, 1], [], []>} : vector<64x64xf32>, vector<64x128xf32>, vector<64x128xf32> -> vector<64x128xf32>
    %c0_36 = arith.constant 0 : index
    %c0_37 = arith.constant 0 : index
    %38 = vector.load %arg8[%c0_36, %c0_37] : memref<64x64xf32, #tpu.memory_space<vmem>>, vector<64x64xf32>
    %39 = arith.addf %30, %33 : vector<64x128xf32>
    %cst_38 = arith.constant dense<0.000000e+00> : vector<64x128xf32>
    %40 = tpu.matmul %38, %39, %cst_38 {dimension_numbers = #tpu.dot_dimension_numbers<[1], [0], [0], [1], [0, 0, 1, 1], [], []>} : vector<64x64xf32>, vector<64x128xf32>, vector<64x128xf32> -> vector<64x128xf32>
    %41 = arith.subf %35, %37 : vector<64x128xf32>
    %42 = arith.subf %40, %35 : vector<64x128xf32>
    %43 = arith.subf %42, %37 : vector<64x128xf32>
    %c0_39 = arith.constant 0 : index
    %c0_40 = arith.constant 0 : index
    %44 = vector.load %arg12[%c0_39, %c0_40] : memref<128x128xf32, #tpu.memory_space<vmem>>, vector<128x128xf32>
    %cst_41 = arith.constant dense<0.000000e+00> : vector<64x128xf32>
    %45 = tpu.matmul %41, %44, %cst_41 {dimension_numbers = #tpu.dot_dimension_numbers<[1], [0], [0], [1], [0, 0, 1, 1], [], []>} : vector<64x128xf32>, vector<128x128xf32>, vector<64x128xf32> -> vector<64x128xf32>
    %c0_42 = arith.constant 0 : index
    %c0_43 = arith.constant 0 : index
    %46 = vector.load %arg13[%c0_42, %c0_43] : memref<128x128xf32, #tpu.memory_space<vmem>>, vector<128x128xf32>
    %cst_44 = arith.constant dense<0.000000e+00> : vector<64x128xf32>
    %47 = tpu.matmul %43, %46, %cst_44 {dimension_numbers = #tpu.dot_dimension_numbers<[1], [0], [0], [1], [0, 0, 1, 1], [], []>} : vector<64x128xf32>, vector<128x128xf32>, vector<64x128xf32> -> vector<64x128xf32>
    %48 = arith.addf %41, %43 : vector<64x128xf32>
    %c0_45 = arith.constant 0 : index
    %c0_46 = arith.constant 0 : index
    %49 = vector.load %arg14[%c0_45, %c0_46] : memref<128x128xf32, #tpu.memory_space<vmem>>, vector<128x128xf32>
    %cst_47 = arith.constant dense<0.000000e+00> : vector<64x128xf32>
    %50 = tpu.matmul %48, %49, %cst_47 {dimension_numbers = #tpu.dot_dimension_numbers<[1], [0], [0], [1], [0, 0, 1, 1], [], []>} : vector<64x128xf32>, vector<128x128xf32>, vector<64x128xf32> -> vector<64x128xf32>
    %51 = arith.subf %45, %47 : vector<64x128xf32>
    %52 = arith.subf %50, %45 : vector<64x128xf32>
    %53 = arith.subf %52, %47 : vector<64x128xf32>
    %c0_48 = arith.constant 0 : index
    %c0_49 = arith.constant 0 : index
    %c0_50 = arith.constant 0 : index
    %c0_51 = arith.constant 0 : index
    %54 = vector.load %arg17[%c0_48, %c0_49, %c0_50, %c0_51] : memref<1x2x64x128xf32, #tpu.memory_space<vmem>>, vector<1x1x64x128xf32>
    %55 = vector.shape_cast %54 : vector<1x1x64x128xf32> to vector<64x128xf32>
    %c0_52 = arith.constant 0 : index
    %c0_53 = arith.constant 0 : index
    %c0_54 = arith.constant 0 : index
    %c0_55 = arith.constant 0 : index
    %56 = vector.load %arg18[%c0_52, %c0_53, %c0_54, %c0_55] : memref<1x2x64x128xf32, #tpu.memory_space<vmem>>, vector<1x1x64x128xf32>
    %57 = vector.shape_cast %56 : vector<1x1x64x128xf32> to vector<64x128xf32>
    %58 = arith.mulf %51, %55 : vector<64x128xf32>
    %59 = arith.mulf %53, %57 : vector<64x128xf32>
    %60 = arith.subf %58, %59 : vector<64x128xf32>
    %61 = arith.mulf %51, %57 : vector<64x128xf32>
    %62 = arith.mulf %53, %55 : vector<64x128xf32>
    %63 = arith.addf %61, %62 : vector<64x128xf32>
    %c0_56 = arith.constant 0 : index
    %c0_57 = arith.constant 0 : index
    %64 = vector.load %arg3[%c0_56, %c0_57] : memref<64x64xf32, #tpu.memory_space<vmem>>, vector<64x64xf32>
    %cst_58 = arith.constant dense<0.000000e+00> : vector<64x128xf32>
    %65 = tpu.matmul %64, %60, %cst_58 {dimension_numbers = #tpu.dot_dimension_numbers<[1], [0], [0], [1], [0, 0, 1, 1], [], []>} : vector<64x64xf32>, vector<64x128xf32>, vector<64x128xf32> -> vector<64x128xf32>
    %c0_59 = arith.constant 0 : index
    %c0_60 = arith.constant 0 : index
    %66 = vector.load %arg4[%c0_59, %c0_60] : memref<64x64xf32, #tpu.memory_space<vmem>>, vector<64x64xf32>
    %cst_61 = arith.constant dense<0.000000e+00> : vector<64x128xf32>
    %67 = tpu.matmul %66, %63, %cst_61 {dimension_numbers = #tpu.dot_dimension_numbers<[1], [0], [0], [1], [0, 0, 1, 1], [], []>} : vector<64x64xf32>, vector<64x128xf32>, vector<64x128xf32> -> vector<64x128xf32>
    %c0_62 = arith.constant 0 : index
    %c0_63 = arith.constant 0 : index
    %68 = vector.load %arg5[%c0_62, %c0_63] : memref<64x64xf32, #tpu.memory_space<vmem>>, vector<64x64xf32>
    %69 = arith.addf %60, %63 : vector<64x128xf32>
    %cst_64 = arith.constant dense<0.000000e+00> : vector<64x128xf32>
    %70 = tpu.matmul %68, %69, %cst_64 {dimension_numbers = #tpu.dot_dimension_numbers<[1], [0], [0], [1], [0, 0, 1, 1], [], []>} : vector<64x64xf32>, vector<64x128xf32>, vector<64x128xf32> -> vector<64x128xf32>
    %71 = arith.subf %65, %67 : vector<64x128xf32>
    %72 = arith.subf %70, %65 : vector<64x128xf32>
    %73 = arith.subf %72, %67 : vector<64x128xf32>
    %c0_65 = arith.constant 0 : index
    %c0_66 = arith.constant 0 : index
    %74 = vector.load %arg9[%c0_65, %c0_66] : memref<128x128xf32, #tpu.memory_space<vmem>>, vector<128x128xf32>
    %cst_67 = arith.constant dense<0.000000e+00> : vector<64x128xf32>
    %75 = tpu.matmul %71, %74, %cst_67 {dimension_numbers = #tpu.dot_dimension_numbers<[1], [0], [0], [1], [0, 0, 1, 1], [], []>} : vector<64x128xf32>, vector<128x128xf32>, vector<64x128xf32> -> vector<64x128xf32>
    %c0_68 = arith.constant 0 : index
    %c0_69 = arith.constant 0 : index
    %76 = vector.load %arg10[%c0_68, %c0_69] : memref<128x128xf32, #tpu.memory_space<vmem>>, vector<128x128xf32>
    %cst_70 = arith.constant dense<0.000000e+00> : vector<64x128xf32>
    %77 = tpu.matmul %73, %76, %cst_70 {dimension_numbers = #tpu.dot_dimension_numbers<[1], [0], [0], [1], [0, 0, 1, 1], [], []>} : vector<64x128xf32>, vector<128x128xf32>, vector<64x128xf32> -> vector<64x128xf32>
    %78 = arith.addf %71, %73 : vector<64x128xf32>
    %c0_71 = arith.constant 0 : index
    %c0_72 = arith.constant 0 : index
    %79 = vector.load %arg11[%c0_71, %c0_72] : memref<128x128xf32, #tpu.memory_space<vmem>>, vector<128x128xf32>
    %cst_73 = arith.constant dense<0.000000e+00> : vector<64x128xf32>
    %80 = tpu.matmul %78, %79, %cst_73 {dimension_numbers = #tpu.dot_dimension_numbers<[1], [0], [0], [1], [0, 0, 1, 1], [], []>} : vector<64x128xf32>, vector<128x128xf32>, vector<64x128xf32> -> vector<64x128xf32>
    %81 = arith.subf %75, %77 : vector<64x128xf32>
    %82 = arith.subf %80, %75 : vector<64x128xf32>
    %83 = arith.subf %82, %77 : vector<64x128xf32>
    %c0_74 = arith.constant 0 : index
    %c1 = arith.constant 1 : index
    %c0_75 = arith.constant 0 : index
    %c0_76 = arith.constant 0 : index
    %84 = vector.load %arg15[%c0_74, %c1, %c0_75, %c0_76] : memref<1x3x64x128xf32, #tpu.memory_space<vmem>>, vector<1x1x64x128xf32>
    %85 = vector.shape_cast %84 : vector<1x1x64x128xf32> to vector<64x128xf32>
    %c0_77 = arith.constant 0 : index
    %c1_78 = arith.constant 1 : index
    %c0_79 = arith.constant 0 : index
    %c0_80 = arith.constant 0 : index
    %86 = vector.load %arg16[%c0_77, %c1_78, %c0_79, %c0_80] : memref<1x3x64x128xf32, #tpu.memory_space<vmem>>, vector<1x1x64x128xf32>
    %87 = vector.shape_cast %86 : vector<1x1x64x128xf32> to vector<64x128xf32>
    %88 = arith.mulf %81, %85 : vector<64x128xf32>
    %89 = arith.mulf %83, %87 : vector<64x128xf32>
    %90 = arith.subf %88, %89 : vector<64x128xf32>
    %91 = arith.mulf %81, %87 : vector<64x128xf32>
    %92 = arith.mulf %83, %85 : vector<64x128xf32>
    %93 = arith.addf %91, %92 : vector<64x128xf32>
    %c0_81 = arith.constant 0 : index
    %c0_82 = arith.constant 0 : index
    %94 = vector.load %arg6[%c0_81, %c0_82] : memref<64x64xf32, #tpu.memory_space<vmem>>, vector<64x64xf32>
    %cst_83 = arith.constant dense<0.000000e+00> : vector<64x128xf32>
    %95 = tpu.matmul %94, %90, %cst_83 {dimension_numbers = #tpu.dot_dimension_numbers<[1], [0], [0], [1], [0, 0, 1, 1], [], []>} : vector<64x64xf32>, vector<64x128xf32>, vector<64x128xf32> -> vector<64x128xf32>
    %c0_84 = arith.constant 0 : index
    %c0_85 = arith.constant 0 : index
    %96 = vector.load %arg7[%c0_84, %c0_85] : memref<64x64xf32, #tpu.memory_space<vmem>>, vector<64x64xf32>
    %cst_86 = arith.constant dense<0.000000e+00> : vector<64x128xf32>
    %97 = tpu.matmul %96, %93, %cst_86 {dimension_numbers = #tpu.dot_dimension_numbers<[1], [0], [0], [1], [0, 0, 1, 1], [], []>} : vector<64x64xf32>, vector<64x128xf32>, vector<64x128xf32> -> vector<64x128xf32>
    %c0_87 = arith.constant 0 : index
    %c0_88 = arith.constant 0 : index
    %98 = vector.load %arg8[%c0_87, %c0_88] : memref<64x64xf32, #tpu.memory_space<vmem>>, vector<64x64xf32>
    %99 = arith.addf %90, %93 : vector<64x128xf32>
    %cst_89 = arith.constant dense<0.000000e+00> : vector<64x128xf32>
    %100 = tpu.matmul %98, %99, %cst_89 {dimension_numbers = #tpu.dot_dimension_numbers<[1], [0], [0], [1], [0, 0, 1, 1], [], []>} : vector<64x64xf32>, vector<64x128xf32>, vector<64x128xf32> -> vector<64x128xf32>
    %101 = arith.subf %95, %97 : vector<64x128xf32>
    %102 = arith.subf %100, %95 : vector<64x128xf32>
    %103 = arith.subf %102, %97 : vector<64x128xf32>
    %c0_90 = arith.constant 0 : index
    %c0_91 = arith.constant 0 : index
    %104 = vector.load %arg12[%c0_90, %c0_91] : memref<128x128xf32, #tpu.memory_space<vmem>>, vector<128x128xf32>
    %cst_92 = arith.constant dense<0.000000e+00> : vector<64x128xf32>
    %105 = tpu.matmul %101, %104, %cst_92 {dimension_numbers = #tpu.dot_dimension_numbers<[1], [0], [0], [1], [0, 0, 1, 1], [], []>} : vector<64x128xf32>, vector<128x128xf32>, vector<64x128xf32> -> vector<64x128xf32>
    %c0_93 = arith.constant 0 : index
    %c0_94 = arith.constant 0 : index
    %106 = vector.load %arg13[%c0_93, %c0_94] : memref<128x128xf32, #tpu.memory_space<vmem>>, vector<128x128xf32>
    %cst_95 = arith.constant dense<0.000000e+00> : vector<64x128xf32>
    %107 = tpu.matmul %103, %106, %cst_95 {dimension_numbers = #tpu.dot_dimension_numbers<[1], [0], [0], [1], [0, 0, 1, 1], [], []>} : vector<64x128xf32>, vector<128x128xf32>, vector<64x128xf32> -> vector<64x128xf32>
    %108 = arith.addf %101, %103 : vector<64x128xf32>
    %c0_96 = arith.constant 0 : index
    %c0_97 = arith.constant 0 : index
    %109 = vector.load %arg14[%c0_96, %c0_97] : memref<128x128xf32, #tpu.memory_space<vmem>>, vector<128x128xf32>
    %cst_98 = arith.constant dense<0.000000e+00> : vector<64x128xf32>
    %110 = tpu.matmul %108, %109, %cst_98 {dimension_numbers = #tpu.dot_dimension_numbers<[1], [0], [0], [1], [0, 0, 1, 1], [], []>} : vector<64x128xf32>, vector<128x128xf32>, vector<64x128xf32> -> vector<64x128xf32>
    %111 = arith.subf %105, %107 : vector<64x128xf32>
    %112 = arith.subf %110, %105 : vector<64x128xf32>
    %113 = arith.subf %112, %107 : vector<64x128xf32>
    %c0_99 = arith.constant 0 : index
    %c1_100 = arith.constant 1 : index
    %c0_101 = arith.constant 0 : index
    %c0_102 = arith.constant 0 : index
    %114 = vector.load %arg17[%c0_99, %c1_100, %c0_101, %c0_102] : memref<1x2x64x128xf32, #tpu.memory_space<vmem>>, vector<1x1x64x128xf32>
    %115 = vector.shape_cast %114 : vector<1x1x64x128xf32> to vector<64x128xf32>
    %c0_103 = arith.constant 0 : index
    %c1_104 = arith.constant 1 : index
    %c0_105 = arith.constant 0 : index
    %c0_106 = arith.constant 0 : index
    %116 = vector.load %arg18[%c0_103, %c1_104, %c0_105, %c0_106] : memref<1x2x64x128xf32, #tpu.memory_space<vmem>>, vector<1x1x64x128xf32>
    %117 = vector.shape_cast %116 : vector<1x1x64x128xf32> to vector<64x128xf32>
    %118 = arith.mulf %111, %115 : vector<64x128xf32>
    %119 = arith.mulf %113, %117 : vector<64x128xf32>
    %120 = arith.subf %118, %119 : vector<64x128xf32>
    %121 = arith.mulf %111, %117 : vector<64x128xf32>
    %122 = arith.mulf %113, %115 : vector<64x128xf32>
    %123 = arith.addf %121, %122 : vector<64x128xf32>
    %c0_107 = arith.constant 0 : index
    %c0_108 = arith.constant 0 : index
    %124 = vector.load %arg3[%c0_107, %c0_108] : memref<64x64xf32, #tpu.memory_space<vmem>>, vector<64x64xf32>
    %cst_109 = arith.constant dense<0.000000e+00> : vector<64x128xf32>
    %125 = tpu.matmul %124, %120, %cst_109 {dimension_numbers = #tpu.dot_dimension_numbers<[1], [0], [0], [1], [0, 0, 1, 1], [], []>} : vector<64x64xf32>, vector<64x128xf32>, vector<64x128xf32> -> vector<64x128xf32>
    %c0_110 = arith.constant 0 : index
    %c0_111 = arith.constant 0 : index
    %126 = vector.load %arg4[%c0_110, %c0_111] : memref<64x64xf32, #tpu.memory_space<vmem>>, vector<64x64xf32>
    %cst_112 = arith.constant dense<0.000000e+00> : vector<64x128xf32>
    %127 = tpu.matmul %126, %123, %cst_112 {dimension_numbers = #tpu.dot_dimension_numbers<[1], [0], [0], [1], [0, 0, 1, 1], [], []>} : vector<64x64xf32>, vector<64x128xf32>, vector<64x128xf32> -> vector<64x128xf32>
    %c0_113 = arith.constant 0 : index
    %c0_114 = arith.constant 0 : index
    %128 = vector.load %arg5[%c0_113, %c0_114] : memref<64x64xf32, #tpu.memory_space<vmem>>, vector<64x64xf32>
    %129 = arith.addf %120, %123 : vector<64x128xf32>
    %cst_115 = arith.constant dense<0.000000e+00> : vector<64x128xf32>
    %130 = tpu.matmul %128, %129, %cst_115 {dimension_numbers = #tpu.dot_dimension_numbers<[1], [0], [0], [1], [0, 0, 1, 1], [], []>} : vector<64x64xf32>, vector<64x128xf32>, vector<64x128xf32> -> vector<64x128xf32>
    %131 = arith.subf %125, %127 : vector<64x128xf32>
    %132 = arith.subf %130, %125 : vector<64x128xf32>
    %133 = arith.subf %132, %127 : vector<64x128xf32>
    %c0_116 = arith.constant 0 : index
    %c0_117 = arith.constant 0 : index
    %134 = vector.load %arg9[%c0_116, %c0_117] : memref<128x128xf32, #tpu.memory_space<vmem>>, vector<128x128xf32>
    %cst_118 = arith.constant dense<0.000000e+00> : vector<64x128xf32>
    %135 = tpu.matmul %131, %134, %cst_118 {dimension_numbers = #tpu.dot_dimension_numbers<[1], [0], [0], [1], [0, 0, 1, 1], [], []>} : vector<64x128xf32>, vector<128x128xf32>, vector<64x128xf32> -> vector<64x128xf32>
    %c0_119 = arith.constant 0 : index
    %c0_120 = arith.constant 0 : index
    %136 = vector.load %arg10[%c0_119, %c0_120] : memref<128x128xf32, #tpu.memory_space<vmem>>, vector<128x128xf32>
    %cst_121 = arith.constant dense<0.000000e+00> : vector<64x128xf32>
    %137 = tpu.matmul %133, %136, %cst_121 {dimension_numbers = #tpu.dot_dimension_numbers<[1], [0], [0], [1], [0, 0, 1, 1], [], []>} : vector<64x128xf32>, vector<128x128xf32>, vector<64x128xf32> -> vector<64x128xf32>
    %138 = arith.addf %131, %133 : vector<64x128xf32>
    %c0_122 = arith.constant 0 : index
    %c0_123 = arith.constant 0 : index
    %139 = vector.load %arg11[%c0_122, %c0_123] : memref<128x128xf32, #tpu.memory_space<vmem>>, vector<128x128xf32>
    %cst_124 = arith.constant dense<0.000000e+00> : vector<64x128xf32>
    %140 = tpu.matmul %138, %139, %cst_124 {dimension_numbers = #tpu.dot_dimension_numbers<[1], [0], [0], [1], [0, 0, 1, 1], [], []>} : vector<64x128xf32>, vector<128x128xf32>, vector<64x128xf32> -> vector<64x128xf32>
    %141 = arith.subf %135, %137 : vector<64x128xf32>
    %142 = arith.subf %140, %135 : vector<64x128xf32>
    %143 = arith.subf %142, %137 : vector<64x128xf32>
    %c0_125 = arith.constant 0 : index
    %c2 = arith.constant 2 : index
    %c0_126 = arith.constant 0 : index
    %c0_127 = arith.constant 0 : index
    %144 = vector.load %arg15[%c0_125, %c2, %c0_126, %c0_127] : memref<1x3x64x128xf32, #tpu.memory_space<vmem>>, vector<1x1x64x128xf32>
    %145 = vector.shape_cast %144 : vector<1x1x64x128xf32> to vector<64x128xf32>
    %c0_128 = arith.constant 0 : index
    %c2_129 = arith.constant 2 : index
    %c0_130 = arith.constant 0 : index
    %c0_131 = arith.constant 0 : index
    %146 = vector.load %arg16[%c0_128, %c2_129, %c0_130, %c0_131] : memref<1x3x64x128xf32, #tpu.memory_space<vmem>>, vector<1x1x64x128xf32>
    %147 = vector.shape_cast %146 : vector<1x1x64x128xf32> to vector<64x128xf32>
    %148 = arith.mulf %141, %145 : vector<64x128xf32>
    %149 = arith.mulf %143, %147 : vector<64x128xf32>
    %150 = arith.subf %148, %149 : vector<64x128xf32>
    %151 = arith.mulf %141, %147 : vector<64x128xf32>
    %152 = arith.mulf %143, %145 : vector<64x128xf32>
    %153 = arith.addf %151, %152 : vector<64x128xf32>
    %c0_132 = arith.constant 0 : index
    %c0_133 = arith.constant 0 : index
    %154 = vector.load %arg6[%c0_132, %c0_133] : memref<64x64xf32, #tpu.memory_space<vmem>>, vector<64x64xf32>
    %cst_134 = arith.constant dense<0.000000e+00> : vector<64x128xf32>
    %155 = tpu.matmul %154, %150, %cst_134 {dimension_numbers = #tpu.dot_dimension_numbers<[1], [0], [0], [1], [0, 0, 1, 1], [], []>} : vector<64x64xf32>, vector<64x128xf32>, vector<64x128xf32> -> vector<64x128xf32>
    %c0_135 = arith.constant 0 : index
    %c0_136 = arith.constant 0 : index
    %156 = vector.load %arg7[%c0_135, %c0_136] : memref<64x64xf32, #tpu.memory_space<vmem>>, vector<64x64xf32>
    %cst_137 = arith.constant dense<0.000000e+00> : vector<64x128xf32>
    %157 = tpu.matmul %156, %153, %cst_137 {dimension_numbers = #tpu.dot_dimension_numbers<[1], [0], [0], [1], [0, 0, 1, 1], [], []>} : vector<64x64xf32>, vector<64x128xf32>, vector<64x128xf32> -> vector<64x128xf32>
    %c0_138 = arith.constant 0 : index
    %c0_139 = arith.constant 0 : index
    %158 = vector.load %arg8[%c0_138, %c0_139] : memref<64x64xf32, #tpu.memory_space<vmem>>, vector<64x64xf32>
    %159 = arith.addf %150, %153 : vector<64x128xf32>
    %cst_140 = arith.constant dense<0.000000e+00> : vector<64x128xf32>
    %160 = tpu.matmul %158, %159, %cst_140 {dimension_numbers = #tpu.dot_dimension_numbers<[1], [0], [0], [1], [0, 0, 1, 1], [], []>} : vector<64x64xf32>, vector<64x128xf32>, vector<64x128xf32> -> vector<64x128xf32>
    %161 = arith.subf %155, %157 : vector<64x128xf32>
    %162 = arith.subf %160, %155 : vector<64x128xf32>
    %163 = arith.subf %162, %157 : vector<64x128xf32>
    %c0_141 = arith.constant 0 : index
    %c0_142 = arith.constant 0 : index
    %164 = vector.load %arg12[%c0_141, %c0_142] : memref<128x128xf32, #tpu.memory_space<vmem>>, vector<128x128xf32>
    %cst_143 = arith.constant dense<0.000000e+00> : vector<64x128xf32>
    %165 = tpu.matmul %161, %164, %cst_143 {dimension_numbers = #tpu.dot_dimension_numbers<[1], [0], [0], [1], [0, 0, 1, 1], [], []>} : vector<64x128xf32>, vector<128x128xf32>, vector<64x128xf32> -> vector<64x128xf32>
    %c0_144 = arith.constant 0 : index
    %c0_145 = arith.constant 0 : index
    %166 = vector.load %arg13[%c0_144, %c0_145] : memref<128x128xf32, #tpu.memory_space<vmem>>, vector<128x128xf32>
    %cst_146 = arith.constant dense<0.000000e+00> : vector<64x128xf32>
    %167 = tpu.matmul %163, %166, %cst_146 {dimension_numbers = #tpu.dot_dimension_numbers<[1], [0], [0], [1], [0, 0, 1, 1], [], []>} : vector<64x128xf32>, vector<128x128xf32>, vector<64x128xf32> -> vector<64x128xf32>
    %168 = arith.addf %161, %163 : vector<64x128xf32>
    %c0_147 = arith.constant 0 : index
    %c0_148 = arith.constant 0 : index
    %169 = vector.load %arg14[%c0_147, %c0_148] : memref<128x128xf32, #tpu.memory_space<vmem>>, vector<128x128xf32>
    %cst_149 = arith.constant dense<0.000000e+00> : vector<64x128xf32>
    %170 = tpu.matmul %168, %169, %cst_149 {dimension_numbers = #tpu.dot_dimension_numbers<[1], [0], [0], [1], [0, 0, 1, 1], [], []>} : vector<64x128xf32>, vector<128x128xf32>, vector<64x128xf32> -> vector<64x128xf32>
    %171 = arith.subf %165, %167 : vector<64x128xf32>
    %172 = arith.subf %170, %165 : vector<64x128xf32>
    %173 = arith.subf %172, %167 : vector<64x128xf32>
    %174 = arith.mulf %171, %171 : vector<64x128xf32>
    %175 = arith.mulf %173, %173 : vector<64x128xf32>
    %176 = arith.addf %174, %175 : vector<64x128xf32>
    %177 = math.sqrt %176 : vector<64x128xf32>
    %c0_150 = arith.constant 0 : index
    %c0_151 = arith.constant 0 : index
    %178 = vector.load %arg19[%c0_150, %c0_151] : memref<16x64xf32, #tpu.memory_space<vmem>>, vector<16x64xf32>
    %cst_152 = arith.constant dense<0.000000e+00> : vector<16x128xf32>
    %179 = tpu.matmul %178, %177, %cst_152 {dimension_numbers = #tpu.dot_dimension_numbers<[1], [0], [0], [1], [0, 0, 1, 1], [], []>} : vector<16x64xf32>, vector<64x128xf32>, vector<16x128xf32> -> vector<16x128xf32>
    %c0_153 = arith.constant 0 : index
    %c0_154 = arith.constant 0 : index
    %180 = vector.load %arg20[%c0_153, %c0_154] : memref<128x32xf32, #tpu.memory_space<vmem>>, vector<128x32xf32>
    %cst_155 = arith.constant dense<0.000000e+00> : vector<16x32xf32>
    %181 = tpu.matmul %179, %180, %cst_155 {dimension_numbers = #tpu.dot_dimension_numbers<[1], [0], [0], [1], [0, 0, 1, 1], [], []>} : vector<16x128xf32>, vector<128x32xf32>, vector<16x32xf32> -> vector<16x32xf32>
    %182 = arith.mulf %181, %181 : vector<16x32xf32>
    %c0_156 = arith.constant 0 : index
    %c0_157 = arith.constant 0 : index
    %c0_158 = arith.constant 0 : index
    %183 = vector.load %arg21[%c0_156, %c0_157, %c0_158] : memref<1x16x32xf32, #tpu.memory_space<vmem>>, vector<1x16x32xf32>
    %184 = vector.shape_cast %183 : vector<1x16x32xf32> to vector<16x32xf32>
    %185 = vector.shape_cast %182 : vector<16x32xf32> to vector<1x16x32xf32>
    tpu.vector_store %arg21[%c0_156, %c0_157, %c0_158], %185 {strides = array<i32>} : memref<1x16x32xf32, #tpu.memory_space<vmem>>, vector<1x16x32xf32>,
    return
  }
  func.func @transform_0(%arg0: i32) -> (i32, i32, i32) {
    %c0_i32 = arith.constant 0 : i32
    %c0_i32_0 = arith.constant 0 : i32
    %c0_i32_1 = arith.constant 0 : i32
    return %arg0, %c0_i32, %c0_i32_0 : i32, i32, i32
  }
  func.func @transform_1(%arg0: i32) -> (i32, i32, i32) {
    %c0_i32 = arith.constant 0 : i32
    %c0_i32_0 = arith.constant 0 : i32
    %c0_i32_1 = arith.constant 0 : i32
    return %arg0, %c0_i32, %c0_i32_0 : i32, i32, i32
  }
  func.func @transform_2(%arg0: i32) -> (i32, i32) {
    %c0_i32 = arith.constant 0 : i32
    %c0_i32_0 = arith.constant 0 : i32
    %c0_i32_1 = arith.constant 0 : i32
    return %c0_i32, %c0_i32_0 : i32, i32
  }
  func.func @transform_3(%arg0: i32) -> (i32, i32) {
    %c0_i32 = arith.constant 0 : i32
    %c0_i32_0 = arith.constant 0 : i32
    %c0_i32_1 = arith.constant 0 : i32
    return %c0_i32, %c0_i32_0 : i32, i32
  }
  func.func @transform_4(%arg0: i32) -> (i32, i32) {
    %c0_i32 = arith.constant 0 : i32
    %c0_i32_0 = arith.constant 0 : i32
    %c0_i32_1 = arith.constant 0 : i32
    return %c0_i32, %c0_i32_0 : i32, i32
  }
  func.func @transform_5(%arg0: i32) -> (i32, i32) {
    %c0_i32 = arith.constant 0 : i32
    %c0_i32_0 = arith.constant 0 : i32
    %c0_i32_1 = arith.constant 0 : i32
    return %c0_i32, %c0_i32_0 : i32, i32
  }
  func.func @transform_6(%arg0: i32) -> (i32, i32) {
    %c0_i32 = arith.constant 0 : i32
    %c0_i32_0 = arith.constant 0 : i32
    %c0_i32_1 = arith.constant 0 : i32
    return %c0_i32, %c0_i32_0 : i32, i32
  }
  func.func @transform_7(%arg0: i32) -> (i32, i32) {
    %c0_i32 = arith.constant 0 : i32
    %c0_i32_0 = arith.constant 0 : i32
    %c0_i32_1 = arith.constant 0 : i32
    return %c0_i32, %c0_i32_0 : i32, i32
  }
  func.func @transform_8(%arg0: i32) -> (i32, i32) {
    %c0_i32 = arith.constant 0 : i32
    %c0_i32_0 = arith.constant 0 : i32
    %c0_i32_1 = arith.constant 0 : i32
    return %c0_i32, %c0_i32_0 : i32, i32
  }
  func.func @transform_9(%arg0: i32) -> (i32, i32) {
    %c0_i32 = arith.constant 0 : i32
    %c0_i32_0 = arith.constant 0 : i32
    %c0_i32_1 = arith.constant 0 : i32
    return %c0_i32, %c0_i32_0 : i32, i32
  }
  func.func @transform_10(%arg0: i32) -> (i32, i32) {
    %c0_i32 = arith.constant 0 : i32
    %c0_i32_0 = arith.constant 0 : i32
    %c0_i32_1 = arith.constant 0 : i32
    return %c0_i32, %c0_i32_0 : i32, i32
  }
  func.func @transform_11(%arg0: i32) -> (i32, i32) {
    %c0_i32 = arith.constant 0 : i32
    %c0_i32_0 = arith.constant 0 : i32
    %c0_i32_1 = arith.constant 0 : i32
    return %c0_i32, %c0_i32_0 : i32, i32
  }
  func.func @transform_12(%arg0: i32) -> (i32, i32) {
    %c0_i32 = arith.constant 0 : i32
    %c0_i32_0 = arith.constant 0 : i32
    %c0_i32_1 = arith.constant 0 : i32
    return %c0_i32, %c0_i32_0 : i32, i32
  }
  func.func @transform_13(%arg0: i32) -> (i32, i32) {
    %c0_i32 = arith.constant 0 : i32
    %c0_i32_0 = arith.constant 0 : i32
    %c0_i32_1 = arith.constant 0 : i32
    return %c0_i32, %c0_i32_0 : i32, i32
  }
  func.func @transform_14(%arg0: i32) -> (i32, i32, i32, i32) {
    %c0_i32 = arith.constant 0 : i32
    %c0_i32_0 = arith.constant 0 : i32
    %c0_i32_1 = arith.constant 0 : i32
    %c0_i32_2 = arith.constant 0 : i32
    return %arg0, %c0_i32, %c0_i32_0, %c0_i32_1 : i32, i32, i32, i32
  }
  func.func @transform_15(%arg0: i32) -> (i32, i32, i32, i32) {
    %c0_i32 = arith.constant 0 : i32
    %c0_i32_0 = arith.constant 0 : i32
    %c0_i32_1 = arith.constant 0 : i32
    %c0_i32_2 = arith.constant 0 : i32
    return %arg0, %c0_i32, %c0_i32_0, %c0_i32_1 : i32, i32, i32, i32
  }
  func.func @transform_16(%arg0: i32) -> (i32, i32, i32, i32) {
    %c0_i32 = arith.constant 0 : i32
    %c0_i32_0 = arith.constant 0 : i32
    %c0_i32_1 = arith.constant 0 : i32
    %c0_i32_2 = arith.constant 0 : i32
    return %arg0, %c0_i32, %c0_i32_0, %c0_i32_1 : i32, i32, i32, i32
  }
  func.func @transform_17(%arg0: i32) -> (i32, i32, i32, i32) {
    %c0_i32 = arith.constant 0 : i32
    %c0_i32_0 = arith.constant 0 : i32
    %c0_i32_1 = arith.constant 0 : i32
    %c0_i32_2 = arith.constant 0 : i32
    return %arg0, %c0_i32, %c0_i32_0, %c0_i32_1 : i32, i32, i32, i32
  }
  func.func @transform_18(%arg0: i32) -> (i32, i32) {
    %c0_i32 = arith.constant 0 : i32
    %c0_i32_0 = arith.constant 0 : i32
    %c0_i32_1 = arith.constant 0 : i32
    return %c0_i32, %c0_i32_0 : i32, i32
  }
  func.func @transform_19(%arg0: i32) -> (i32, i32) {
    %c0_i32 = arith.constant 0 : i32
    %c0_i32_0 = arith.constant 0 : i32
    %c0_i32_1 = arith.constant 0 : i32
    return %c0_i32, %c0_i32_0 : i32, i32
  }
  func.func @transform_20(%arg0: i32) -> (i32, i32, i32) {
    %c0_i32 = arith.constant 0 : i32
    %c0_i32_0 = arith.constant 0 : i32
    %c0_i32_1 = arith.constant 0 : i32
    return %arg0, %c0_i32, %c0_i32_0 : i32, i32, i32
  }
}

</mosaic_0001>

<bundles_post_ra>
// kernel: _lambda_.1
= control target key start
LH: loop header
LB: loop body
LE: loop exit
PB: predicated region body
PF: predicated region fallthrough
CT: control target
= control target key end

     0   :  { %vm89_vm0 = vcmask 523264   ;;  %s5346_s0 = inlined_call_operand.vmem [shape: f32[1,64,128], index: 0, kind: input, shape index: {}]   ;;  %s5347_s1 = inlined_call_operand.vmem [shape: f32[1,64,128], index: 1, kind: input, shape index: {}]   ;;  %s5348_s2 = inlined_call_operand.vmem [shape: f32[64,64], index: 2, kind: input, shape index: {}]   ;;  %s5349_s3 = inlined_call_operand.vmem [shape: f32[64,64], index: 3, kind: input, shape index: {}]   ;;  %s5350_s4 = inlined_call_operand.vmem [shape: f32[64,64], index: 4, kind: input, shape index: {}]   ;;  %s5351_s8 = inlined_call_operand.vmem [shape: f32[128,128], index: 8, kind: input, shape index: {}]   ;;  %s5352_s9 = inlined_call_operand.vmem [shape: f32[128,128], index: 9, kind: input, shape index: {}]   ;;  %s5353_s10 = inlined_call_operand.vmem [shape: f32[128,128], index: 10, kind: input, shape index: {}]   ;;  %s5354_s14 = inlined_call_operand.vmem [shape: f32[1,3,64,128], index: 14, kind: input, shape index: {}]   ;;  %s5355_s15 = inlined_call_operand.vmem [shape: f32[1,3,64,128], index: 15, kind: input, shape index: {}]   ;;  %s5356_s5 = inlined_call_operand.vmem [shape: f32[64,64], index: 5, kind: input, shape index: {}]   ;;  %s5357_s6 = inlined_call_operand.vmem [shape: f32[64,64], index: 6, kind: input, shape index: {}]   ;;  %s5358_s7 = inlined_call_operand.vmem [shape: f32[64,64], index: 7, kind: input, shape index: {}]   ;;  %s5359_s11 = inlined_call_operand.vmem [shape: f32[128,128], index: 11, kind: input, shape index: {}]   ;;  %s5360_s12 = inlined_call_operand.vmem [shape: f32[128,128], index: 12, kind: input, shape index: {}]   ;;  %s5361_s13 = inlined_call_operand.vmem [shape: f32[128,128], index: 13, kind: input, shape index: {}]   ;;  %s5362_s16 = inlined_call_operand.vmem [shape: f32[1,2,64,128], index: 16, kind: input, shape index: {}]   ;;  %s5363_s17 = inlined_call_operand.vmem [shape: f32[1,2,64,128], index: 17, kind: input, shape index: {}]   ;;  %s5364_s19 = inlined_call_operand.vmem [shape: f32[128,32], index: 19, kind: input, shape index: {}]   ;;  %s5365_s18 = inlined_call_operand.vmem [shape: f32[16,64], index: 18, kind: input, shape index: {}]   ;;  %s5366_s20 = inlined_call_operand.vmem [shape: f32[1,16,32], index: 20, kind: output, shape index: {}]  }
   0x1   :  { %5373 = sst [smem:[#allocation2_spill]] %s5346_s0  ;;  %v3433_v36 = vld [vmem:[%s5351_s8 + $0x78] sm:$0xff]  ;;  %v3439_v37 = vld [vmem:[%s5351_s8 + $0x70] sm:$0xff]  ;;  %v3444_v38 = vld [vmem:[%s5351_s8 + $0x68] sm:$0xff] }
   0x2   :  { %5374 = sst [smem:[#allocation3_spill]] %s5347_s1  ;;  %349 = vmatpush.msra.mxu3 %v3433_v36  ;;  %v405_v39 = vld [vmem:[%s5352_s9 + $0x78] sm:$0xff]  ;;  %v404_v40 = vld [vmem:[%s5352_s9 + $0x70] sm:$0xff]  ;;  %v3465_v44 = vld [vmem:[%s5351_s8 + $0x60] sm:$0xff] }
   0x3   :  { %5375 = sst [smem:[#allocation4_spill]] %s5348_s2  ;;  %v470_v42 = vld [vmem:[%s5353_s10 + $0x78] sm:$0xff]  ;;  %v469_v45 = vld [vmem:[%s5353_s10 + $0x70] sm:$0xff]  ;;  %v403_v47 = vld [vmem:[%s5352_s9 + $0x68] sm:$0xff] }
   0x4   :  { %5376 = sst [smem:[#allocation5_spill]] %s5349_s3  ;;  %350 = vmatpush.msra.mxu3 %v3439_v37  ;;  %v3481_v48 = vld [vmem:[%s5351_s8 + $0x58] sm:$0xff]  ;;  %v468_v49 = vld [vmem:[%s5353_s10 + $0x68] sm:$0xff]  ;;  %v402_v50 = vld [vmem:[%s5352_s9 + $0x60] sm:$0xff] }
   0x5   :  { %5377 = sst [smem:[#allocation6_spill]] %s5350_s4  ;;  %v3495_v51 = vld [vmem:[%s5351_s8 + $0x50] sm:$0xff]  ;;  %v467_v52 = vld [vmem:[%s5353_s10 + $0x60] sm:$0xff]  ;;  %v401_v53 = vld [vmem:[%s5352_s9 + $0x58] sm:$0xff] }
   0x6   :  { %5378 = sst [smem:[#allocation7_spill]] %s5361_s13  ;;  %351 = vmatpush.msra.mxu3 %v3444_v38  ;;  %v3507_v54 = vld [vmem:[%s5351_s8 + $0x48] sm:$0xff]  ;;  %v466_v55 = vld [vmem:[%s5353_s10 + $0x58] sm:$0xff]  ;;  %v3522_v58 = vld [vmem:[%s5351_s8 + $0x40] sm:$0xff] }
   0x7   :  { %s5379_s23 = sld [smem:[#allocation2_spill]]  ;;  %v400_v60 = vld [vmem:[%s5352_s9 + $0x50] sm:$0xff]  ;;  %v3535_v61 = vld [vmem:[%s5351_s8 + $0x38] sm:$0xff]  ;;  %v399_v63 = vld [vmem:[%s5352_s9 + $0x48] sm:$0xff] }
   0x8   :  { %s5380_s13 = sld [smem:[#allocation3_spill]]  ;;  %352 = vmatpush.msra.mxu3 %v3465_v44  ;;  %v465_v62 = vld [vmem:[%s5353_s10 + $0x50] sm:$0xff] }
   0x9   :  { %s5381_s26 = sld [smem:[#allocation4_spill]] }
   0xa   :  { %s5382_s4 = sld [smem:[#allocation5_spill]]  ;;  %353 = vmatpush.msra.mxu3 %v3481_v48 }
   0xb   :  { %s5383_s29 = sld [smem:[#allocation6_spill]] }
   0xc   :  { %354 = vmatpush.msra.mxu3 %v3495_v51  ;;  %s5384_s27 = sld [smem:[#allocation7_spill]] }
   0xd   :  { %v72_v0 = vld [vmem:[%s5379_s23 + $0x38] sm:$0xff]  ;;  %v71_v2 = vld [vmem:[%s5379_s23 + $0x30] sm:$0xff]  ;;  %v70_v5 = vld [vmem:[%s5379_s23 + $0x28] sm:$0xff] }
   0xe   :  { %v80_v1 = vld [vmem:[%s5380_s13 + $0x38] sm:$0xff]  ;;  %122 = vmatpush.msra.mxu0 %v72_v0  ;;  %v79_v4 = vld [vmem:[%s5380_s13 + $0x30] sm:$0xff]  ;;  %v78_v6 = vld [vmem:[%s5380_s13 + $0x28] sm:$0xff]  ;;  %355 = vmatpush.msra.mxu3 %v3507_v54 }
   0xf   :  { %v243_v3 = vadd.f32 %v80_v1, %v72_v0  ;;  %195 = vmatpush.msra.mxu1 %v80_v1  ;;  %v242_v7 = vadd.f32 %v79_v4, %v71_v2  ;;  %v69_v8 = vld [vmem:[%s5379_s23 + $0x20] sm:$0xff]  ;;  %v241_v10 = vadd.f32 %v78_v6, %v70_v5  ;;  %v68_v11 = vld [vmem:[%s5379_s23 + $0x18] sm:$0xff]  ;;  %v67_v14 = vld [vmem:[%s5379_s23 + $0x10] sm:$0xff] }
  0x10   :  { %v77_v9 = vld [vmem:[%s5380_s13 + $0x20] sm:$0xff]  ;;  %123 = vmatpush.msra.mxu0 %v71_v2  ;;  %v76_v12 = vld [vmem:[%s5380_s13 + $0x18] sm:$0xff]  ;;  %v75_v15 = vld [vmem:[%s5380_s13 + $0x10] sm:$0xff]  ;;  %356 = vmatpush.msra.mxu3 %v3522_v58 }
  0x11   :  { %276 = vmatpush.msra.mxu2 %v243_v3  ;;  %196 = vmatpush.msra.mxu1 %v79_v4  ;;  %v240_v13 = vadd.f32 %v77_v9, %v69_v8  ;;  %v239_v16 = vadd.f32 %v76_v12, %v68_v11  ;;  %v66_v17 = vld [vmem:[%s5379_s23 + $0x8] sm:$0xff]  ;;  %v238_v19 = vadd.f32 %v75_v15, %v67_v14  ;;  %v65_v20 = vld [vmem:[%s5379_s23] sm:$0xff]  ;;  %v83_v30 = vld [vmem:[%s5381_s26 + $0x10] sm:$0xff] }
  0x12   :  { %124 = vmatpush.msra.mxu0 %v70_v5  ;;  %v74_v18 = vld [vmem:[%s5380_s13 + $0x8] sm:$0xff]  ;;  %v73_v21 = vld [vmem:[%s5380_s13] sm:$0xff]  ;;  %v157_v31 = vld [vmem:[%s5382_s4 + $0x10] sm:$0xff]  ;;  %357 = vmatpush.msra.mxu3 %v3535_v61 }
  0x13   :  { %277 = vmatpush.msra.mxu2 %v242_v7  ;;  %197 = vmatpush.msra.mxu1 %v78_v6  ;;  %v237_v22 = vadd.f32 %v74_v18, %v66_v17  ;;  %v236_v23 = vadd.f32 %v73_v21, %v65_v20  ;;  %v81_v24 = vld [vmem:[%s5381_s26] sm:$0xff]  ;;  %v82_v27 = vld [vmem:[%s5381_s26 + $0x8] sm:$0xff]  ;;  %v230_v32 = vld [vmem:[%s5383_s29 + $0x10] sm:$0xff] }
  0x14   :  { %125 = vmatpush.msra.mxu0 %v69_v8  ;;  %v155_v25 = vld [vmem:[%s5382_s4] sm:$0xff]  ;;  %v156_v28 = vld [vmem:[%s5382_s4 + $0x8] sm:$0xff]  ;;  %v84_v33 = vld [vmem:[%s5381_s26 + $0x18] sm:$0xff] }
  0x15   :  { %278 = vmatpush.msra.mxu2 %v241_v10  ;;  %198 = vmatpush.msra.mxu1 %v77_v9  ;;  %v228_v26 = vld [vmem:[%s5383_s29] sm:$0xff]  ;;  %v229_v29 = vld [vmem:[%s5383_s29 + $0x8] sm:$0xff]  ;;  %v158_v34 = vld [vmem:[%s5382_s4 + $0x18] sm:$0xff] }
  0x16   :  { %126 = vmatpush.msra.mxu0 %v68_v11  ;;  %v231_v35 = vld [vmem:[%s5383_s29 + $0x18] sm:$0xff]  ;;  %v85_v41 = vld [vmem:[%s5381_s26 + $0x20] sm:$0xff]  ;;  %v86_v56 = vld [vmem:[%s5381_s26 + $0x28] sm:$0xff] }
  0x17   :  { %279 = vmatpush.msra.mxu2 %v240_v13  ;;  %199 = vmatpush.msra.mxu1 %v76_v12  ;;  %v159_v43 = vld [vmem:[%s5382_s4 + $0x20] sm:$0xff]  ;;  %v160_v57 = vld [vmem:[%s5382_s4 + $0x28] sm:$0xff]  ;;  %v3549_v0 = vld [vmem:[%s5351_s8 + $0x30] sm:$0xff] }
  0x18   :  { %127 = vmatpush.msra.mxu0 %v67_v14  ;;  %v232_v46 = vld [vmem:[%s5383_s29 + $0x20] sm:$0xff]  ;;  %v233_v59 = vld [vmem:[%s5383_s29 + $0x28] sm:$0xff]  ;;  %v87_v5 = vld [vmem:[%s5381_s26 + $0x30] sm:$0xff]  ;;  %358 = vmatpush.msra.mxu3 %v3549_v0 }
  0x19   :  { %280 = vmatpush.msra.mxu2 %v239_v16  ;;  %200 = vmatpush.msra.mxu1 %v75_v15  ;;  %v464_v1 = vld [vmem:[%s5353_s10 + $0x48] sm:$0xff]  ;;  %v398_v2 = vld [vmem:[%s5352_s9 + $0x40] sm:$0xff]  ;;  %v161_v6 = vld [vmem:[%s5382_s4 + $0x30] sm:$0xff] }
  0x1a   :  { %128 = vmatpush.msra.mxu0 %v66_v17  ;;  %v3561_v3 = vld [vmem:[%s5351_s8 + $0x28] sm:$0xff]  ;;  %v463_v4 = vld [vmem:[%s5353_s10 + $0x40] sm:$0xff]  ;;  %v234_v8 = vld [vmem:[%s5383_s29 + $0x30] sm:$0xff] }
  0x1b   :  { %281 = vmatpush.msra.mxu2 %v238_v19  ;;  %201 = vmatpush.msra.mxu1 %v74_v18  ;;  %v3576_v7 = vld [vmem:[%s5351_s8 + $0x20] sm:$0xff]  ;;  %v397_v9 = vld [vmem:[%s5352_s9 + $0x38] sm:$0xff]  ;;  %v396_v12 = vld [vmem:[%s5352_s9 + $0x30] sm:$0xff] }
  0x1c   :  { %129 = vmatpush.msra.mxu0 %v65_v20  ;;  %359 = vmatpush.msra.mxu3 %v3561_v3  ;;  %v3589_v10 = vld [vmem:[%s5351_s8 + $0x18] sm:$0xff]  ;;  %v3603_v13 = vld [vmem:[%s5351_s8 + $0x10] sm:$0xff]  ;;  %v395_v15 = vld [vmem:[%s5352_s9 + $0x28] sm:$0xff] }
  0x1d   :  { %282 = vmatpush.msra.mxu2 %v237_v22  ;;  %202 = vmatpush.msra.mxu1 %v73_v21  ;;  %v462_v11 = vld [vmem:[%s5353_s10 + $0x38] sm:$0xff]  ;;  %v461_v14 = vld [vmem:[%s5353_s10 + $0x30] sm:$0xff]  ;;  %v3628_v19 = vld [vmem:[%s5351_s8 + $0x8] sm:$0xff] }
  0x1e   :  { %2755 = vmatmul.msk.f32.vlgmr.msra.gmra.mxu0 %vm89_vm0, %v81_v24  ;;  %2763 = vmatmul.msk.f32.vlgmr.msra.gmra.mxu1 %vm89_vm0, %v155_v25  ;;  %v88_v16 = vld [vmem:[%s5381_s26 + $0x38] sm:$0xff]  ;;  %v394_v20 = vld [vmem:[%s5352_s9 + $0x20] sm:$0xff]  ;;  %v460_v21 = vld [vmem:[%s5353_s10 + $0x28] sm:$0xff] }
  0x1f   :  { %283 = vmatpush.msra.mxu2 %v236_v23  ;;  %406 = vmatpush.msrb.mxu0 %v405_v39  ;;  %v162_v17 = vld [vmem:[%s5382_s4 + $0x38] sm:$0xff]  ;;  %v3640_v22 = vld [vmem:[%s5351_s8] sm:$0xff]  ;;  %v392_v25 = vld [vmem:[%s5352_s9 + $0x10] sm:$0xff] }
  0x20   :  { %2771 = vmatmul.msk.f32.vlgmr.msra.gmra.mxu2 %vm89_vm0, %v228_v26  ;;  %471 = vmatpush.msrb.mxu1 %v470_v42  ;;  %v235_v18 = vld [vmem:[%s5383_s29 + $0x38] sm:$0xff]  ;;  %v459_v24 = vld [vmem:[%s5353_s10 + $0x20] sm:$0xff] }
  0x21   :  { %407 = vmatpush.msrb.mxu0 %v404_v40  ;;  %360 = vmatpush.msra.mxu3 %v3576_v7  ;;  %v393_v23 = vld [vmem:[%s5352_s9 + $0x18] sm:$0xff] }
  0x22   :  { %472 = vmatpush.msrb.mxu1 %v469_v45  ;;  %v458_v26 = vld [vmem:[%s5353_s10 + $0x18] sm:$0xff] }
  0x23   :  { %408 = vmatpush.msrb.mxu0 %v403_v47  ;;  %361 = vmatpush.msra.mxu3 %v3589_v10 }
  0x24   :  { %473 = vmatpush.msrb.mxu1 %v468_v49 }
  0x25   :  { %409 = vmatpush.msrb.mxu0 %v402_v50  ;;  %362 = vmatpush.msra.mxu3 %v3603_v13 }
  0x26   :  { %2756 = vmatmul.msk.f32.gmra.mxu0 %vm89_vm0, %v82_v27  ;;  %2764 = vmatmul.msk.f32.gmra.mxu1 %vm89_vm0, %v156_v28  ;;  %v391_v27 = vld [vmem:[%s5352_s9 + $0x8] sm:$0xff]  ;;  %v457_v28 = vld [vmem:[%s5353_s10 + $0x10] sm:$0xff] }
  0x27   :  { %474 = vmatpush.msrb.mxu1 %v467_v52  ;;  %410 = vmatpush.msrb.mxu0 %v401_v53 }
  0x28   :  { %2772 = vmatmul.msk.f32.gmra.mxu2 %vm89_vm0, %v229_v29  ;;  %363 = vmatpush.msra.mxu3 %v3628_v19  ;;  %v390_v29 = vld [vmem:[%s5352_s9] sm:$0xff] }
  0x29   :  { %475 = vmatpush.msrb.mxu1 %v466_v55  ;;  %411 = vmatpush.msrb.mxu0 %v400_v60 }
  0x2a   :  { %364 = vmatpush.msra.mxu3 %v3640_v22 }
  0x2b   :  { %476 = vmatpush.msrb.mxu1 %v465_v62  ;;  %412 = vmatpush.msrb.mxu0 %v399_v63 }
  0x2d   :  { %477 = vmatpush.msrb.mxu1 %v464_v1  ;;  %413 = vmatpush.msrb.mxu0 %v398_v2 }
  0x2e   :  { %2757 = vmatmul.msk.f32.gmra.mxu0 %vm89_vm0, %v83_v30  ;;  %2765 = vmatmul.msk.f32.gmra.mxu1 %vm89_vm0, %v157_v31  ;;  %v456_v30 = vld [vmem:[%s5353_s10 + $0x8] sm:$0xff]  ;;  %v455_v31 = vld [vmem:[%s5353_s10] sm:$0xff] }
  0x2f   :  { %478 = vmatpush.msrb.mxu1 %v463_v4  ;;  %414 = vmatpush.msrb.mxu0 %v397_v9 }
  0x30   :  { %2773 = vmatmul.msk.f32.gmra.mxu2 %vm89_vm0, %v230_v32 }
  0x31   :  { %479 = vmatpush.msrb.mxu1 %v462_v11  ;;  %415 = vmatpush.msrb.mxu0 %v396_v12 }
  0x33   :  { %480 = vmatpush.msrb.mxu1 %v461_v14  ;;  %416 = vmatpush.msrb.mxu0 %v395_v15 }
  0x35   :  { %417 = vmatpush.msrb.mxu0 %v394_v20  ;;  %481 = vmatpush.msrb.mxu1 %v460_v21 }
  0x36   :  { %2758 = vmatmul.msk.f32.gmra.mxu0 %vm89_vm0, %v84_v33  ;;  %2766 = vmatmul.msk.f32.gmra.mxu1 %vm89_vm0, %v158_v34 }
  0x37   :  { %418 = vmatpush.msrb.mxu0 %v393_v23  ;;  %482 = vmatpush.msrb.mxu1 %v459_v24 }
  0x38   :  { %2774 = vmatmul.msk.f32.gmra.mxu2 %vm89_vm0, %v231_v35 }
  0x39   :  { %419 = vmatpush.msrb.mxu0 %v392_v25  ;;  %483 = vmatpush.msrb.mxu1 %v458_v26 }
  0x3b   :  { %420 = vmatpush.msrb.mxu0 %v391_v27  ;;  %484 = vmatpush.msrb.mxu1 %v457_v28 }
  0x3d   :  { %421 = vmatpush.msrb.mxu0 %v390_v29  ;;  %485 = vmatpush.msrb.mxu1 %v456_v30 }
  0x3e   :  { %2759 = vmatmul.msk.f32.gmra.mxu0 %vm89_vm0, %v85_v41  ;;  %2767 = vmatmul.msk.f32.gmra.mxu1 %vm89_vm0, %v159_v43 }
  0x3f   :  { %486 = vmatpush.msrb.mxu1 %v455_v31 }
  0x40   :  { %2775 = vmatmul.msk.f32.gmra.mxu2 %vm89_vm0, %v232_v46 }
  0x46   :  { %2760 = vmatmul.msk.f32.gmra.mxu0 %vm89_vm0, %v86_v56  ;;  %2768 = vmatmul.msk.f32.gmra.mxu1 %vm89_vm0, %v160_v57 }
  0x48   :  { %2776 = vmatmul.msk.f32.gmra.mxu2 %vm89_vm0, %v233_v59 }
  0x4e   :  { %2761 = vmatmul.msk.f32.gmra.mxu0 %vm89_vm0, %v87_v5  ;;  %2769 = vmatmul.msk.f32.gmra.mxu1 %vm89_vm0, %v161_v6 }
  0x50   :  { %2777 = vmatmul.msk.f32.gmra.mxu2 %vm89_vm0, %v234_v8 }
  0x56   :  { %2762 = vmatmul.msk.f32.gmra.mxu0 %vm89_vm0, %v88_v16  ;;  %2770 = vmatmul.msk.f32.gmra.mxu1 %vm89_vm0, %v162_v17 }
  0x58   :  { %2778 = vmatmul.msk.f32.gmra.mxu2 %vm89_vm0, %v235_v18 }
  0x9b   :  { %v131_v32 = vpop.f32.mrf.mxu0  ;;  %v204_v33 = vpop.f32.mrf.mxu1 }
  0x9c   :  { %v309_v34 = vsub.f32 %v131_v32, %v204_v33 }
  0x9e   :  { %365 = vmatmul.f32.vlgmr.msra.gmra.mxu3 %v309_v34 }
  0xa3   :  { %v285_v35 = vpop.f32.mrf.mxu2  ;;  %v134_v39 = vpop.f32.mrf.mxu0 }
  0xa4   :  { %v317_v40 = vsub.f32 %v285_v35, %v131_v32  ;;  %v207_v41 = vpop.f32.mrf.mxu1 }
  0xa5   :  { %v310_v42 = vsub.f32 %v134_v39, %v207_v41 }
  0xa6   :  { %v325_v43 = vsub.f32 %v317_v40, %v204_v33 }
  0xa7   :  { %368 = vmatmul.f32.gmra.mxu3 %v310_v42 }
  0xa8   :  { %422 = vmatmul.f32.vlgmr.msrb.gmra.mxu0 %v325_v43  ;;  %v447_v45 = vadd.f32 %v325_v43, %v309_v34 }
  0xaa   :  { %487 = vmatmul.f32.vlgmr.msrb.gmra.mxu1 %v447_v45 }
  0xab   :  { %v288_v46 = vpop.f32.mrf.mxu2  ;;  %v137_v47 = vpop.f32.mrf.mxu0 }
  0xac   :  { %v318_v49 = vsub.f32 %v288_v46, %v134_v39  ;;  %v210_v50 = vpop.f32.mrf.mxu1 }
  0xad   :  { %v311_v52 = vsub.f32 %v137_v47, %v210_v50 }
  0xae   :  { %v326_v53 = vsub.f32 %v318_v49, %v207_v41 }
  0xaf   :  { %371 = vmatmul.f32.gmra.mxu3 %v311_v52 }
  0xb0   :  { %425 = vmatmul.f32.gmra.mxu0 %v326_v53  ;;  %v448_v55 = vadd.f32 %v326_v53, %v310_v42 }
  0xb2   :  { %490 = vmatmul.f32.gmra.mxu1 %v448_v55 }
  0xb3   :  { %v291_v56 = vpop.f32.mrf.mxu2  ;;  %v140_v57 = vpop.f32.mrf.mxu0 }
  0xb4   :  { %v319_v59 = vsub.f32 %v291_v56, %v137_v47  ;;  %v213_v60 = vpop.f32.mrf.mxu1 }
  0xb5   :  { %v312_v62 = vsub.f32 %v140_v57, %v213_v60 }
  0xb6   :  { %v327_v63 = vsub.f32 %v319_v59, %v210_v50 }
  0xb7   :  { %374 = vmatmul.f32.gmra.mxu3 %v312_v62 }
  0xb8   :  { %428 = vmatmul.f32.gmra.mxu0 %v327_v63  ;;  %v449_v1 = vadd.f32 %v327_v63, %v311_v52 }
  0xba   :  { %493 = vmatmul.f32.gmra.mxu1 %v449_v1 }
  0xbb   :  { %v294_v2 = vpop.f32.mrf.mxu2  ;;  %v143_v4 = vpop.f32.mrf.mxu0 }
  0xbc   :  { %v320_v5 = vsub.f32 %v294_v2, %v140_v57  ;;  %v216_v6 = vpop.f32.mrf.mxu1 }
  0xbd   :  { %v313_v8 = vsub.f32 %v143_v4, %v216_v6 }
  0xbe   :  { %v328_v9 = vsub.f32 %v320_v5, %v213_v60 }
  0xbf   :  { %377 = vmatmul.f32.gmra.mxu3 %v313_v8 }
  0xc0   :  { %431 = vmatmul.f32.gmra.mxu0 %v328_v9  ;;  %v450_v11 = vadd.f32 %v328_v9, %v312_v62 }
  0xc2   :  { %496 = vmatmul.f32.gmra.mxu1 %v450_v11 }
  0xc3   :  { %v297_v12 = vpop.f32.mrf.mxu2  ;;  %v146_v14 = vpop.f32.mrf.mxu0 }
  0xc4   :  { %v321_v15 = vsub.f32 %v297_v12, %v143_v4  ;;  %v219_v16 = vpop.f32.mrf.mxu1 }
  0xc5   :  { %v314_v17 = vsub.f32 %v146_v14, %v219_v16 }
  0xc6   :  { %v329_v18 = vsub.f32 %v321_v15, %v216_v6 }
  0xc7   :  { %380 = vmatmul.f32.gmra.mxu3 %v314_v17 }
  0xc8   :  { %434 = vmatmul.f32.gmra.mxu0 %v329_v18  ;;  %v451_v20 = vadd.f32 %v329_v18, %v313_v8 }
  0xca   :  { %499 = vmatmul.f32.gmra.mxu1 %v451_v20 }
  0xcb   :  { %v300_v21 = vpop.f32.mrf.mxu2  ;;  %v149_v23 = vpop.f32.mrf.mxu0 }
  0xcc   :  { %v322_v24 = vsub.f32 %v300_v21, %v146_v14  ;;  %v222_v25 = vpop.f32.mrf.mxu1 }
  0xcd   :  { %v315_v26 = vsub.f32 %v149_v23, %v222_v25 }
  0xce   :  { %v330_v27 = vsub.f32 %v322_v24, %v219_v16 }
  0xcf   :  { %383 = vmatmul.f32.gmra.mxu3 %v315_v26 }
  0xd0   :  { %437 = vmatmul.f32.gmra.mxu0 %v330_v27  ;;  %v452_v28 = vadd.f32 %v330_v27, %v314_v17 }
  0xd2   :  { %502 = vmatmul.f32.gmra.mxu1 %v452_v28 }
  0xd3   :  { %v303_v29 = vpop.f32.mrf.mxu2  ;;  %v152_v30 = vpop.f32.mrf.mxu0 }
  0xd4   :  { %v323_v31 = vsub.f32 %v303_v29, %v149_v23  ;;  %v225_v32 = vpop.f32.mrf.mxu1 }
  0xd5   :  { %v316_v33 = vsub.f32 %v152_v30, %v225_v32 }
  0xd6   :  { %v331_v34 = vsub.f32 %v323_v31, %v222_v25 }
  0xd7   :  { %386 = vmatmul.f32.gmra.mxu3 %v316_v33 }
  0xd8   :  { %440 = vmatmul.f32.gmra.mxu0 %v331_v34  ;;  %v453_v35 = vadd.f32 %v331_v34, %v315_v26  ;;  %v543_v34 = vld [vmem:[%s5354_s14 + $0x38] sm:$0xff] }
  0xda   :  { %505 = vmatmul.f32.gmra.mxu1 %v453_v35  ;;  %v551_v35 = vld [vmem:[%s5355_s15 + $0x38] sm:$0xff] }
  0xdb   :  { %v306_v39 = vpop.f32.mrf.mxu2 }
  0xdc   :  { %v324_v40 = vsub.f32 %v306_v39, %v152_v30 }
  0xde   :  { %v332_v41 = vsub.f32 %v324_v40, %v225_v32 }
  0xe0   :  { %443 = vmatmul.f32.gmra.mxu0 %v332_v41  ;;  %v454_v42 = vadd.f32 %v332_v41, %v316_v33 }
  0xe2   :  { %508 = vmatmul.f32.gmra.mxu1 %v454_v42 }
 0x121   :  { %v366_v43 = vpop.f32.mrf.mxu3 }
 0x125   :  { %v423_v45 = vpop.f32.mrf.mxu0 }
 0x126   :  { %v3670_v21 = vsub.f32 %v366_v43, %v423_v45 }
 0x127   :  { %v488_v46 = vpop.f32.mrf.mxu1 }
 0x128   :  { %v520_v9 = vsub.f32 %v488_v46, %v366_v43  ;;  %v542_v43 = vld [vmem:[%s5354_s14 + $0x30] sm:$0xff] }
 0x12a   :  { %v369_v47 = vpop.f32.mrf.mxu3  ;;  %v3672_v23 = vsub.f32 %v520_v9, %v423_v45  ;;  %v550_v45 = vld [vmem:[%s5355_s15 + $0x30] sm:$0xff] }
 0x12d   :  { %v426_v49 = vpop.f32.mrf.mxu0 }
 0x12e   :  { %v3674_v26 = vsub.f32 %v369_v47, %v426_v49 }
 0x12f   :  { %v491_v50 = vpop.f32.mrf.mxu1 }
 0x130   :  { %v521_v12 = vsub.f32 %v491_v50, %v369_v47 }
 0x132   :  { %v372_v52 = vpop.f32.mrf.mxu3  ;;  %v3676_v27 = vsub.f32 %v521_v12, %v426_v49 }
 0x135   :  { %v429_v53 = vpop.f32.mrf.mxu0 }
 0x136   :  { %v3678_v30 = vsub.f32 %v372_v52, %v429_v53 }
 0x137   :  { %v494_v55 = vpop.f32.mrf.mxu1 }
 0x138   :  { %v522_v14 = vsub.f32 %v494_v55, %v372_v52 }
 0x13a   :  { %v375_v56 = vpop.f32.mrf.mxu3  ;;  %v530_v31 = vsub.f32 %v522_v14, %v429_v53 }
 0x13d   :  { %v432_v57 = vpop.f32.mrf.mxu0 }
 0x13e   :  { %v515_v39 = vsub.f32 %v375_v56, %v432_v57 }
 0x13f   :  { %v497_v59 = vpop.f32.mrf.mxu1 }
 0x140   :  { %v523_v18 = vsub.f32 %v497_v59, %v375_v56  ;;  %v541_v56 = vld [vmem:[%s5354_s14 + $0x28] sm:$0xff] }
 0x142   :  { %v378_v60 = vpop.f32.mrf.mxu3  ;;  %v531_v40 = vsub.f32 %v523_v18, %v432_v57  ;;  %v549_v57 = vld [vmem:[%s5355_s15 + $0x28] sm:$0xff] }
 0x145   :  { %v435_v62 = vpop.f32.mrf.mxu0 }
 0x146   :  { %v516_v46 = vsub.f32 %v378_v60, %v435_v62 }
 0x147   :  { %v500_v63 = vpop.f32.mrf.mxu1 }
 0x148   :  { %v524_v20 = vsub.f32 %v500_v63, %v378_v60  ;;  %v540_v60 = vld [vmem:[%s5354_s14 + $0x20] sm:$0xff] }
 0x14a   :  { %v381_v1 = vpop.f32.mrf.mxu3  ;;  %v532_v41 = vsub.f32 %v524_v20, %v435_v62  ;;  %v548_v62 = vld [vmem:[%s5355_s15 + $0x20] sm:$0xff] }
 0x14c   :  { %v588_v9 = vmul.f32 %v540_v60, %v532_v41 }
 0x14d   :  { %v438_v2 = vpop.f32.mrf.mxu0 }
 0x14e   :  { %v517_v47 = vsub.f32 %v381_v1, %v438_v2 }
 0x14f   :  { %v503_v4 = vpop.f32.mrf.mxu1 }
 0x150   :  { %v525_v15 = vsub.f32 %v503_v4, %v381_v1  ;;  %v557_v14 = vmul.f32 %v541_v56, %v517_v47 }
 0x152   :  { %v384_v5 = vpop.f32.mrf.mxu3  ;;  %v533_v32 = vsub.f32 %v525_v15, %v438_v2  ;;  %v581_v15 = vmul.f32 %v549_v57, %v517_v47 }
 0x155   :  { %v441_v6 = vpop.f32.mrf.mxu0 }
 0x156   :  { %v518_v33 = vsub.f32 %v384_v5, %v441_v6 }
 0x157   :  { %v506_v8 = vpop.f32.mrf.mxu1 }
 0x158   :  { %v526_v11 = vsub.f32 %v506_v8, %v384_v5  ;;  %v558_v63 = vmul.f32 %v542_v43, %v518_v33  ;;  %v582_v4 = vmul.f32 %v550_v45, %v518_v33  ;;  %v565_v5 = vmul.f32 %v549_v57, %v533_v32  ;;  %v538_v33 = vld [vmem:[%s5354_s14 + $0x10] sm:$0xff]  ;;  %v544_v57 = vld [vmem:[%s5355_s15] sm:$0xff] }
 0x159   :  { %v564_v8 = vmul.f32 %v548_v62, %v532_v41 }
 0x15a   :  { %v387_v16 = vpop.f32.mrf.mxu3  ;;  %v534_v24 = vsub.f32 %v526_v11, %v441_v6  ;;  %v589_v6 = vmul.f32 %v541_v56, %v533_v32  ;;  %v580_v32 = vmul.f32 %v548_v62, %v516_v46  ;;  %v536_v56 = vld [vmem:[%s5354_s14] sm:$0xff] }
 0x15b   :  { %v552_v62 = vmul.f32 %v536_v56, %v3670_v21 }
 0x15c   :  { %v566_v49 = vmul.f32 %v550_v45, %v534_v24  ;;  %v590_v50 = vmul.f32 %v542_v43, %v534_v24  ;;  %v596_v45 = vadd.f32 %v588_v9, %v580_v32  ;;  %v576_v9 = vmul.f32 %v544_v57, %v3670_v21  ;;  %v676_v32 = vld [vmem:[%s5357_s6 + $0x18] sm:$0xff] }
 0x15d   :  { %v444_v17 = vpop.f32.mrf.mxu0 }
 0x15e   :  { %v519_v28 = vsub.f32 %v387_v16, %v444_v17  ;;  %v574_v11 = vsub.f32 %v558_v63, %v566_v49  ;;  %v598_v12 = vadd.f32 %v590_v50, %v582_v4  ;;  %v545_v49 = vld [vmem:[%s5355_s15 + $0x8] sm:$0xff]  ;;  %v554_v50 = vmul.f32 %v538_v33, %v3678_v30 }
 0x15f   :  { %v509_v25 = vpop.f32.mrf.mxu1  ;;  %v584_v4 = vmul.f32 %v536_v56, %v3672_v23  ;;  %v3857_v56 = vld [vmem:[%s5359_s11 + $0x50] sm:$0xff] }
 0x160   :  { %v527_v29 = vsub.f32 %v509_v25, %v387_v16  ;;  %v559_v52 = vmul.f32 %v543_v34, %v519_v28  ;;  %v583_v55 = vmul.f32 %v551_v35, %v519_v28  ;;  %v539_v16 = vld [vmem:[%s5354_s14 + $0x18] sm:$0xff]  ;;  %v573_v25 = vsub.f32 %v557_v14, %v565_v5 }
 0x161   :  { %v587_v24 = vmul.f32 %v539_v16, %v531_v40  ;;  %v597_v28 = vadd.f32 %v589_v6, %v581_v15  ;;  %v760_v43 = vadd.f32 %v598_v12, %v574_v11  ;;  %v673_v15 = vld [vmem:[%s5357_s6] sm:$0xff] }
 0x162   :  { %v535_v42 = vsub.f32 %v527_v29, %v444_v17  ;;  %v547_v17 = vld [vmem:[%s5355_s15 + $0x18] sm:$0xff]  ;;  %v556_v29 = vmul.f32 %v540_v60, %v516_v46  ;;  %v537_v46 = vld [vmem:[%s5354_s14 + $0x8] sm:$0xff]  ;;  %v577_v60 = vmul.f32 %v545_v49, %v3674_v26 }
 0x163   :  { %v563_v20 = vmul.f32 %v547_v17, %v531_v40  ;;  %v579_v47 = vmul.f32 %v547_v17, %v515_v39  ;;  %v553_v63 = vmul.f32 %v537_v46, %v3674_v26  ;;  %v600_v26 = vld [vmem:[%s5356_s5] sm:$0xff]  ;;  %v601_v17 = vld [vmem:[%s5356_s5 + $0x8] sm:$0xff] }
 0x164   :  { %v567_v53 = vmul.f32 %v551_v35, %v535_v42  ;;  %v591_v59 = vmul.f32 %v543_v34, %v535_v42  ;;  %v546_v34 = vld [vmem:[%s5355_s15 + $0x10] sm:$0xff]  ;;  %v555_v35 = vmul.f32 %v539_v16, %v515_v39  ;;  %v586_v42 = vmul.f32 %v538_v33, %v530_v31  ;;  %v746_v16 = vld [vmem:[%s5358_s7] sm:$0xff]  ;;  %v749_v33 = vld [vmem:[%s5358_s7 + $0x18] sm:$0xff] }
 0x165   :  { %v562_v41 = vmul.f32 %v546_v34, %v530_v31  ;;  %v572_v40 = vsub.f32 %v556_v29, %v564_v8  ;;  %v585_v31 = vmul.f32 %v537_v46, %v3676_v27  ;;  %v595_v39 = vadd.f32 %v587_v24, %v579_v47  ;;  %v602_v24 = vld [vmem:[%s5356_s5 + $0x10] sm:$0xff]  ;;  %v603_v29 = vld [vmem:[%s5356_s5 + $0x18] sm:$0xff]  ;;  %v677_v46 = vld [vmem:[%s5357_s6 + $0x20] sm:$0xff] }
 0x166   :  { %v575_v1 = vsub.f32 %v559_v52, %v567_v53  ;;  %v599_v2 = vadd.f32 %v591_v59, %v583_v55  ;;  %v561_v52 = vmul.f32 %v545_v49, %v3676_v27  ;;  %v759_v53 = vadd.f32 %v597_v28, %v573_v25  ;;  %v987_v47 = vld [vmem:[%s5384_s27 + $0x70] sm:$0xff]  ;;  %v921_v49 = vld [vmem:[%s5360_s12 + $0x68] sm:$0xff] }
 0x167   :  { %v571_v55 = vsub.f32 %v555_v35, %v563_v20  ;;  %v578_v59 = vmul.f32 %v546_v34, %v3678_v30  ;;  %v560_v27 = vmul.f32 %v544_v57, %v3672_v23  ;;  %v758_v5 = vadd.f32 %v596_v45, %v572_v40  ;;  %v747_v20 = vld [vmem:[%s5358_s7 + $0x8] sm:$0xff]  ;;  %v3789_v34 = vld [vmem:[%s5359_s11 + $0x78] sm:$0xff]  ;;  %v3794_v35 = vld [vmem:[%s5359_s11 + $0x70] sm:$0xff] }
 0x168   :  { %640 = vmatpush.msrb.mxu2 %v575_v1  ;;  %713 = vmatpush.msrb.mxu3 %v599_v2  ;;  %v761_v18 = vadd.f32 %v599_v2, %v575_v1  ;;  %v570_v6 = vsub.f32 %v554_v50, %v562_v41  ;;  %v569_v2 = vsub.f32 %v553_v63, %v561_v52  ;;  %v923_v41 = vld [vmem:[%s5360_s12 + $0x78] sm:$0xff]  ;;  %v3827_v50 = vld [vmem:[%s5359_s11 + $0x60] sm:$0xff]  ;;  %v986_v52 = vld [vmem:[%s5384_s27 + $0x68] sm:$0xff] }
 0x169   :  { %v594_v30 = vadd.f32 %v586_v42, %v578_v59  ;;  %v757_v1 = vadd.f32 %v595_v39, %v571_v55  ;;  %v593_v8 = vadd.f32 %v585_v31, %v577_v60  ;;  %v568_v23 = vsub.f32 %v552_v62, %v560_v27  ;;  %867 = vmatpush.msra.mxu1 %v3789_v34  ;;  %v922_v42 = vld [vmem:[%s5360_s12 + $0x70] sm:$0xff]  ;;  %v750_v31 = vld [vmem:[%s5358_s7 + $0x20] sm:$0xff]  ;;  %v919_v59 = vld [vmem:[%s5360_s12 + $0x58] sm:$0xff] }
 0x16a   :  { %641 = vmatpush.msrb.mxu2 %v574_v11  ;;  %714 = vmatpush.msrb.mxu3 %v598_v12  ;;  %v592_v12 = vadd.f32 %v584_v4, %v576_v9  ;;  %v984_v57 = vld [vmem:[%s5384_s27 + $0x58] sm:$0xff]  ;;  %v918_v63 = vld [vmem:[%s5360_s12 + $0x50] sm:$0xff]  ;;  %v605_v27 = vld [vmem:[%s5356_s5 + $0x28] sm:$0xff] }
 0x16b   :  { %794 = vmatpush.msra.mxu0 %v761_v18  ;;  %v756_v11 = vadd.f32 %v594_v30, %v570_v6  ;;  %v755_v14 = vadd.f32 %v593_v8, %v569_v2  ;;  %v674_v18 = vld [vmem:[%s5357_s6 + $0x8] sm:$0xff]  ;;  %868 = vmatpush.msra.mxu1 %v3794_v35  ;;  %v983_v60 = vld [vmem:[%s5384_s27 + $0x50] sm:$0xff]  ;;  %v915_v9 = vld [vmem:[%s5360_s12 + $0x38] sm:$0xff] }
 0x16c   :  { %642 = vmatpush.msrb.mxu2 %v573_v25  ;;  %715 = vmatpush.msrb.mxu3 %v597_v28  ;;  %v754_v21 = vadd.f32 %v592_v12, %v568_v23  ;;  %v675_v25 = vld [vmem:[%s5357_s6 + $0x10] sm:$0xff]  ;;  %v3872_v4 = vld [vmem:[%s5359_s11 + $0x48] sm:$0xff] }
 0x16d   :  { %795 = vmatpush.msra.mxu0 %v760_v43  ;;  %v748_v28 = vld [vmem:[%s5358_s7 + $0x10] sm:$0xff]  ;;  %v988_v43 = vld [vmem:[%s5384_s27 + $0x78] sm:$0xff]  ;;  %v751_v62 = vld [vmem:[%s5358_s7 + $0x28] sm:$0xff] }
 0x16e   :  { %643 = vmatpush.msrb.mxu2 %v572_v40  ;;  %716 = vmatpush.msrb.mxu3 %v596_v45  ;;  %v604_v40 = vld [vmem:[%s5356_s5 + $0x20] sm:$0xff]  ;;  %v3812_v45 = vld [vmem:[%s5359_s11 + $0x68] sm:$0xff] }
 0x16f   :  { %796 = vmatpush.msra.mxu0 %v759_v53  ;;  %869 = vmatpush.msra.mxu1 %v3812_v45  ;;  %v920_v53 = vld [vmem:[%s5360_s12 + $0x60] sm:$0xff] }
 0x170   :  { %644 = vmatpush.msrb.mxu2 %v571_v55  ;;  %717 = vmatpush.msrb.mxu3 %v595_v39  ;;  %v3844_v55 = vld [vmem:[%s5359_s11 + $0x58] sm:$0xff]  ;;  %v985_v39 = vld [vmem:[%s5384_s27 + $0x60] sm:$0xff] }
 0x171   :  { %797 = vmatpush.msra.mxu0 %v758_v5  ;;  %870 = vmatpush.msra.mxu1 %v3827_v50  ;;  %v678_v5 = vld [vmem:[%s5357_s6 + $0x28] sm:$0xff] }
 0x172   :  { %645 = vmatpush.msrb.mxu2 %v570_v6  ;;  %718 = vmatpush.msrb.mxu3 %v594_v30  ;;  %v917_v6 = vld [vmem:[%s5360_s12 + $0x48] sm:$0xff]  ;;  %v3884_v30 = vld [vmem:[%s5359_s11 + $0x40] sm:$0xff] }
 0x173   :  { %798 = vmatpush.msra.mxu0 %v757_v1  ;;  %871 = vmatpush.msra.mxu1 %v3844_v55  ;;  %v916_v1 = vld [vmem:[%s5360_s12 + $0x40] sm:$0xff] }
 0x174   :  { %646 = vmatpush.msrb.mxu2 %v569_v2  ;;  %719 = vmatpush.msrb.mxu3 %v593_v8  ;;  %v3901_v2 = vld [vmem:[%s5359_s11 + $0x38] sm:$0xff]  ;;  %v982_v8 = vld [vmem:[%s5384_s27 + $0x48] sm:$0xff] }
 0x175   :  { %799 = vmatpush.msra.mxu0 %v756_v11  ;;  %872 = vmatpush.msra.mxu1 %v3857_v56  ;;  %v3914_v11 = vld [vmem:[%s5359_s11 + $0x30] sm:$0xff] }
 0x176   :  { %647 = vmatpush.msrb.mxu2 %v568_v23  ;;  %720 = vmatpush.msrb.mxu3 %v592_v12  ;;  %v981_v23 = vld [vmem:[%s5384_s27 + $0x40] sm:$0xff]  ;;  %v914_v12 = vld [vmem:[%s5360_s12 + $0x30] sm:$0xff] }
 0x177   :  { %800 = vmatpush.msra.mxu0 %v755_v14  ;;  %2779 = vmatmul.msk.f32.vlgmr.msrb.gmra.mxu2 %vm89_vm0, %v600_v26  ;;  %v606_v26 = vld [vmem:[%s5356_s5 + $0x30] sm:$0xff]  ;;  %v3929_v14 = vld [vmem:[%s5359_s11 + $0x28] sm:$0xff] }
 0x178   :  { %2787 = vmatmul.msk.f32.vlgmr.msrb.gmra.mxu3 %vm89_vm0, %v673_v15  ;;  %924 = vmatpush.msra.mxu2 %v923_v41  ;;  %v679_v15 = vld [vmem:[%s5357_s6 + $0x30] sm:$0xff]  ;;  %v977_v41 = vld [vmem:[%s5384_s27 + $0x20] sm:$0xff] }
 0x179   :  { %801 = vmatpush.msra.mxu0 %v754_v21  ;;  %989 = vmatpush.msra.mxu3 %v988_v43  ;;  %v913_v21 = vld [vmem:[%s5360_s12 + $0x28] sm:$0xff]  ;;  %v753_v43 = vld [vmem:[%s5358_s7 + $0x38] sm:$0xff] }
 0x17a   :  { %2795 = vmatmul.msk.f32.vlgmr.msra.gmra.mxu0 %vm89_vm0, %v746_v16  ;;  %925 = vmatpush.msra.mxu2 %v922_v42  ;;  %v980_v16 = vld [vmem:[%s5384_s27 + $0x38] sm:$0xff] }
 0x17b   :  { %990 = vmatpush.msra.mxu3 %v987_v47  ;;  %873 = vmatpush.msra.mxu1 %v3872_v4  ;;  %v680_v42 = vld [vmem:[%s5357_s6 + $0x38] sm:$0xff]  ;;  %v910_v47 = vld [vmem:[%s5360_s12 + $0x10] sm:$0xff] }
 0x17c   :  { %926 = vmatpush.msra.mxu2 %v921_v49  ;;  %v4008_v49 = vld [vmem:[%s5359_s11] sm:$0xff] }
 0x17d   :  { %991 = vmatpush.msra.mxu3 %v986_v52  ;;  %874 = vmatpush.msra.mxu1 %v3884_v30  ;;  %v909_v52 = vld [vmem:[%s5360_s12 + $0x8] sm:$0xff] }
 0x17e   :  { %927 = vmatpush.msra.mxu2 %v920_v53  ;;  %v908_v53 = vld [vmem:[%s5360_s12] sm:$0xff] }
 0x17f   :  { %2780 = vmatmul.msk.f32.gmra.mxu2 %vm89_vm0, %v601_v17  ;;  %992 = vmatpush.msra.mxu3 %v985_v39  ;;  %v3944_v17 = vld [vmem:[%s5359_s11 + $0x20] sm:$0xff]  ;;  %v974_v39 = vld [vmem:[%s5384_s27 + $0x8] sm:$0xff] }
 0x180   :  { %2788 = vmatmul.msk.f32.gmra.mxu3 %vm89_vm0, %v674_v18  ;;  %928 = vmatpush.msra.mxu2 %v919_v59  ;;  %v752_v18 = vld [vmem:[%s5358_s7 + $0x30] sm:$0xff]  ;;  %v973_v59 = vld [vmem:[%s5384_s27] sm:$0xff] }
 0x181   :  { %993 = vmatpush.msra.mxu3 %v984_v57  ;;  %875 = vmatpush.msra.mxu1 %v3901_v2 }
 0x182   :  { %2796 = vmatmul.msk.f32.gmra.mxu0 %vm89_vm0, %v747_v20  ;;  %929 = vmatpush.msra.mxu2 %v918_v63  ;;  %v912_v20 = vld [vmem:[%s5360_s12 + $0x20] sm:$0xff] }
 0x183   :  { %994 = vmatpush.msra.mxu3 %v983_v60  ;;  %876 = vmatpush.msra.mxu1 %v3914_v11 }
 0x184   :  { %930 = vmatpush.msra.mxu2 %v917_v6 }
 0x185   :  { %995 = vmatpush.msra.mxu3 %v982_v8  ;;  %877 = vmatpush.msra.mxu1 %v3929_v14 }
 0x186   :  { %931 = vmatpush.msra.mxu2 %v916_v1 }
 0x187   :  { %2781 = vmatmul.msk.f32.gmra.mxu2 %vm89_vm0, %v602_v24  ;;  %996 = vmatpush.msra.mxu3 %v981_v23  ;;  %v979_v24 = vld [vmem:[%s5384_s27 + $0x30] sm:$0xff] }
 0x188   :  { %2789 = vmatmul.msk.f32.gmra.mxu3 %vm89_vm0, %v675_v25  ;;  %932 = vmatpush.msra.mxu2 %v915_v9  ;;  %v3961_v25 = vld [vmem:[%s5359_s11 + $0x18] sm:$0xff] }
 0x189   :  { %997 = vmatpush.msra.mxu3 %v980_v16  ;;  %878 = vmatpush.msra.mxu1 %v3944_v17 }
 0x18a   :  { %2797 = vmatmul.msk.f32.gmra.mxu0 %vm89_vm0, %v748_v28  ;;  %933 = vmatpush.msra.mxu2 %v914_v12  ;;  %v911_v28 = vld [vmem:[%s5360_s12 + $0x18] sm:$0xff] }
 0x18b   :  { %998 = vmatpush.msra.mxu3 %v979_v24  ;;  %879 = vmatpush.msra.mxu1 %v3961_v25 }
 0x18c   :  { %934 = vmatpush.msra.mxu2 %v913_v21 }
 0x18e   :  { %935 = vmatpush.msra.mxu2 %v912_v20 }
 0x18f   :  { %2782 = vmatmul.msk.f32.gmra.mxu2 %vm89_vm0, %v603_v29  ;;  %v978_v29 = vld [vmem:[%s5384_s27 + $0x28] sm:$0xff] }
 0x190   :  { %2790 = vmatmul.msk.f32.gmra.mxu3 %vm89_vm0, %v676_v32  ;;  %v3974_v32 = vld [vmem:[%s5359_s11 + $0x10] sm:$0xff]  ;;  %936 = vmatpush.msra.mxu2 %v911_v28 }
 0x191   :  { %999 = vmatpush.msra.mxu3 %v978_v29  ;;  %880 = vmatpush.msra.mxu1 %v3974_v32 }
 0x192   :  { %2798 = vmatmul.msk.f32.gmra.mxu0 %vm89_vm0, %v749_v33  ;;  %v607_v33 = vld [vmem:[%s5356_s5 + $0x38] sm:$0xff]  ;;  %937 = vmatpush.msra.mxu2 %v910_v47 }
 0x193   :  { %1000 = vmatpush.msra.mxu3 %v977_v41 }
 0x194   :  { %938 = vmatpush.msra.mxu2 %v909_v52 }
 0x196   :  { %939 = vmatpush.msra.mxu2 %v908_v53 }
 0x197   :  { %2783 = vmatmul.msk.f32.gmra.mxu2 %vm89_vm0, %v604_v40  ;;  %v3996_v40 = vld [vmem:[%s5359_s11 + $0x8] sm:$0xff] }
 0x198   :  { %2791 = vmatmul.msk.f32.gmra.mxu3 %vm89_vm0, %v677_v46  ;;  %v976_v46 = vld [vmem:[%s5384_s27 + $0x18] sm:$0xff]  ;;  %881 = vmatpush.msra.mxu1 %v3996_v40 }
 0x199   :  { %1001 = vmatpush.msra.mxu3 %v976_v46 }
 0x19a   :  { %2799 = vmatmul.msk.f32.gmra.mxu0 %vm89_vm0, %v750_v31  ;;  %v975_v31 = vld [vmem:[%s5384_s27 + $0x10] sm:$0xff]  ;;  %882 = vmatpush.msra.mxu1 %v4008_v49 }
 0x19b   :  { %1002 = vmatpush.msra.mxu3 %v975_v31 }
 0x19d   :  { %1003 = vmatpush.msra.mxu3 %v974_v39 }
 0x19f   :  { %2784 = vmatmul.msk.f32.gmra.mxu2 %vm89_vm0, %v605_v27  ;;  %1004 = vmatpush.msra.mxu3 %v973_v59 }
 0x1a0   :  { %2792 = vmatmul.msk.f32.gmra.mxu3 %vm89_vm0, %v678_v5 }
 0x1a1   :  { %1273 = vmatpush.msrb.mxu3 %v3433_v36 }
 0x1a2   :  { %2800 = vmatmul.msk.f32.gmra.mxu0 %vm89_vm0, %v751_v62 }
 0x1a3   :  { %1274 = vmatpush.msrb.mxu3 %v3439_v37 }
 0x1a5   :  { %1275 = vmatpush.msrb.mxu3 %v3444_v38 }
 0x1a7   :  { %2785 = vmatmul.msk.f32.gmra.mxu2 %vm89_vm0, %v606_v26  ;;  %1276 = vmatpush.msrb.mxu3 %v3465_v44 }
 0x1a8   :  { %2793 = vmatmul.msk.f32.gmra.mxu3 %vm89_vm0, %v679_v15 }
 0x1a9   :  { %1277 = vmatpush.msrb.mxu3 %v3481_v48 }
 0x1aa   :  { %2801 = vmatmul.msk.f32.gmra.mxu0 %vm89_vm0, %v752_v18 }
 0x1ab   :  { %1278 = vmatpush.msrb.mxu3 %v3495_v51 }
 0x1ad   :  { %1279 = vmatpush.msrb.mxu3 %v3507_v54 }
 0x1af   :  { %2786 = vmatmul.msk.f32.gmra.mxu2 %vm89_vm0, %v607_v33  ;;  %1280 = vmatpush.msrb.mxu3 %v3522_v58 }
 0x1b0   :  { %2794 = vmatmul.msk.f32.gmra.mxu3 %vm89_vm0, %v680_v42 }
 0x1b1   :  { %1281 = vmatpush.msrb.mxu3 %v3535_v61 }
 0x1b2   :  { %2802 = vmatmul.msk.f32.gmra.mxu0 %vm89_vm0, %v753_v43 }
 0x1b3   :  { %1282 = vmatpush.msrb.mxu3 %v3549_v0 }
 0x1b5   :  { %1283 = vmatpush.msrb.mxu3 %v3561_v3 }
 0x1b7   :  { %1284 = vmatpush.msrb.mxu3 %v3576_v7 }
 0x1b9   :  { %1285 = vmatpush.msrb.mxu3 %v3589_v10 }
 0x1bb   :  { %1286 = vmatpush.msrb.mxu3 %v3603_v13 }
 0x1bd   :  { %1287 = vmatpush.msrb.mxu3 %v3628_v19 }
 0x1bf   :  { %1288 = vmatpush.msrb.mxu3 %v3640_v22 }
 0x1f7   :  { %v803_v57 = vpop.f32.mrf.mxu0 }
 0x1fa   :  { %v649_v36 = vpop.f32.mrf.mxu2 }
 0x1fb   :  { %v722_v37 = vpop.f32.mrf.mxu3  ;;  %v835_v38 = vsub.f32 %v803_v57, %v649_v36 }
 0x1fc   :  { %v827_v44 = vsub.f32 %v649_v36, %v722_v37 }
 0x1fd   :  { %v843_v48 = vsub.f32 %v835_v38, %v722_v37 }
 0x1fe   :  { %883 = vmatmul.f32.vlgmr.msra.gmra.mxu1 %v827_v44 }
 0x1ff   :  { %v965_v51 = vadd.f32 %v843_v48, %v827_v44  ;;  %940 = vmatmul.f32.vlgmr.msra.gmra.mxu2 %v843_v48  ;;  %v806_v54 = vpop.f32.mrf.mxu0 }
 0x201   :  { %1005 = vmatmul.f32.vlgmr.msra.gmra.mxu3 %v965_v51 }
 0x202   :  { %v652_v58 = vpop.f32.mrf.mxu2 }
 0x203   :  { %v725_v61 = vpop.f32.mrf.mxu3  ;;  %v836_v0 = vsub.f32 %v806_v54, %v652_v58 }
 0x204   :  { %v828_v3 = vsub.f32 %v652_v58, %v725_v61 }
 0x205   :  { %v844_v7 = vsub.f32 %v836_v0, %v725_v61 }
 0x206   :  { %886 = vmatmul.f32.gmra.mxu1 %v828_v3 }
 0x207   :  { %943 = vmatmul.f32.gmra.mxu2 %v844_v7  ;;  %v966_v10 = vadd.f32 %v844_v7, %v828_v3  ;;  %v809_v63 = vpop.f32.mrf.mxu0 }
 0x209   :  { %1008 = vmatmul.f32.gmra.mxu3 %v966_v10 }
 0x20a   :  { %v655_v13 = vpop.f32.mrf.mxu2 }
 0x20b   :  { %v728_v27 = vpop.f32.mrf.mxu3  ;;  %v837_v5 = vsub.f32 %v809_v63, %v655_v13 }
 0x20c   :  { %v829_v6 = vsub.f32 %v655_v13, %v728_v27 }
 0x20d   :  { %v845_v60 = vsub.f32 %v837_v5, %v728_v27 }
 0x20e   :  { %889 = vmatmul.f32.gmra.mxu1 %v829_v6 }
 0x20f   :  { %946 = vmatmul.f32.gmra.mxu2 %v845_v60  ;;  %v967_v19 = vadd.f32 %v845_v60, %v829_v6  ;;  %v812_v62 = vpop.f32.mrf.mxu0 }
 0x211   :  { %1011 = vmatmul.f32.gmra.mxu3 %v967_v19 }
 0x212   :  { %v658_v22 = vpop.f32.mrf.mxu2 }
 0x213   :  { %v731_v1 = vpop.f32.mrf.mxu3  ;;  %v838_v8 = vsub.f32 %v812_v62, %v658_v22 }
 0x214   :  { %v830_v9 = vsub.f32 %v658_v22, %v731_v1 }
 0x215   :  { %v846_v23 = vsub.f32 %v838_v8, %v731_v1 }
 0x216   :  { %892 = vmatmul.f32.gmra.mxu1 %v830_v9 }
 0x217   :  { %949 = vmatmul.f32.gmra.mxu2 %v846_v23  ;;  %v968_v12 = vadd.f32 %v846_v23, %v830_v9  ;;  %v815_v26 = vpop.f32.mrf.mxu0 }
 0x219   :  { %1014 = vmatmul.f32.gmra.mxu3 %v968_v12 }
 0x21a   :  { %v661_v15 = vpop.f32.mrf.mxu2 }
 0x21b   :  { %v734_v21 = vpop.f32.mrf.mxu3  ;;  %v839_v16 = vsub.f32 %v815_v26, %v661_v15 }
 0x21c   :  { %v831_v18 = vsub.f32 %v661_v15, %v734_v21 }
 0x21d   :  { %v847_v20 = vsub.f32 %v839_v16, %v734_v21 }
 0x21e   :  { %895 = vmatmul.f32.gmra.mxu1 %v831_v18 }
 0x21f   :  { %952 = vmatmul.f32.gmra.mxu2 %v847_v20  ;;  %v969_v24 = vadd.f32 %v847_v20, %v831_v18  ;;  %v818_v28 = vpop.f32.mrf.mxu0 }
 0x221   :  { %1017 = vmatmul.f32.gmra.mxu3 %v969_v24 }
 0x222   :  { %v664_v29 = vpop.f32.mrf.mxu2 }
 0x223   :  { %v737_v33 = vpop.f32.mrf.mxu3  ;;  %v840_v41 = vsub.f32 %v818_v28, %v664_v29 }
 0x224   :  { %v832_v42 = vsub.f32 %v664_v29, %v737_v33 }
 0x225   :  { %v848_v43 = vsub.f32 %v840_v41, %v737_v33 }
 0x226   :  { %898 = vmatmul.f32.gmra.mxu1 %v832_v42 }
 0x227   :  { %955 = vmatmul.f32.gmra.mxu2 %v848_v43  ;;  %v970_v47 = vadd.f32 %v848_v43, %v832_v42  ;;  %v821_v46 = vpop.f32.mrf.mxu0 }
 0x229   :  { %1020 = vmatmul.f32.gmra.mxu3 %v970_v47 }
 0x22a   :  { %v667_v52 = vpop.f32.mrf.mxu2 }
 0x22b   :  { %v740_v31 = vpop.f32.mrf.mxu3  ;;  %v841_v53 = vsub.f32 %v821_v46, %v667_v52 }
 0x22c   :  { %v833_v39 = vsub.f32 %v667_v52, %v740_v31 }
 0x22d   :  { %v849_v59 = vsub.f32 %v841_v53, %v740_v31 }
 0x22e   :  { %901 = vmatmul.f32.gmra.mxu1 %v833_v39 }
 0x22f   :  { %958 = vmatmul.f32.gmra.mxu2 %v849_v59  ;;  %v971_v57 = vadd.f32 %v849_v59, %v833_v39  ;;  %v824_v36 = vpop.f32.mrf.mxu0 }
 0x231   :  { %1023 = vmatmul.f32.gmra.mxu3 %v971_v57 }
 0x232   :  { %v670_v37 = vpop.f32.mrf.mxu2 }
 0x233   :  { %v743_v38 = vpop.f32.mrf.mxu3  ;;  %v842_v44 = vsub.f32 %v824_v36, %v670_v37 }
 0x234   :  { %v834_v48 = vsub.f32 %v670_v37, %v743_v38  ;;  %v1061_v37 = vld [vmem:[%s5362_s16 + $0x38] sm:$0xff] }
 0x235   :  { %v850_v51 = vsub.f32 %v842_v44, %v743_v38  ;;  %v1069_v38 = vld [vmem:[%s5363_s17 + $0x38] sm:$0xff] }
 0x236   :  { %904 = vmatmul.f32.gmra.mxu1 %v834_v48 }
 0x237   :  { %961 = vmatmul.f32.gmra.mxu2 %v850_v51  ;;  %v972_v54 = vadd.f32 %v850_v51, %v834_v48 }
 0x239   :  { %1026 = vmatmul.f32.gmra.mxu3 %v972_v54  ;;  %v1060_v54 = vld [vmem:[%s5362_s16 + $0x30] sm:$0xff] }
 0x27b   :  { %v884_v58 = vpop.f32.mrf.mxu1 }
 0x282   :  { %v941_v61 = vpop.f32.mrf.mxu2 }
 0x283   :  { %v887_v0 = vpop.f32.mrf.mxu1  ;;  %v4042_v33 = vsub.f32 %v884_v58, %v941_v61 }
 0x284   :  { %v1006_v3 = vpop.f32.mrf.mxu3 }
 0x285   :  { %v1038_v15 = vsub.f32 %v1006_v3, %v884_v58  ;;  %v1068_v58 = vld [vmem:[%s5363_s17 + $0x30] sm:$0xff] }
 0x287   :  { %v4044_v41 = vsub.f32 %v1038_v15, %v941_v61 }
 0x28a   :  { %v944_v7 = vpop.f32.mrf.mxu2 }
 0x28b   :  { %v890_v10 = vpop.f32.mrf.mxu1  ;;  %v4046_v46 = vsub.f32 %v887_v0, %v944_v7 }
 0x28c   :  { %v1009_v63 = vpop.f32.mrf.mxu3 }
 0x28d   :  { %v1039_v16 = vsub.f32 %v1009_v63, %v887_v0  ;;  %v1059_v63 = vld [vmem:[%s5362_s16 + $0x28] sm:$0xff] }
 0x28f   :  { %v4048_v52 = vsub.f32 %v1039_v16, %v944_v7  ;;  %v1065_v16 = vld [vmem:[%s5363_s17 + $0x18] sm:$0xff] }
 0x292   :  { %v947_v13 = vpop.f32.mrf.mxu2 }
 0x293   :  { %v893_v27 = vpop.f32.mrf.mxu1  ;;  %v4050_v39 = vsub.f32 %v890_v10, %v947_v13 }
 0x294   :  { %v1012_v5 = vpop.f32.mrf.mxu3 }
 0x295   :  { %v1040_v18 = vsub.f32 %v1012_v5, %v890_v10 }
 0x297   :  { %v1048_v59 = vsub.f32 %v1040_v18, %v947_v13  ;;  %v1067_v13 = vld [vmem:[%s5363_s17 + $0x28] sm:$0xff] }
 0x29a   :  { %v950_v6 = vpop.f32.mrf.mxu2 }
 0x29b   :  { %v896_v19 = vpop.f32.mrf.mxu1  ;;  %v1033_v44 = vsub.f32 %v893_v27, %v950_v6 }
 0x29c   :  { %v1015_v60 = vpop.f32.mrf.mxu3 }
 0x29d   :  { %v1041_v28 = vsub.f32 %v1015_v60, %v893_v27 }
 0x29f   :  { %v1049_v48 = vsub.f32 %v1041_v28, %v950_v6 }
 0x2a2   :  { %v953_v62 = vpop.f32.mrf.mxu2 }
 0x2a3   :  { %v899_v1 = vpop.f32.mrf.mxu1  ;;  %v1034_v0 = vsub.f32 %v896_v19, %v953_v62 }
 0x2a4   :  { %v1018_v22 = vpop.f32.mrf.mxu3 }
 0x2a5   :  { %v1042_v29 = vsub.f32 %v1018_v22, %v896_v19  ;;  %v1058_v22 = vld [vmem:[%s5362_s16 + $0x20] sm:$0xff] }
 0x2a6   :  { %v1066_v19 = vld [vmem:[%s5363_s17 + $0x20] sm:$0xff] }
 0x2a7   :  { %v1050_v51 = vsub.f32 %v1042_v29, %v953_v62  ;;  %v1081_v29 = vmul.f32 %v1065_v16, %v1049_v48 }
 0x2aa   :  { %v956_v8 = vpop.f32.mrf.mxu2 }
 0x2ab   :  { %v902_v23 = vpop.f32.mrf.mxu1  ;;  %v1035_v3 = vsub.f32 %v899_v1, %v956_v8 }
 0x2ac   :  { %v1021_v9 = vpop.f32.mrf.mxu3 }
 0x2ad   :  { %v1043_v20 = vsub.f32 %v1021_v9, %v899_v1  ;;  %v1075_v18 = vmul.f32 %v1059_v63, %v1035_v3 }
 0x2af   :  { %v1051_v57 = vsub.f32 %v1043_v20, %v956_v8  ;;  %v1099_v20 = vmul.f32 %v1067_v13, %v1035_v3 }
 0x2b1   :  { %v1083_v62 = vmul.f32 %v1067_v13, %v1051_v57  ;;  %v1107_v1 = vmul.f32 %v1059_v63, %v1051_v57  ;;  %v1098_v57 = vmul.f32 %v1066_v19, %v1034_v0  ;;  %v1054_v13 = vld [vmem:[%s5362_s16] sm:$0xff] }
 0x2b2   :  { %v959_v12 = vpop.f32.mrf.mxu2 }
 0x2b3   :  { %v905_v42 = vpop.f32.mrf.mxu1  ;;  %v1036_v36 = vsub.f32 %v902_v23, %v959_v12 }
 0x2b4   :  { %v1024_v26 = vpop.f32.mrf.mxu3 }
 0x2b5   :  { %v1044_v21 = vsub.f32 %v1024_v26, %v902_v23  ;;  %v1076_v8 = vmul.f32 %v1060_v54, %v1036_v36  ;;  %v1100_v9 = vmul.f32 %v1068_v58, %v1036_v36  ;;  %v1082_v23 = vmul.f32 %v1066_v19, %v1050_v51 }
 0x2b6   :  { %v1091_v36 = vsub.f32 %v1075_v18, %v1083_v62 }
 0x2b7   :  { %v1052_v43 = vsub.f32 %v1044_v21, %v959_v12  ;;  %v1106_v12 = vmul.f32 %v1058_v22, %v1050_v51  ;;  %v1057_v21 = vld [vmem:[%s5362_s16 + $0x18] sm:$0xff] }
 0x2b9   :  { %v1084_v7 = vmul.f32 %v1068_v58, %v1052_v43  ;;  %v1108_v10 = vmul.f32 %v1060_v54, %v1052_v43  ;;  %v1073_v54 = vmul.f32 %v1057_v21, %v1033_v44  ;;  %v1063_v58 = vld [vmem:[%s5363_s17 + $0x8] sm:$0xff] }
 0x2ba   :  { %v962_v24 = vpop.f32.mrf.mxu2  ;;  %v1095_v62 = vmul.f32 %v1063_v58, %v4046_v46 }
 0x2bb   :  { %v1037_v31 = vsub.f32 %v905_v42, %v962_v24  ;;  %v1116_v28 = vadd.f32 %v1108_v10, %v1100_v9  ;;  %v1079_v10 = vmul.f32 %v1063_v58, %v4048_v52  ;;  %v2990_v58 = vld [vmem:[%s5353_s10 + $0x50] sm:$0xff] }
 0x2bc   :  { %v1027_v47 = vpop.f32.mrf.mxu3 }
 0x2bd   :  { %v1045_v53 = vsub.f32 %v1027_v47, %v905_v42  ;;  %v1077_v27 = vmul.f32 %v1061_v37, %v1037_v31  ;;  %v1101_v5 = vmul.f32 %v1069_v38, %v1037_v31  ;;  %v1105_v42 = vmul.f32 %v1057_v21, %v1049_v48  ;;  %v1056_v47 = vld [vmem:[%s5362_s16 + $0x10] sm:$0xff]  ;;  %v1055_v48 = vld [vmem:[%s5362_s16 + $0x8] sm:$0xff] }
 0x2be   :  { %v1064_v31 = vld [vmem:[%s5363_s17 + $0x10] sm:$0xff]  ;;  %v1104_v51 = vmul.f32 %v1056_v47, %v1048_v59  ;;  %v1072_v63 = vmul.f32 %v1056_v47, %v4050_v39  ;;  %v1071_v19 = vmul.f32 %v1055_v48, %v4046_v46  ;;  %v2980_v47 = vld [vmem:[%s5352_s9 + $0x68] sm:$0xff] }
 0x2bf   :  { %v1053_v61 = vsub.f32 %v1045_v53, %v962_v24  ;;  %v1092_v24 = vsub.f32 %v1076_v8, %v1084_v7  ;;  %v1074_v53 = vmul.f32 %v1058_v22, %v1034_v0  ;;  %v1114_v0 = vadd.f32 %v1106_v12, %v1098_v57  ;;  %v2983_v57 = vld [vmem:[%s5381_s26 + $0x8] sm:$0xff] }
 0x2c0   :  { %v1102_v22 = vmul.f32 %v1054_v13, %v4044_v41 }
 0x2c1   :  { %v1085_v6 = vmul.f32 %v1069_v38, %v1053_v61  ;;  %v1109_v60 = vmul.f32 %v1061_v37, %v1053_v61  ;;  %v1115_v37 = vadd.f32 %v1107_v1, %v1099_v20  ;;  %v1080_v38 = vmul.f32 %v1064_v31, %v1048_v59  ;;  %v2974_v20 = vld [vmem:[%s5382_s4] sm:$0xff] }
 0x2c2   :  { %v1097_v61 = vmul.f32 %v1065_v16, %v1033_v44  ;;  %v1206_v3 = vadd.f32 %v1116_v28, %v1092_v24  ;;  %v1090_v7 = vsub.f32 %v1074_v53, %v1082_v23  ;;  %v1103_v59 = vmul.f32 %v1055_v48, %v4048_v52  ;;  %v1062_v44 = vld [vmem:[%s5363_s17] sm:$0xff]  ;;  %v2989_v48 = vld [vmem:[%s5352_s9 + $0x50] sm:$0xff] }
 0x2c3   :  { %v1093_v26 = vsub.f32 %v1077_v27, %v1085_v6  ;;  %v1117_v15 = vadd.f32 %v1109_v60, %v1101_v5  ;;  %v1096_v27 = vmul.f32 %v1064_v31, %v4050_v39  ;;  %v1205_v5 = vadd.f32 %v1115_v37, %v1091_v36  ;;  %v2981_v31 = vld [vmem:[%s5353_s10 + $0x68] sm:$0xff]  ;;  %v2982_v53 = vld [vmem:[%s5352_s9 + $0x60] sm:$0xff] }
 0x2c4   :  { %v1089_v6 = vsub.f32 %v1073_v54, %v1081_v29  ;;  %v1113_v60 = vadd.f32 %v1105_v42, %v1097_v61  ;;  %v1078_v52 = vmul.f32 %v1062_v44, %v4044_v41  ;;  %v1204_v1 = vadd.f32 %v1114_v0, %v1090_v7  ;;  %v2977_v29 = vld [vmem:[%s5383_s29] sm:$0xff]  ;;  %v2978_v42 = vld [vmem:[%s5352_s9 + $0x70] sm:$0xff]  ;;  %v2988_v54 = vld [vmem:[%s5383_s29 + $0x8] sm:$0xff] }
 0x2c5   :  { %1126 = vmatpush.msrb.mxu0 %v1093_v26  ;;  %1167 = vmatpush.msrb.mxu1 %v1117_v15  ;;  %v1207_v43 = vadd.f32 %v1117_v15, %v1093_v26  ;;  %v1088_v8 = vsub.f32 %v1072_v63, %v1080_v38  ;;  %v1112_v9 = vadd.f32 %v1104_v51, %v1096_v27  ;;  %v2986_v38 = vld [vmem:[%s5352_s9 + $0x58] sm:$0xff]  ;;  %v2991_v61 = vld [vmem:[%s5352_s9 + $0x48] sm:$0xff]  ;;  %v3000_v27 = vld [vmem:[%s5352_s9 + $0x30] sm:$0xff] }
 0x2c6   :  { %v1070_v39 = vmul.f32 %v1054_v13, %v4042_v33  ;;  %v1094_v23 = vmul.f32 %v1062_v44, %v4042_v33  ;;  %v1203_v12 = vadd.f32 %v1113_v60, %v1089_v6  ;;  %v1087_v26 = vsub.f32 %v1071_v19, %v1079_v10  ;;  %v2973_v33 = vld [vmem:[%s5381_s26] sm:$0xff]  ;;  %v2987_v51 = vld [vmem:[%s5353_s10 + $0x58] sm:$0xff]  ;;  %v2999_v44 = vld [vmem:[%s5383_s29 + $0x10] sm:$0xff] }
 0x2c7   :  { %1127 = vmatpush.msrb.mxu0 %v1092_v24  ;;  %1168 = vmatpush.msrb.mxu1 %v1116_v28  ;;  %v1111_v41 = vadd.f32 %v1103_v59, %v1095_v62  ;;  %v1202_v15 = vadd.f32 %v1112_v9, %v1088_v8  ;;  %v2975_v24 = vld [vmem:[%s5352_s9 + $0x78] sm:$0xff]  ;;  %v2995_v10 = vld [vmem:[%s5353_s10 + $0x40] sm:$0xff]  ;;  %v2996_v59 = vld [vmem:[%s5382_s4 + $0x10] sm:$0xff] }
 0x2c8   :  { %1216 = vmatpush.msrb.mxu2 %v1207_v43  ;;  %v1086_v21 = vsub.f32 %v1070_v39, %v1078_v52  ;;  %v1110_v46 = vadd.f32 %v1102_v22, %v1094_v23  ;;  %v2976_v28 = vld [vmem:[%s5353_s10 + $0x78] sm:$0xff]  ;;  %v2979_v43 = vld [vmem:[%s5353_s10 + $0x70] sm:$0xff]  ;;  %v3004_v52 = vld [vmem:[%s5352_s9 + $0x20] sm:$0xff] }
 0x2c9   :  { %1128 = vmatpush.msrb.mxu0 %v1091_v36  ;;  %1169 = vmatpush.msrb.mxu1 %v1115_v37  ;;  %v1201_v16 = vadd.f32 %v1111_v41, %v1087_v26  ;;  %v2984_v36 = vld [vmem:[%s5353_s10 + $0x60] sm:$0xff]  ;;  %v2985_v37 = vld [vmem:[%s5382_s4 + $0x8] sm:$0xff]  ;;  %v2997_v63 = vld [vmem:[%s5352_s9 + $0x38] sm:$0xff] }
 0x2ca   :  { %1217 = vmatpush.msrb.mxu2 %v1206_v3  ;;  %v1200_v18 = vadd.f32 %v1110_v46, %v1086_v21  ;;  %v2992_v3 = vld [vmem:[%s5353_s10 + $0x48] sm:$0xff]  ;;  %v2998_v13 = vld [vmem:[%s5353_s10 + $0x38] sm:$0xff]  ;;  %v3006_v19 = vld [vmem:[%s5353_s10 + $0x20] sm:$0xff] }
 0x2cb   :  { %1129 = vmatpush.msrb.mxu0 %v1090_v7  ;;  %1170 = vmatpush.msrb.mxu1 %v1114_v0  ;;  %v2993_v7 = vld [vmem:[%s5352_s9 + $0x40] sm:$0xff]  ;;  %v2994_v0 = vld [vmem:[%s5381_s26 + $0x10] sm:$0xff]  ;;  %v3005_v22 = vld [vmem:[%s5381_s26 + $0x18] sm:$0xff] }
 0x2cc   :  { %1218 = vmatpush.msrb.mxu2 %v1205_v5  ;;  %v3001_v5 = vld [vmem:[%s5353_s10 + $0x30] sm:$0xff]  ;;  %v3007_v62 = vld [vmem:[%s5382_s4 + $0x18] sm:$0xff] }
 0x2cd   :  { %1130 = vmatpush.msrb.mxu0 %v1089_v6  ;;  %1171 = vmatpush.msrb.mxu1 %v1113_v60  ;;  %v3002_v6 = vld [vmem:[%s5352_s9 + $0x28] sm:$0xff]  ;;  %v3011_v39 = vld [vmem:[%s5352_s9 + $0x10] sm:$0xff] }
 0x2ce   :  { %1219 = vmatpush.msrb.mxu2 %v1204_v1  ;;  %v3003_v60 = vld [vmem:[%s5353_s10 + $0x28] sm:$0xff]  ;;  %v3008_v1 = vld [vmem:[%s5352_s9 + $0x18] sm:$0xff]  ;;  %v3012_v23 = vld [vmem:[%s5353_s10 + $0x10] sm:$0xff] }
 0x2cf   :  { %1131 = vmatpush.msrb.mxu0 %v1088_v8  ;;  %1172 = vmatpush.msrb.mxu1 %v1112_v9  ;;  %v3009_v8 = vld [vmem:[%s5353_s10 + $0x18] sm:$0xff] }
 0x2d0   :  { %1220 = vmatpush.msrb.mxu2 %v1203_v12  ;;  %v3010_v9 = vld [vmem:[%s5383_s29 + $0x18] sm:$0xff]  ;;  %v3013_v12 = vld [vmem:[%s5352_s9 + $0x8] sm:$0xff] }
 0x2d1   :  { %1132 = vmatpush.msrb.mxu0 %v1087_v26  ;;  %1173 = vmatpush.msrb.mxu1 %v1111_v41  ;;  %v3014_v26 = vld [vmem:[%s5353_s10 + $0x8] sm:$0xff]  ;;  %v3015_v41 = vld [vmem:[%s5352_s9] sm:$0xff] }
 0x2d2   :  { %1221 = vmatpush.msrb.mxu2 %v1202_v15  ;;  %v3016_v15 = vld [vmem:[%s5381_s26 + $0x20] sm:$0xff] }
 0x2d3   :  { %1133 = vmatpush.msrb.mxu0 %v1086_v21  ;;  %1174 = vmatpush.msrb.mxu1 %v1110_v46  ;;  %v3017_v21 = vld [vmem:[%s5353_s10] sm:$0xff] }
 0x2d4   :  { %1222 = vmatpush.msrb.mxu2 %v1201_v16  ;;  %2803 = vmatmul.msk.f32.vlgmr.msrb.gmra.mxu0 %vm89_vm0, %v2973_v33  ;;  %v3018_v46 = vld [vmem:[%s5382_s4 + $0x20] sm:$0xff] }
 0x2d5   :  { %2811 = vmatmul.msk.f32.vlgmr.msrb.gmra.mxu1 %vm89_vm0, %v2974_v20  ;;  %1314 = vmatpush.msra.mxu0 %v2975_v24  ;;  %v3019_v16 = vld [vmem:[%s5383_s29 + $0x20] sm:$0xff] }
 0x2d6   :  { %1223 = vmatpush.msrb.mxu2 %v1200_v18  ;;  %1363 = vmatpush.msra.mxu1 %v2976_v28  ;;  %v3020_v18 = vld [vmem:[%s5381_s26 + $0x28] sm:$0xff] }
 0x2d7   :  { %2819 = vmatmul.msk.f32.vlgmr.msrb.gmra.mxu2 %vm89_vm0, %v2977_v29  ;;  %1315 = vmatpush.msra.mxu0 %v2978_v42 }
 0x2d8   :  { %1364 = vmatpush.msra.mxu1 %v2979_v43 }
 0x2d9   :  { %1316 = vmatpush.msra.mxu0 %v2980_v47 }
 0x2da   :  { %1365 = vmatpush.msra.mxu1 %v2981_v31 }
 0x2db   :  { %1317 = vmatpush.msra.mxu0 %v2982_v53 }
 0x2dc   :  { %2804 = vmatmul.msk.f32.gmra.mxu0 %vm89_vm0, %v2983_v57  ;;  %1366 = vmatpush.msra.mxu1 %v2984_v36 }
 0x2dd   :  { %2812 = vmatmul.msk.f32.gmra.mxu1 %vm89_vm0, %v2985_v37  ;;  %1318 = vmatpush.msra.mxu0 %v2986_v38 }
 0x2de   :  { %1367 = vmatpush.msra.mxu1 %v2987_v51 }
 0x2df   :  { %2820 = vmatmul.msk.f32.gmra.mxu2 %vm89_vm0, %v2988_v54  ;;  %1319 = vmatpush.msra.mxu0 %v2989_v48 }
 0x2e0   :  { %1368 = vmatpush.msra.mxu1 %v2990_v58 }
 0x2e1   :  { %1320 = vmatpush.msra.mxu0 %v2991_v61 }
 0x2e2   :  { %1369 = vmatpush.msra.mxu1 %v2992_v3 }
 0x2e3   :  { %1321 = vmatpush.msra.mxu0 %v2993_v7 }
 0x2e4   :  { %2805 = vmatmul.msk.f32.gmra.mxu0 %vm89_vm0, %v2994_v0  ;;  %1370 = vmatpush.msra.mxu1 %v2995_v10 }
 0x2e5   :  { %2813 = vmatmul.msk.f32.gmra.mxu1 %vm89_vm0, %v2996_v59  ;;  %1322 = vmatpush.msra.mxu0 %v2997_v63 }
 0x2e6   :  { %1371 = vmatpush.msra.mxu1 %v2998_v13 }
 0x2e7   :  { %2821 = vmatmul.msk.f32.gmra.mxu2 %vm89_vm0, %v2999_v44  ;;  %1323 = vmatpush.msra.mxu0 %v3000_v27 }
 0x2e8   :  { %1372 = vmatpush.msra.mxu1 %v3001_v5 }
 0x2e9   :  { %1324 = vmatpush.msra.mxu0 %v3002_v6 }
 0x2ea   :  { %1373 = vmatpush.msra.mxu1 %v3003_v60 }
 0x2eb   :  { %1325 = vmatpush.msra.mxu0 %v3004_v52 }
 0x2ec   :  { %2806 = vmatmul.msk.f32.gmra.mxu0 %vm89_vm0, %v3005_v22  ;;  %1374 = vmatpush.msra.mxu1 %v3006_v19 }
 0x2ed   :  { %2814 = vmatmul.msk.f32.gmra.mxu1 %vm89_vm0, %v3007_v62  ;;  %1326 = vmatpush.msra.mxu0 %v3008_v1 }
 0x2ee   :  { %1375 = vmatpush.msra.mxu1 %v3009_v8 }
 0x2ef   :  { %2822 = vmatmul.msk.f32.gmra.mxu2 %vm89_vm0, %v3010_v9  ;;  %1327 = vmatpush.msra.mxu0 %v3011_v39 }
 0x2f0   :  { %1376 = vmatpush.msra.mxu1 %v3012_v23 }
 0x2f1   :  { %1328 = vmatpush.msra.mxu0 %v3013_v12 }
 0x2f2   :  { %1377 = vmatpush.msra.mxu1 %v3014_v26 }
 0x2f3   :  { %1329 = vmatpush.msra.mxu0 %v3015_v41 }
 0x2f4   :  { %2807 = vmatmul.msk.f32.gmra.mxu0 %vm89_vm0, %v3016_v15  ;;  %1378 = vmatpush.msra.mxu1 %v3017_v21 }
 0x2f5   :  { %2815 = vmatmul.msk.f32.gmra.mxu1 %vm89_vm0, %v3018_v46 }
 0x2f6   :  { %1649 = vmatpush.msrb.mxu1 %v3789_v34  ;;  %v3021_v34 = vld [vmem:[%s5382_s4 + $0x28] sm:$0xff] }
 0x2f7   :  { %2823 = vmatmul.msk.f32.gmra.mxu2 %vm89_vm0, %v3019_v16 }
 0x2f8   :  { %1650 = vmatpush.msrb.mxu1 %v3794_v35  ;;  %v3022_v35 = vld [vmem:[%s5383_s29 + $0x28] sm:$0xff] }
 0x2fa   :  { %1651 = vmatpush.msrb.mxu1 %v3812_v45  ;;  %v3023_v45 = vld [vmem:[%s5381_s26 + $0x30] sm:$0xff] }
 0x2fc   :  { %2808 = vmatmul.msk.f32.gmra.mxu0 %vm89_vm0, %v3020_v18  ;;  %1652 = vmatpush.msrb.mxu1 %v3827_v50  ;;  %v3024_v50 = vld [vmem:[%s5382_s4 + $0x30] sm:$0xff] }
 0x2fd   :  { %2816 = vmatmul.msk.f32.gmra.mxu1 %vm89_vm0, %v3021_v34 }
 0x2fe   :  { %1653 = vmatpush.msrb.mxu1 %v3844_v55  ;;  %v3025_v55 = vld [vmem:[%s5383_s29 + $0x30] sm:$0xff] }
 0x2ff   :  { %2824 = vmatmul.msk.f32.gmra.mxu2 %vm89_vm0, %v3022_v35 }
 0x300   :  { %1654 = vmatpush.msrb.mxu1 %v3857_v56  ;;  %v3026_v56 = vld [vmem:[%s5381_s26 + $0x38] sm:$0xff] }
 0x302   :  { %1655 = vmatpush.msrb.mxu1 %v3872_v4  ;;  %v3027_v4 = vld [vmem:[%s5382_s4 + $0x38] sm:$0xff] }
 0x304   :  { %2809 = vmatmul.msk.f32.gmra.mxu0 %vm89_vm0, %v3023_v45  ;;  %1656 = vmatpush.msrb.mxu1 %v3884_v30  ;;  %v3028_v30 = vld [vmem:[%s5383_s29 + $0x38] sm:$0xff] }
 0x305   :  { %2817 = vmatmul.msk.f32.gmra.mxu1 %vm89_vm0, %v3024_v50 }
 0x306   :  { %1657 = vmatpush.msrb.mxu1 %v3901_v2 }
 0x307   :  { %2825 = vmatmul.msk.f32.gmra.mxu2 %vm89_vm0, %v3025_v55 }
 0x308   :  { %1658 = vmatpush.msrb.mxu1 %v3914_v11 }
 0x30a   :  { %1659 = vmatpush.msrb.mxu1 %v3929_v14 }
 0x30c   :  { %2810 = vmatmul.msk.f32.gmra.mxu0 %vm89_vm0, %v3026_v56  ;;  %1660 = vmatpush.msrb.mxu1 %v3944_v17 }
 0x30d   :  { %2818 = vmatmul.msk.f32.gmra.mxu1 %vm89_vm0, %v3027_v4 }
 0x30e   :  { %1661 = vmatpush.msrb.mxu1 %v3961_v25 }
 0x30f   :  { %2826 = vmatmul.msk.f32.gmra.mxu2 %vm89_vm0, %v3028_v30 }
 0x310   :  { %1662 = vmatpush.msrb.mxu1 %v3974_v32 }
 0x312   :  { %1663 = vmatpush.msrb.mxu1 %v3996_v40 }
 0x314   :  { %1664 = vmatpush.msrb.mxu1 %v4008_v49 }
 0x351   :  { %v1135_v2 = vpop.f32.mrf.mxu0 }
 0x352   :  { %v1176_v11 = vpop.f32.mrf.mxu1 }
 0x353   :  { %v1249_v14 = vsub.f32 %v1135_v2, %v1176_v11 }
 0x355   :  { %1289 = vmatmul.f32.vlgmr.msrb.gmra.mxu3 %v1249_v14 }
 0x359   :  { %v1138_v17 = vpop.f32.mrf.mxu0 }
 0x35a   :  { %v1225_v33 = vpop.f32.mrf.mxu2  ;;  %v1179_v20 = vpop.f32.mrf.mxu1 }
 0x35b   :  { %v1257_v25 = vsub.f32 %v1225_v33, %v1135_v2  ;;  %v1250_v24 = vsub.f32 %v1138_v17, %v1179_v20 }
 0x35d   :  { %v1265_v28 = vsub.f32 %v1257_v25, %v1176_v11  ;;  %1292 = vmatmul.f32.gmra.mxu3 %v1250_v24 }
 0x35f   :  { %v1355_v29 = vadd.f32 %v1265_v28, %v1249_v14  ;;  %1330 = vmatmul.f32.vlgmr.msra.gmra.mxu0 %v1265_v28 }
 0x361   :  { %1379 = vmatmul.f32.vlgmr.msra.gmra.mxu1 %v1355_v29  ;;  %v1141_v42 = vpop.f32.mrf.mxu0 }
 0x362   :  { %v1228_v32 = vpop.f32.mrf.mxu2  ;;  %v1182_v43 = vpop.f32.mrf.mxu1 }
 0x363   :  { %v1258_v40 = vsub.f32 %v1228_v32, %v1138_v17  ;;  %v1251_v47 = vsub.f32 %v1141_v42, %v1182_v43 }
 0x365   :  { %v1266_v49 = vsub.f32 %v1258_v40, %v1179_v20  ;;  %1295 = vmatmul.f32.gmra.mxu3 %v1251_v47 }
 0x367   :  { %1333 = vmatmul.f32.gmra.mxu0 %v1266_v49  ;;  %v1356_v31 = vadd.f32 %v1266_v49, %v1250_v24 }
 0x369   :  { %1382 = vmatmul.f32.gmra.mxu1 %v1356_v31  ;;  %v1144_v53 = vpop.f32.mrf.mxu0 }
 0x36a   :  { %v1231_v57 = vpop.f32.mrf.mxu2  ;;  %v1185_v36 = vpop.f32.mrf.mxu1 }
 0x36b   :  { %v1259_v37 = vsub.f32 %v1231_v57, %v1141_v42  ;;  %v1252_v38 = vsub.f32 %v1144_v53, %v1185_v36 }
 0x36d   :  { %v1267_v51 = vsub.f32 %v1259_v37, %v1182_v43  ;;  %1298 = vmatmul.f32.gmra.mxu3 %v1252_v38 }
 0x36f   :  { %1336 = vmatmul.f32.gmra.mxu0 %v1267_v51  ;;  %v1357_v54 = vadd.f32 %v1267_v51, %v1251_v47 }
 0x371   :  { %1385 = vmatmul.f32.gmra.mxu1 %v1357_v54  ;;  %v1147_v48 = vpop.f32.mrf.mxu0 }
 0x372   :  { %v1234_v58 = vpop.f32.mrf.mxu2  ;;  %v1188_v61 = vpop.f32.mrf.mxu1 }
 0x373   :  { %v1260_v3 = vsub.f32 %v1234_v58, %v1144_v53  ;;  %v1253_v7 = vsub.f32 %v1147_v48, %v1188_v61 }
 0x375   :  { %v1268_v0 = vsub.f32 %v1260_v3, %v1185_v36  ;;  %1301 = vmatmul.f32.gmra.mxu3 %v1253_v7 }
 0x377   :  { %1339 = vmatmul.f32.gmra.mxu0 %v1268_v0  ;;  %v1358_v10 = vadd.f32 %v1268_v0, %v1252_v38 }
 0x379   :  { %1388 = vmatmul.f32.gmra.mxu1 %v1358_v10  ;;  %v1150_v59 = vpop.f32.mrf.mxu0 }
 0x37a   :  { %v1237_v63 = vpop.f32.mrf.mxu2  ;;  %v1191_v13 = vpop.f32.mrf.mxu1 }
 0x37b   :  { %v1261_v44 = vsub.f32 %v1237_v63, %v1147_v48  ;;  %v1254_v27 = vsub.f32 %v1150_v59, %v1191_v13 }
 0x37d   :  { %v1269_v5 = vsub.f32 %v1261_v44, %v1188_v61  ;;  %1304 = vmatmul.f32.gmra.mxu3 %v1254_v27  ;;  %v2834_v44 = vld [vmem:[%s5354_s14 + $0x78] sm:$0xff] }
 0x37f   :  { %1342 = vmatmul.f32.gmra.mxu0 %v1269_v5  ;;  %v1359_v6 = vadd.f32 %v1269_v5, %v1253_v7 }
 0x381   :  { %1391 = vmatmul.f32.gmra.mxu1 %v1359_v6  ;;  %v1153_v60 = vpop.f32.mrf.mxu0 }
 0x382   :  { %v1240_v52 = vpop.f32.mrf.mxu2  ;;  %v1194_v22 = vpop.f32.mrf.mxu1 }
 0x383   :  { %v1262_v19 = vsub.f32 %v1240_v52, %v1150_v59  ;;  %v1255_v62 = vsub.f32 %v1153_v60, %v1194_v22  ;;  %v2833_v52 = vld [vmem:[%s5354_s14 + $0x70] sm:$0xff] }
 0x385   :  { %v1270_v1 = vsub.f32 %v1262_v19, %v1191_v13  ;;  %1307 = vmatmul.f32.gmra.mxu3 %v1255_v62 }
 0x387   :  { %1345 = vmatmul.f32.gmra.mxu0 %v1270_v1  ;;  %v1360_v8 = vadd.f32 %v1270_v1, %v1254_v27  ;;  %v2842_v27 = vld [vmem:[%s5355_s15 + $0x78] sm:$0xff] }
 0x389   :  { %1394 = vmatmul.f32.gmra.mxu1 %v1360_v8  ;;  %v1156_v9 = vpop.f32.mrf.mxu0 }
 0x38a   :  { %v1243_v39 = vpop.f32.mrf.mxu2  ;;  %v1197_v23 = vpop.f32.mrf.mxu1 }
 0x38b   :  { %v1263_v12 = vsub.f32 %v1243_v39, %v1153_v60  ;;  %v1256_v26 = vsub.f32 %v1156_v9, %v1197_v23  ;;  %v2832_v39 = vld [vmem:[%s5354_s14 + $0x68] sm:$0xff] }
 0x38d   :  { %v1271_v41 = vsub.f32 %v1263_v12, %v1194_v22  ;;  %1310 = vmatmul.f32.gmra.mxu3 %v1256_v26  ;;  %v2841_v22 = vld [vmem:[%s5355_s15 + $0x70] sm:$0xff] }
 0x38f   :  { %1348 = vmatmul.f32.gmra.mxu0 %v1271_v41  ;;  %v1361_v15 = vadd.f32 %v1271_v41, %v1255_v62 }
 0x391   :  { %1397 = vmatmul.f32.gmra.mxu1 %v1361_v15 }
 0x392   :  { %v1246_v21 = vpop.f32.mrf.mxu2 }
 0x393   :  { %v1264_v46 = vsub.f32 %v1246_v21, %v1156_v9  ;;  %v2831_v21 = vld [vmem:[%s5354_s14 + $0x60] sm:$0xff] }
 0x395   :  { %v1272_v16 = vsub.f32 %v1264_v46, %v1197_v23  ;;  %v2840_v23 = vld [vmem:[%s5355_s15 + $0x68] sm:$0xff]  ;;  %v2839_v46 = vld [vmem:[%s5355_s15 + $0x60] sm:$0xff] }
 0x397   :  { %1351 = vmatmul.f32.gmra.mxu0 %v1272_v16  ;;  %v1362_v18 = vadd.f32 %v1272_v16, %v1256_v26 }
 0x399   :  { %1400 = vmatmul.f32.gmra.mxu1 %v1362_v18 }
 0x3d8   :  { %v1290_v34 = vpop.f32.mrf.mxu3 }
 0x3dc   :  { %v1331_v35 = vpop.f32.mrf.mxu0 }
 0x3dd   :  { %v4318_v51 = vsub.f32 %v1290_v34, %v1331_v35 }
 0x3de   :  { %v1380_v45 = vpop.f32.mrf.mxu1 }
 0x3df   :  { %v1412_v40 = vsub.f32 %v1380_v45, %v1290_v34 }
 0x3e0   :  { %v1293_v50 = vpop.f32.mrf.mxu3 }
 0x3e1   :  { %v4320_v54 = vsub.f32 %v1412_v40, %v1331_v35 }
 0x3e4   :  { %v1334_v55 = vpop.f32.mrf.mxu0 }
 0x3e5   :  { %v4322_v61 = vsub.f32 %v1293_v50, %v1334_v55 }
 0x3e6   :  { %v1383_v56 = vpop.f32.mrf.mxu1 }
 0x3e7   :  { %v1413_v49 = vsub.f32 %v1383_v56, %v1293_v50 }
 0x3e8   :  { %v1296_v4 = vpop.f32.mrf.mxu3 }
 0x3e9   :  { %v4324_v3 = vsub.f32 %v1413_v49, %v1334_v55 }
 0x3ec   :  { %v1337_v30 = vpop.f32.mrf.mxu0 }
 0x3ed   :  { %v4326_v10 = vsub.f32 %v1296_v4, %v1337_v30 }
 0x3ee   :  { %v1386_v2 = vpop.f32.mrf.mxu1 }
 0x3ef   :  { %v1414_v31 = vsub.f32 %v1386_v2, %v1296_v4  ;;  %v2830_v4 = vld [vmem:[%s5354_s14 + $0x58] sm:$0xff] }
 0x3f0   :  { %v1299_v11 = vpop.f32.mrf.mxu3 }
 0x3f1   :  { %v1422_v59 = vsub.f32 %v1414_v31, %v1337_v30  ;;  %v2838_v30 = vld [vmem:[%s5355_s15 + $0x58] sm:$0xff]  ;;  %v2828_v31 = vld [vmem:[%s5354_s14 + $0x48] sm:$0xff] }
 0x3f4   :  { %v1340_v14 = vpop.f32.mrf.mxu0 }
 0x3f5   :  { %v1407_v5 = vsub.f32 %v1299_v11, %v1340_v14 }
 0x3f6   :  { %v1389_v17 = vpop.f32.mrf.mxu1 }
 0x3f7   :  { %v1415_v37 = vsub.f32 %v1389_v17, %v1299_v11  ;;  %v1449_v49 = vmul.f32 %v2830_v4, %v1407_v5 }
 0x3f8   :  { %v1302_v33 = vpop.f32.mrf.mxu3 }
 0x3f9   :  { %v1423_v6 = vsub.f32 %v1415_v37, %v1340_v14 }
 0x3fc   :  { %v1343_v20 = vpop.f32.mrf.mxu0 }
 0x3fd   :  { %v1408_v62 = vsub.f32 %v1302_v33, %v1343_v20 }
 0x3fe   :  { %v1392_v25 = vpop.f32.mrf.mxu1 }
 0x3ff   :  { %v1416_v38 = vsub.f32 %v1392_v25, %v1302_v33  ;;  %v1457_v33 = vmul.f32 %v2838_v30, %v1423_v6 }
 0x400   :  { %v1305_v24 = vpop.f32.mrf.mxu3 }
 0x401   :  { %v1424_v60 = vsub.f32 %v1416_v38, %v1343_v20  ;;  %v1481_v20 = vmul.f32 %v2830_v4, %v1423_v6  ;;  %v1447_v6 = vmul.f32 %v2828_v31, %v4322_v61  ;;  %v3043_v4 = vld [vmem:[%s5384_s27 + $0x58] sm:$0xff] }
 0x403   :  { %v1458_v45 = vmul.f32 %v2839_v46, %v1424_v60  ;;  %v1482_v50 = vmul.f32 %v2831_v21, %v1424_v60 }
 0x404   :  { %v1346_v28 = vpop.f32.mrf.mxu0 }
 0x405   :  { %v1409_v1 = vsub.f32 %v1305_v24, %v1346_v28 }
 0x406   :  { %v1395_v29 = vpop.f32.mrf.mxu1 }
 0x407   :  { %v1417_v53 = vsub.f32 %v1395_v29, %v1305_v24  ;;  %v1451_v2 = vmul.f32 %v2832_v39, %v1409_v1  ;;  %v1475_v11 = vmul.f32 %v2840_v23, %v1409_v1  ;;  %v2829_v24 = vld [vmem:[%s5354_s14 + $0x50] sm:$0xff]  ;;  %v1450_v29 = vmul.f32 %v2831_v21, %v1408_v62  ;;  %v3033_v21 = vld [vmem:[%s5358_s7] sm:$0xff] }
 0x408   :  { %v1308_v42 = vpop.f32.mrf.mxu3 }
 0x409   :  { %v1425_v63 = vsub.f32 %v1417_v53, %v1346_v28  ;;  %v2837_v28 = vld [vmem:[%s5355_s15 + $0x50] sm:$0xff]  ;;  %v2836_v53 = vld [vmem:[%s5355_s15 + $0x48] sm:$0xff]  ;;  %v1466_v37 = vsub.f32 %v1450_v29, %v1458_v45  ;;  %v3054_v29 = vld [vmem:[%s5384_s27 + $0x38] sm:$0xff] }
 0x40a   :  { %v1456_v40 = vmul.f32 %v2837_v28, %v1422_v59  ;;  %v1471_v60 = vmul.f32 %v2836_v53, %v4322_v61  ;;  %v3039_v45 = vld [vmem:[%s5356_s5 + $0x8] sm:$0xff] }
 0x40b   :  { %v1459_v16 = vmul.f32 %v2840_v23, %v1425_v63  ;;  %v1483_v18 = vmul.f32 %v2832_v39, %v1425_v63  ;;  %v1472_v63 = vmul.f32 %v2837_v28, %v4326_v10  ;;  %v3053_v28 = vld [vmem:[%s5360_s12 + $0x38] sm:$0xff] }
 0x40c   :  { %v1349_v32 = vpop.f32.mrf.mxu0 }
 0x40d   :  { %v1410_v13 = vsub.f32 %v1308_v42, %v1349_v32 }
 0x40e   :  { %v1398_v43 = vpop.f32.mrf.mxu1 }
 0x40f   :  { %v1418_v47 = vsub.f32 %v1398_v43, %v1308_v42  ;;  %v1452_v34 = vmul.f32 %v2833_v52, %v1410_v13  ;;  %v1476_v35 = vmul.f32 %v2841_v22, %v1410_v13  ;;  %v1474_v42 = vmul.f32 %v2839_v46, %v1408_v62  ;;  %v3034_v46 = vld [vmem:[%s5360_s12 + $0x70] sm:$0xff] }
 0x410   :  { %v1311_v57 = vpop.f32.mrf.mxu3  ;;  %v1491_v43 = vadd.f32 %v1483_v18, %v1475_v11  ;;  %v3036_v18 = vld [vmem:[%s5360_s12 + $0x68] sm:$0xff]  ;;  %v3046_v11 = vld [vmem:[%s5384_s27 + $0x50] sm:$0xff] }
 0x411   :  { %v1426_v48 = vsub.f32 %v1418_v47, %v1349_v32  ;;  %v1467_v32 = vsub.f32 %v1451_v2, %v1459_v16  ;;  %v1480_v47 = vmul.f32 %v2829_v24, %v1422_v59  ;;  %v1490_v38 = vadd.f32 %v1482_v50, %v1474_v42  ;;  %v2835_v59 = vld [vmem:[%s5355_s15 + $0x40] sm:$0xff]  ;;  %v3035_v16 = vld [vmem:[%s5384_s27 + $0x70] sm:$0xff] }
 0x412   :  { %v1470_v62 = vmul.f32 %v2835_v59, %v4318_v51  ;;  %v3040_v50 = vld [vmem:[%s5384_s27 + $0x60] sm:$0xff]  ;;  %v3045_v2 = vld [vmem:[%s5360_s12 + $0x50] sm:$0xff] }
 0x413   :  { %v1460_v8 = vmul.f32 %v2841_v22, %v1426_v48  ;;  %v1484_v9 = vmul.f32 %v2833_v52, %v1426_v48  ;;  %v1455_v48 = vmul.f32 %v2836_v53, %v4324_v3  ;;  %v1581_v13 = vadd.f32 %v1491_v43, %v1467_v32  ;;  %v3055_v42 = vld [vmem:[%s5358_s7 + $0x10] sm:$0xff]  ;;  %v3062_v53 = vld [vmem:[%s5384_s27 + $0x20] sm:$0xff] }
 0x414   :  { %v1352_v36 = vpop.f32.mrf.mxu0  ;;  %v1580_v52 = vadd.f32 %v1490_v38, %v1466_v37 }
 0x415   :  { %v1411_v7 = vsub.f32 %v1311_v57, %v1352_v36  ;;  %v1468_v14 = vsub.f32 %v1452_v34, %v1460_v8  ;;  %v1492_v17 = vadd.f32 %v1484_v9, %v1476_v35  ;;  %v1463_v8 = vsub.f32 %v1447_v6, %v1455_v48  ;;  %v3037_v34 = vld [vmem:[%s5384_s27 + $0x68] sm:$0xff]  ;;  %v3038_v35 = vld [vmem:[%s5360_s12 + $0x60] sm:$0xff]  ;;  %v3067_v48 = vld [vmem:[%s5360_s12 + $0x10] sm:$0xff] }
 0x416   :  { %v1401_v58 = vpop.f32.mrf.mxu1  ;;  %v3078_v6 = vld [vmem:[%s5351_s8 + $0x68] sm:$0xff] }
 0x417   :  { %v1419_v0 = vsub.f32 %v1401_v58, %v1311_v57  ;;  %v1453_v12 = vmul.f32 %v2834_v44, %v1411_v7  ;;  %v1477_v26 = vmul.f32 %v2842_v27, %v1411_v7  ;;  %v1473_v57 = vmul.f32 %v2838_v30, %v1407_v5  ;;  %v3044_v30 = vld [vmem:[%s5358_s7 + $0x8] sm:$0xff] }
 0x418   :  { %v1479_v58 = vmul.f32 %v2828_v31, %v4324_v3  ;;  %v1448_v7 = vmul.f32 %v2829_v24, %v4326_v10  ;;  %v1454_v3 = vmul.f32 %v2835_v59, %v4320_v54  ;;  %v3052_v24 = vld [vmem:[%s5357_s6 + $0x10] sm:$0xff]  ;;  %v3061_v31 = vld [vmem:[%s5356_s5 + $0x18] sm:$0xff]  ;;  %v3071_v59 = vld [vmem:[%s5360_s12] sm:$0xff] }
 0x419   :  { %v1427_v19 = vsub.f32 %v1419_v0, %v1352_v36  ;;  %v1582_v36 = vadd.f32 %v1492_v17, %v1468_v14  ;;  %v2827_v0 = vld [vmem:[%s5354_s14 + $0x40] sm:$0xff] }
 0x41a   :  { %v1478_v5 = vmul.f32 %v2827_v0, %v4320_v54  ;;  %v1464_v22 = vsub.f32 %v1448_v7, %v1456_v40  ;;  %v1446_v10 = vmul.f32 %v2827_v0, %v4318_v51  ;;  %v1487_v54 = vadd.f32 %v1479_v58, %v1471_v60  ;;  %v3029_v51 = vld [vmem:[%s5356_s5] sm:$0xff]  ;;  %v3058_v40 = vld [vmem:[%s5360_s12 + $0x28] sm:$0xff]  ;;  %v3068_v58 = vld [vmem:[%s5384_s27 + $0x10] sm:$0xff] }
 0x41b   :  { %v1461_v41 = vmul.f32 %v2842_v27, %v1427_v19  ;;  %v1485_v15 = vmul.f32 %v2834_v44, %v1427_v19  ;;  %v1465_v44 = vsub.f32 %v1449_v49, %v1457_v33  ;;  %v1489_v27 = vadd.f32 %v1481_v20, %v1473_v57  ;;  %v3049_v33 = vld [vmem:[%s5360_s12 + $0x40] sm:$0xff]  ;;  %v3050_v20 = vld [vmem:[%s5356_s5 + $0x10] sm:$0xff]  ;;  %v3063_v57 = vld [vmem:[%s5357_s6 + $0x18] sm:$0xff] }
 0x41c   :  { %v1488_v19 = vadd.f32 %v1480_v47, %v1472_v63  ;;  %v1462_v39 = vsub.f32 %v1446_v10, %v1454_v3  ;;  %v1486_v61 = vadd.f32 %v1478_v5, %v1470_v62  ;;  %v1577_v23 = vadd.f32 %v1487_v54, %v1463_v8  ;;  %v3059_v47 = vld [vmem:[%s5384_s27 + $0x28] sm:$0xff]  ;;  %v3060_v49 = vld [vmem:[%s5360_s12 + $0x20] sm:$0xff]  ;;  %v3077_v5 = vld [vmem:[%s5351_s8 + $0x70] sm:$0xff] }
 0x41d   :  { %v1469_v55 = vsub.f32 %v1453_v12, %v1461_v41  ;;  %v1493_v56 = vadd.f32 %v1485_v15, %v1477_v26  ;;  %v1579_v1 = vadd.f32 %v1489_v27, %v1465_v44  ;;  %v3030_v26 = vld [vmem:[%s5357_s6] sm:$0xff]  ;;  %v3031_v41 = vld [vmem:[%s5360_s12 + $0x78] sm:$0xff]  ;;  %v3069_v7 = vld [vmem:[%s5360_s12 + $0x8] sm:$0xff] }
 0x41e   :  { %v1578_v9 = vadd.f32 %v1488_v19, %v1464_v22  ;;  %v1576_v12 = vadd.f32 %v1486_v61, %v1462_v39  ;;  %v3032_v15 = vld [vmem:[%s5384_s27 + $0x78] sm:$0xff]  ;;  %v3070_v0 = vld [vmem:[%s5384_s27 + $0x8] sm:$0xff]  ;;  %v3072_v63 = vld [vmem:[%s5356_s5 + $0x20] sm:$0xff] }
 0x41f   :  { %1502 = vmatpush.msra.mxu2 %v1469_v55  ;;  %1543 = vmatpush.msra.mxu3 %v1493_v56  ;;  %v1583_v25 = vadd.f32 %v1493_v56, %v1469_v55  ;;  %v3041_v55 = vld [vmem:[%s5357_s6 + $0x8] sm:$0xff]  ;;  %v3042_v56 = vld [vmem:[%s5360_s12 + $0x58] sm:$0xff]  ;;  %v3076_v3 = vld [vmem:[%s5358_s7 + $0x20] sm:$0xff] }
 0x420   :  { %v3079_v60 = vld [vmem:[%s5356_s5 + $0x28] sm:$0xff]  ;;  %v3084_v62 = vld [vmem:[%s5351_s8 + $0x50] sm:$0xff] }
 0x421   :  { %1503 = vmatpush.msra.mxu2 %v1468_v14  ;;  %1544 = vmatpush.msra.mxu3 %v1492_v17  ;;  %v3047_v14 = vld [vmem:[%s5360_s12 + $0x48] sm:$0xff] }
 0x422   :  { %1592 = vmatpush.msrb.mxu0 %v1583_v25  ;;  %v3048_v17 = vld [vmem:[%s5384_s27 + $0x48] sm:$0xff]  ;;  %v3051_v25 = vld [vmem:[%s5384_s27 + $0x40] sm:$0xff] }
 0x423   :  { %1504 = vmatpush.msra.mxu2 %v1467_v32  ;;  %1545 = vmatpush.msra.mxu3 %v1491_v43  ;;  %v3056_v32 = vld [vmem:[%s5360_s12 + $0x30] sm:$0xff]  ;;  %v3083_v10 = vld [vmem:[%s5358_s7 + $0x28] sm:$0xff] }
 0x424   :  { %1593 = vmatpush.msrb.mxu0 %v1582_v36  ;;  %v3057_v43 = vld [vmem:[%s5384_s27 + $0x30] sm:$0xff]  ;;  %v3064_v36 = vld [vmem:[%s5360_s12 + $0x18] sm:$0xff] }
 0x425   :  { %1505 = vmatpush.msra.mxu2 %v1466_v37  ;;  %1546 = vmatpush.msra.mxu3 %v1490_v38  ;;  %v3065_v37 = vld [vmem:[%s5384_s27 + $0x18] sm:$0xff] }
 0x426   :  { %1594 = vmatpush.msrb.mxu0 %v1581_v13  ;;  %v3066_v38 = vld [vmem:[%s5358_s7 + $0x18] sm:$0xff]  ;;  %v3073_v13 = vld [vmem:[%s5384_s27] sm:$0xff] }
 0x427   :  { %1506 = vmatpush.msra.mxu2 %v1465_v44  ;;  %1547 = vmatpush.msra.mxu3 %v1489_v27  ;;  %v3074_v44 = vld [vmem:[%s5357_s6 + $0x20] sm:$0xff]  ;;  %v3075_v27 = vld [vmem:[%s5351_s8 + $0x78] sm:$0xff] }
 0x428   :  { %1595 = vmatpush.msrb.mxu0 %v1580_v52  ;;  %v3080_v52 = vld [vmem:[%s5351_s8 + $0x60] sm:$0xff] }
 0x429   :  { %1507 = vmatpush.msra.mxu2 %v1464_v22  ;;  %1548 = vmatpush.msra.mxu3 %v1488_v19  ;;  %v3081_v22 = vld [vmem:[%s5357_s6 + $0x28] sm:$0xff]  ;;  %v3082_v19 = vld [vmem:[%s5351_s8 + $0x58] sm:$0xff] }
 0x42a   :  { %1596 = vmatpush.msrb.mxu0 %v1579_v1  ;;  %v3085_v1 = vld [vmem:[%s5351_s8 + $0x48] sm:$0xff] }
 0x42b   :  { %1508 = vmatpush.msra.mxu2 %v1463_v8  ;;  %1549 = vmatpush.msra.mxu3 %v1487_v54  ;;  %v3086_v8 = vld [vmem:[%s5356_s5 + $0x30] sm:$0xff]  ;;  %v3087_v54 = vld [vmem:[%s5351_s8 + $0x40] sm:$0xff] }
 0x42c   :  { %1597 = vmatpush.msrb.mxu0 %v1578_v9  ;;  %v3088_v9 = vld [vmem:[%s5357_s6 + $0x30] sm:$0xff] }
 0x42d   :  { %1509 = vmatpush.msra.mxu2 %v1462_v39  ;;  %1550 = vmatpush.msra.mxu3 %v1486_v61  ;;  %v3089_v39 = vld [vmem:[%s5351_s8 + $0x38] sm:$0xff]  ;;  %v3090_v61 = vld [vmem:[%s5358_s7 + $0x30] sm:$0xff] }
 0x42e   :  { %1598 = vmatpush.msrb.mxu0 %v1577_v23  ;;  %2843 = vmatmul.msk.f32.vlgmr.msra.gmra.mxu2 %vm89_vm0, %v3029_v51  ;;  %v3091_v23 = vld [vmem:[%s5351_s8 + $0x30] sm:$0xff]  ;;  %v3092_v51 = vld [vmem:[%s5351_s8 + $0x28] sm:$0xff] }
 0x42f   :  { %2851 = vmatmul.msk.f32.vlgmr.msra.gmra.mxu3 %vm89_vm0, %v3030_v26  ;;  %1690 = vmatpush.msrb.mxu2 %v3031_v41  ;;  %v3094_v26 = vld [vmem:[%s5351_s8 + $0x20] sm:$0xff]  ;;  %v3095_v41 = vld [vmem:[%s5357_s6 + $0x38] sm:$0xff] }
 0x430   :  { %1599 = vmatpush.msrb.mxu0 %v1576_v12  ;;  %1739 = vmatpush.msrb.mxu3 %v3032_v15  ;;  %v3093_v12 = vld [vmem:[%s5356_s5 + $0x38] sm:$0xff] }
 0x431   :  { %2859 = vmatmul.msk.f32.vlgmr.msrb.gmra.mxu0 %vm89_vm0, %v3033_v21  ;;  %1691 = vmatpush.msrb.mxu2 %v3034_v46  ;;  %v3096_v15 = vld [vmem:[%s5351_s8 + $0x18] sm:$0xff]  ;;  %v3098_v46 = vld [vmem:[%s5351_s8 + $0x10] sm:$0xff] }
 0x432   :  { %1740 = vmatpush.msrb.mxu3 %v3035_v16  ;;  %v3097_v21 = vld [vmem:[%s5358_s7 + $0x38] sm:$0xff]  ;;  %v3099_v16 = vld [vmem:[%s5351_s8 + $0x8] sm:$0xff] }
 0x433   :  { %1692 = vmatpush.msrb.mxu2 %v3036_v18  ;;  %v3100_v18 = vld [vmem:[%s5351_s8] sm:$0xff] }
 0x434   :  { %1741 = vmatpush.msrb.mxu3 %v3037_v34 }
 0x435   :  { %1693 = vmatpush.msrb.mxu2 %v3038_v35 }
 0x436   :  { %2844 = vmatmul.msk.f32.gmra.mxu2 %vm89_vm0, %v3039_v45  ;;  %1742 = vmatpush.msrb.mxu3 %v3040_v50 }
 0x437   :  { %2852 = vmatmul.msk.f32.gmra.mxu3 %vm89_vm0, %v3041_v55  ;;  %1694 = vmatpush.msrb.mxu2 %v3042_v56 }
 0x438   :  { %1743 = vmatpush.msrb.mxu3 %v3043_v4 }
 0x439   :  { %2860 = vmatmul.msk.f32.gmra.mxu0 %vm89_vm0, %v3044_v30  ;;  %1695 = vmatpush.msrb.mxu2 %v3045_v2 }
 0x43a   :  { %1744 = vmatpush.msrb.mxu3 %v3046_v11 }
 0x43b   :  { %1696 = vmatpush.msrb.mxu2 %v3047_v14 }
 0x43c   :  { %1745 = vmatpush.msrb.mxu3 %v3048_v17 }
 0x43d   :  { %1697 = vmatpush.msrb.mxu2 %v3049_v33 }
 0x43e   :  { %2845 = vmatmul.msk.f32.gmra.mxu2 %vm89_vm0, %v3050_v20  ;;  %1746 = vmatpush.msrb.mxu3 %v3051_v25 }
 0x43f   :  { %2853 = vmatmul.msk.f32.gmra.mxu3 %vm89_vm0, %v3052_v24  ;;  %1698 = vmatpush.msrb.mxu2 %v3053_v28 }
 0x440   :  { %1747 = vmatpush.msrb.mxu3 %v3054_v29 }
 0x441   :  { %2861 = vmatmul.msk.f32.gmra.mxu0 %vm89_vm0, %v3055_v42  ;;  %1699 = vmatpush.msrb.mxu2 %v3056_v32 }
 0x442   :  { %1748 = vmatpush.msrb.mxu3 %v3057_v43 }
 0x443   :  { %1700 = vmatpush.msrb.mxu2 %v3058_v40 }
 0x444   :  { %1749 = vmatpush.msrb.mxu3 %v3059_v47 }
 0x445   :  { %1701 = vmatpush.msrb.mxu2 %v3060_v49 }
 0x446   :  { %2846 = vmatmul.msk.f32.gmra.mxu2 %vm89_vm0, %v3061_v31  ;;  %1750 = vmatpush.msrb.mxu3 %v3062_v53 }
 0x447   :  { %2854 = vmatmul.msk.f32.gmra.mxu3 %vm89_vm0, %v3063_v57  ;;  %1702 = vmatpush.msrb.mxu2 %v3064_v36 }
 0x448   :  { %1751 = vmatpush.msrb.mxu3 %v3065_v37 }
 0x449   :  { %2862 = vmatmul.msk.f32.gmra.mxu0 %vm89_vm0, %v3066_v38  ;;  %1703 = vmatpush.msrb.mxu2 %v3067_v48 }
 0x44a   :  { %1752 = vmatpush.msrb.mxu3 %v3068_v58 }
 0x44b   :  { %1704 = vmatpush.msrb.mxu2 %v3069_v7 }
 0x44c   :  { %1753 = vmatpush.msrb.mxu3 %v3070_v0 }
 0x44d   :  { %1705 = vmatpush.msrb.mxu2 %v3071_v59 }
 0x44e   :  { %2847 = vmatmul.msk.f32.gmra.mxu2 %vm89_vm0, %v3072_v63  ;;  %1754 = vmatpush.msrb.mxu3 %v3073_v13 }
 0x44f   :  { %2855 = vmatmul.msk.f32.gmra.mxu3 %vm89_vm0, %v3074_v44 }
 0x450   :  { %2025 = vmatpush.msra.mxu3 %v3075_v27 }
 0x451   :  { %2863 = vmatmul.msk.f32.gmra.mxu0 %vm89_vm0, %v3076_v3 }
 0x452   :  { %2026 = vmatpush.msra.mxu3 %v3077_v5 }
 0x454   :  { %2027 = vmatpush.msra.mxu3 %v3078_v6 }
 0x456   :  { %2848 = vmatmul.msk.f32.gmra.mxu2 %vm89_vm0, %v3079_v60  ;;  %2028 = vmatpush.msra.mxu3 %v3080_v52 }
 0x457   :  { %2856 = vmatmul.msk.f32.gmra.mxu3 %vm89_vm0, %v3081_v22 }
 0x458   :  { %2029 = vmatpush.msra.mxu3 %v3082_v19 }
 0x459   :  { %2864 = vmatmul.msk.f32.gmra.mxu0 %vm89_vm0, %v3083_v10 }
 0x45a   :  { %2030 = vmatpush.msra.mxu3 %v3084_v62 }
 0x45c   :  { %2031 = vmatpush.msra.mxu3 %v3085_v1 }
 0x45e   :  { %2849 = vmatmul.msk.f32.gmra.mxu2 %vm89_vm0, %v3086_v8  ;;  %2032 = vmatpush.msra.mxu3 %v3087_v54 }
 0x45f   :  { %2857 = vmatmul.msk.f32.gmra.mxu3 %vm89_vm0, %v3088_v9 }
 0x460   :  { %2033 = vmatpush.msra.mxu3 %v3089_v39 }
 0x461   :  { %2865 = vmatmul.msk.f32.gmra.mxu0 %vm89_vm0, %v3090_v61 }
 0x462   :  { %2034 = vmatpush.msra.mxu3 %v3091_v23 }
 0x464   :  { %2035 = vmatpush.msra.mxu3 %v3092_v51 }
 0x466   :  { %2850 = vmatmul.msk.f32.gmra.mxu2 %vm89_vm0, %v3093_v12  ;;  %2036 = vmatpush.msra.mxu3 %v3094_v26 }
 0x467   :  { %2858 = vmatmul.msk.f32.gmra.mxu3 %vm89_vm0, %v3095_v41 }
 0x468   :  { %2037 = vmatpush.msra.mxu3 %v3096_v15 }
 0x469   :  { %2866 = vmatmul.msk.f32.gmra.mxu0 %vm89_vm0, %v3097_v21 }
 0x46a   :  { %2038 = vmatpush.msra.mxu3 %v3098_v46 }
 0x46c   :  { %2039 = vmatpush.msra.mxu3 %v3099_v16 }
 0x46e   :  { %2040 = vmatpush.msra.mxu3 %v3100_v18 }
 0x4ae   :  { %v1601_v34 = vpop.f32.mrf.mxu0 }
 0x4b1   :  { %v1511_v35 = vpop.f32.mrf.mxu2 }
 0x4b2   :  { %v1552_v45 = vpop.f32.mrf.mxu3  ;;  %v1633_v50 = vsub.f32 %v1601_v34, %v1511_v35 }
 0x4b3   :  { %v1625_v55 = vsub.f32 %v1511_v35, %v1552_v45 }
 0x4b4   :  { %v1641_v56 = vsub.f32 %v1633_v50, %v1552_v45 }
 0x4b5   :  { %1665 = vmatmul.f32.vlgmr.msrb.gmra.mxu1 %v1625_v55 }
 0x4b6   :  { %v1731_v4 = vadd.f32 %v1641_v56, %v1625_v55  ;;  %1706 = vmatmul.f32.vlgmr.msrb.gmra.mxu2 %v1641_v56  ;;  %v1604_v30 = vpop.f32.mrf.mxu0 }
 0x4b8   :  { %1755 = vmatmul.f32.vlgmr.msrb.gmra.mxu3 %v1731_v4 }
 0x4b9   :  { %v1514_v2 = vpop.f32.mrf.mxu2 }
 0x4ba   :  { %v1555_v11 = vpop.f32.mrf.mxu3  ;;  %v1634_v14 = vsub.f32 %v1604_v30, %v1514_v2 }
 0x4bb   :  { %v1626_v17 = vsub.f32 %v1514_v2, %v1555_v11 }
 0x4bc   :  { %v1642_v33 = vsub.f32 %v1634_v14, %v1555_v11 }
 0x4bd   :  { %1668 = vmatmul.f32.gmra.mxu1 %v1626_v17 }
 0x4be   :  { %1709 = vmatmul.f32.gmra.mxu2 %v1642_v33  ;;  %v1732_v20 = vadd.f32 %v1642_v33, %v1626_v17  ;;  %v1607_v25 = vpop.f32.mrf.mxu0 }
 0x4c0   :  { %1758 = vmatmul.f32.gmra.mxu3 %v1732_v20 }
 0x4c1   :  { %v1517_v24 = vpop.f32.mrf.mxu2 }
 0x4c2   :  { %v1558_v28 = vpop.f32.mrf.mxu3  ;;  %v1635_v29 = vsub.f32 %v1607_v25, %v1517_v24 }
 0x4c3   :  { %v1627_v42 = vsub.f32 %v1517_v24, %v1558_v28 }
 0x4c4   :  { %v1643_v32 = vsub.f32 %v1635_v29, %v1558_v28 }
 0x4c5   :  { %1671 = vmatmul.f32.gmra.mxu1 %v1627_v42 }
 0x4c6   :  { %1712 = vmatmul.f32.gmra.mxu2 %v1643_v32  ;;  %v1733_v43 = vadd.f32 %v1643_v32, %v1627_v42  ;;  %v1610_v40 = vpop.f32.mrf.mxu0 }
 0x4c8   :  { %1761 = vmatmul.f32.gmra.mxu3 %v1733_v43 }
 0x4c9   :  { %v1520_v47 = vpop.f32.mrf.mxu2 }
 0x4ca   :  { %v1561_v49 = vpop.f32.mrf.mxu3  ;;  %v1636_v31 = vsub.f32 %v1610_v40, %v1520_v47 }
 0x4cb   :  { %v1628_v53 = vsub.f32 %v1520_v47, %v1561_v49 }
 0x4cc   :  { %v1644_v57 = vsub.f32 %v1636_v31, %v1561_v49 }
 0x4cd   :  { %1674 = vmatmul.f32.gmra.mxu1 %v1628_v53 }
 0x4ce   :  { %1715 = vmatmul.f32.gmra.mxu2 %v1644_v57  ;;  %v1734_v36 = vadd.f32 %v1644_v57, %v1628_v53  ;;  %v1613_v37 = vpop.f32.mrf.mxu0 }
 0x4d0   :  { %1764 = vmatmul.f32.gmra.mxu3 %v1734_v36 }
 0x4d1   :  { %v1523_v38 = vpop.f32.mrf.mxu2 }
 0x4d2   :  { %v1564_v48 = vpop.f32.mrf.mxu3  ;;  %v1637_v58 = vsub.f32 %v1613_v37, %v1523_v38 }
 0x4d3   :  { %v1629_v7 = vsub.f32 %v1523_v38, %v1564_v48 }
 0x4d4   :  { %v1645_v0 = vsub.f32 %v1637_v58, %v1564_v48 }
 0x4d5   :  { %1677 = vmatmul.f32.gmra.mxu1 %v1629_v7 }
 0x4d6   :  { %1718 = vmatmul.f32.gmra.mxu2 %v1645_v0  ;;  %v1735_v59 = vadd.f32 %v1645_v0, %v1629_v7  ;;  %v1616_v63 = vpop.f32.mrf.mxu0 }
 0x4d8   :  { %1767 = vmatmul.f32.gmra.mxu3 %v1735_v59  ;;  %v2874_v59 = vld [vmem:[%s5362_s16 + $0x78] sm:$0xff] }
 0x4d9   :  { %v1526_v13 = vpop.f32.mrf.mxu2 }
 0x4da   :  { %v1567_v44 = vpop.f32.mrf.mxu3  ;;  %v1638_v27 = vsub.f32 %v1616_v63, %v1526_v13  ;;  %v2882_v63 = vld [vmem:[%s5363_s17 + $0x78] sm:$0xff] }
 0x4db   :  { %v1630_v3 = vsub.f32 %v1526_v13, %v1567_v44 }
 0x4dc   :  { %v1646_v5 = vsub.f32 %v1638_v27, %v1567_v44 }
 0x4dd   :  { %1680 = vmatmul.f32.gmra.mxu1 %v1630_v3 }
 0x4de   :  { %1721 = vmatmul.f32.gmra.mxu2 %v1646_v5  ;;  %v1736_v6 = vadd.f32 %v1646_v5, %v1630_v3  ;;  %v1619_v60 = vpop.f32.mrf.mxu0  ;;  %v2873_v3 = vld [vmem:[%s5362_s16 + $0x70] sm:$0xff] }
 0x4df   :  { %v2881_v5 = vld [vmem:[%s5363_s17 + $0x70] sm:$0xff] }
 0x4e0   :  { %1770 = vmatmul.f32.gmra.mxu3 %v1736_v6 }
 0x4e1   :  { %v1529_v52 = vpop.f32.mrf.mxu2 }
 0x4e2   :  { %v1570_v22 = vpop.f32.mrf.mxu3  ;;  %v1639_v19 = vsub.f32 %v1619_v60, %v1529_v52 }
 0x4e3   :  { %v1631_v10 = vsub.f32 %v1529_v52, %v1570_v22 }
 0x4e4   :  { %v1647_v62 = vsub.f32 %v1639_v19, %v1570_v22 }
 0x4e5   :  { %1683 = vmatmul.f32.gmra.mxu1 %v1631_v10 }
 0x4e6   :  { %1724 = vmatmul.f32.gmra.mxu2 %v1647_v62  ;;  %v1737_v1 = vadd.f32 %v1647_v62, %v1631_v10  ;;  %v1622_v8 = vpop.f32.mrf.mxu0  ;;  %v2872_v10 = vld [vmem:[%s5362_s16 + $0x68] sm:$0xff] }
 0x4e7   :  { %v2880_v62 = vld [vmem:[%s5363_s17 + $0x68] sm:$0xff] }
 0x4e8   :  { %1773 = vmatmul.f32.gmra.mxu3 %v1737_v1 }
 0x4e9   :  { %v1532_v54 = vpop.f32.mrf.mxu2 }
 0x4ea   :  { %v1573_v9 = vpop.f32.mrf.mxu3  ;;  %v1640_v39 = vsub.f32 %v1622_v8, %v1532_v54 }
 0x4eb   :  { %v1632_v61 = vsub.f32 %v1532_v54, %v1573_v9 }
 0x4ec   :  { %v1648_v23 = vsub.f32 %v1640_v39, %v1573_v9  ;;  %v2871_v39 = vld [vmem:[%s5362_s16 + $0x60] sm:$0xff] }
 0x4ed   :  { %1686 = vmatmul.f32.gmra.mxu1 %v1632_v61 }
 0x4ee   :  { %1727 = vmatmul.f32.gmra.mxu2 %v1648_v23  ;;  %v1738_v51 = vadd.f32 %v1648_v23, %v1632_v61  ;;  %v2879_v61 = vld [vmem:[%s5363_s17 + $0x60] sm:$0xff] }
 0x4f0   :  { %1776 = vmatmul.f32.gmra.mxu3 %v1738_v51 }
 0x532   :  { %v1666_v12 = vpop.f32.mrf.mxu1 }
 0x539   :  { %v1707_v26 = vpop.f32.mrf.mxu2 }
 0x53a   :  { %v1669_v41 = vpop.f32.mrf.mxu1  ;;  %v4626_v40 = vsub.f32 %v1666_v12, %v1707_v26 }
 0x53b   :  { %v1756_v15 = vpop.f32.mrf.mxu3 }
 0x53c   :  { %v1788_v20 = vsub.f32 %v1756_v15, %v1666_v12 }
 0x53e   :  { %v4628_v47 = vsub.f32 %v1788_v20, %v1707_v26 }
 0x541   :  { %v1710_v21 = vpop.f32.mrf.mxu2 }
 0x542   :  { %v1672_v46 = vpop.f32.mrf.mxu1  ;;  %v4630_v57 = vsub.f32 %v1669_v41, %v1710_v21 }
 0x543   :  { %v1759_v16 = vpop.f32.mrf.mxu3 }
 0x544   :  { %v1789_v24 = vsub.f32 %v1759_v16, %v1669_v41  ;;  %v2870_v16 = vld [vmem:[%s5362_s16 + $0x58] sm:$0xff] }
 0x546   :  { %v4632_v36 = vsub.f32 %v1789_v24, %v1710_v21 }
 0x549   :  { %v1713_v18 = vpop.f32.mrf.mxu2 }
 0x54a   :  { %v1675_v34 = vpop.f32.mrf.mxu1  ;;  %v4634_v48 = vsub.f32 %v1672_v46, %v1713_v18 }
 0x54b   :  { %v1762_v35 = vpop.f32.mrf.mxu3 }
 0x54c   :  { %v1790_v28 = vsub.f32 %v1762_v35, %v1672_v46 }
 0x54e   :  { %v1798_v58 = vsub.f32 %v1790_v28, %v1713_v18  ;;  %v2878_v18 = vld [vmem:[%s5363_s17 + $0x58] sm:$0xff]  ;;  %v2868_v28 = vld [vmem:[%s5362_s16 + $0x48] sm:$0xff] }
 0x551   :  { %v1716_v45 = vpop.f32.mrf.mxu2 }
 0x552   :  { %v1678_v55 = vpop.f32.mrf.mxu1  ;;  %v1783_v13 = vsub.f32 %v1675_v34, %v1716_v45 }
 0x553   :  { %v1765_v50 = vpop.f32.mrf.mxu3 }
 0x554   :  { %v1791_v32 = vsub.f32 %v1765_v50, %v1675_v34  ;;  %v1825_v24 = vmul.f32 %v2870_v16, %v1783_v13 }
 0x556   :  { %v1799_v44 = vsub.f32 %v1791_v32, %v1716_v45 }
 0x559   :  { %v1719_v56 = vpop.f32.mrf.mxu2 }
 0x55a   :  { %v1681_v30 = vpop.f32.mrf.mxu1  ;;  %v1784_v60 = vsub.f32 %v1678_v55, %v1719_v56 }
 0x55b   :  { %v1768_v4 = vpop.f32.mrf.mxu3 }
 0x55c   :  { %v1792_v43 = vsub.f32 %v1768_v4, %v1678_v55  ;;  %v1833_v55 = vmul.f32 %v2878_v18, %v1799_v44 }
 0x55e   :  { %v1800_v27 = vsub.f32 %v1792_v43, %v1719_v56  ;;  %v1857_v56 = vmul.f32 %v2870_v16, %v1799_v44  ;;  %v1823_v44 = vmul.f32 %v2868_v28, %v4630_v57  ;;  %v3115_v16 = vld [vmem:[%s5353_s10 + $0x58] sm:$0xff] }
 0x560   :  { %v1834_v41 = vmul.f32 %v2879_v61, %v1800_v27  ;;  %v1858_v15 = vmul.f32 %v2871_v39, %v1800_v27 }
 0x561   :  { %v1722_v2 = vpop.f32.mrf.mxu2 }
 0x562   :  { %v1684_v14 = vpop.f32.mrf.mxu1  ;;  %v1785_v52 = vsub.f32 %v1681_v30, %v1722_v2 }
 0x563   :  { %v1771_v11 = vpop.f32.mrf.mxu3 }
 0x564   :  { %v1793_v29 = vsub.f32 %v1771_v11, %v1681_v30  ;;  %v1827_v34 = vmul.f32 %v2872_v10, %v1785_v52  ;;  %v1851_v35 = vmul.f32 %v2880_v62, %v1785_v52  ;;  %v2869_v30 = vld [vmem:[%s5362_s16 + $0x50] sm:$0xff]  ;;  %v1826_v11 = vmul.f32 %v2871_v39, %v1784_v60  ;;  %v3105_v39 = vld [vmem:[%s5383_s29] sm:$0xff] }
 0x566   :  { %v1801_v7 = vsub.f32 %v1793_v29, %v1722_v2  ;;  %v2877_v2 = vld [vmem:[%s5363_s17 + $0x50] sm:$0xff]  ;;  %v2876_v29 = vld [vmem:[%s5363_s17 + $0x48] sm:$0xff]  ;;  %v1842_v43 = vsub.f32 %v1826_v11, %v1834_v41  ;;  %v3126_v11 = vld [vmem:[%s5353_s10 + $0x38] sm:$0xff] }
 0x567   :  { %v1832_v20 = vmul.f32 %v2877_v2, %v1798_v58  ;;  %v1847_v27 = vmul.f32 %v2876_v29, %v4630_v57  ;;  %v3111_v41 = vld [vmem:[%s5381_s26 + $0x8] sm:$0xff] }
 0x568   :  { %v1835_v23 = vmul.f32 %v2880_v62, %v1801_v7  ;;  %v1859_v51 = vmul.f32 %v2872_v10, %v1801_v7  ;;  %v1848_v7 = vmul.f32 %v2877_v2, %v4634_v48  ;;  %v3125_v2 = vld [vmem:[%s5352_s9 + $0x38] sm:$0xff] }
 0x569   :  { %v1725_v17 = vpop.f32.mrf.mxu2 }
 0x56a   :  { %v1687_v49 = vpop.f32.mrf.mxu1  ;;  %v1786_v0 = vsub.f32 %v1684_v14, %v1725_v17 }
 0x56b   :  { %v1774_v33 = vpop.f32.mrf.mxu3 }
 0x56c   :  { %v1794_v25 = vsub.f32 %v1774_v33, %v1684_v14  ;;  %v1828_v12 = vmul.f32 %v2873_v3, %v1786_v0  ;;  %v1852_v26 = vmul.f32 %v2881_v5, %v1786_v0  ;;  %v1850_v14 = vmul.f32 %v2879_v61, %v1784_v60  ;;  %v3106_v61 = vld [vmem:[%s5352_s9 + $0x70] sm:$0xff] }
 0x56d   :  { %v1867_v33 = vadd.f32 %v1859_v51, %v1851_v35  ;;  %v3108_v51 = vld [vmem:[%s5352_s9 + $0x68] sm:$0xff]  ;;  %v3118_v35 = vld [vmem:[%s5353_s10 + $0x50] sm:$0xff] }
 0x56e   :  { %v1802_v31 = vsub.f32 %v1794_v25, %v1725_v17  ;;  %v1843_v17 = vsub.f32 %v1827_v34, %v1835_v23  ;;  %v1856_v25 = vmul.f32 %v2869_v30, %v1798_v58  ;;  %v2875_v58 = vld [vmem:[%s5363_s17 + $0x40] sm:$0xff]  ;;  %v3107_v23 = vld [vmem:[%s5353_s10 + $0x70] sm:$0xff] }
 0x56f   :  { %v1846_v60 = vmul.f32 %v2875_v58, %v4626_v40  ;;  %v3117_v34 = vld [vmem:[%s5352_s9 + $0x50] sm:$0xff] }
 0x570   :  { %v1836_v22 = vmul.f32 %v2881_v5, %v1802_v31  ;;  %v1860_v19 = vmul.f32 %v2873_v3, %v1802_v31  ;;  %v1831_v31 = vmul.f32 %v2876_v29, %v4632_v36  ;;  %v1957_v0 = vadd.f32 %v1867_v33, %v1843_v17  ;;  %v3134_v29 = vld [vmem:[%s5353_s10 + $0x20] sm:$0xff] }
 0x571   :  { %v1728_v42 = vpop.f32.mrf.mxu2 }
 0x572   :  { %v1787_v37 = vsub.f32 %v1687_v49, %v1728_v42  ;;  %v1844_v45 = vsub.f32 %v1828_v12, %v1836_v22  ;;  %v1868_v50 = vadd.f32 %v1860_v19, %v1852_v26  ;;  %v1839_v22 = vsub.f32 %v1823_v44, %v1831_v31  ;;  %v3109_v12 = vld [vmem:[%s5353_s10 + $0x68] sm:$0xff]  ;;  %v3110_v26 = vld [vmem:[%s5352_s9 + $0x60] sm:$0xff]  ;;  %v3139_v31 = vld [vmem:[%s5352_s9 + $0x10] sm:$0xff] }
 0x573   :  { %v1777_v53 = vpop.f32.mrf.mxu3  ;;  %v3150_v44 = vld [vmem:[%s5359_s11 + $0x68] sm:$0xff] }
 0x574   :  { %v1795_v38 = vsub.f32 %v1777_v53, %v1687_v49  ;;  %v1829_v1 = vmul.f32 %v2874_v59, %v1787_v37  ;;  %v1853_v8 = vmul.f32 %v2882_v63, %v1787_v37  ;;  %v1958_v32 = vadd.f32 %v1868_v50, %v1844_v45 }
 0x575   :  { %v1866_v49 = vadd.f32 %v1858_v15, %v1850_v14  ;;  %v1855_v53 = vmul.f32 %v2868_v28, %v4632_v36  ;;  %v1824_v37 = vmul.f32 %v2869_v30, %v4634_v48  ;;  %v1830_v36 = vmul.f32 %v2875_v58, %v4628_v47  ;;  %v3112_v15 = vld [vmem:[%s5353_s10 + $0x60] sm:$0xff]  ;;  %v3124_v30 = vld [vmem:[%s5382_s4 + $0x10] sm:$0xff]  ;;  %v3133_v28 = vld [vmem:[%s5381_s26 + $0x18] sm:$0xff] }
 0x576   :  { %v1803_v6 = vsub.f32 %v1795_v38, %v1728_v42  ;;  %v1849_v42 = vmul.f32 %v2878_v18, %v1783_v13  ;;  %v2867_v38 = vld [vmem:[%s5362_s16 + $0x40] sm:$0xff]  ;;  %v3116_v18 = vld [vmem:[%s5383_s29 + $0x8] sm:$0xff]  ;;  %v3127_v14 = vld [vmem:[%s5383_s29 + $0x10] sm:$0xff] }
 0x577   :  { %v1854_v13 = vmul.f32 %v2867_v38, %v4628_v47  ;;  %v1956_v3 = vadd.f32 %v1866_v49, %v1842_v43  ;;  %v1840_v5 = vsub.f32 %v1824_v37, %v1832_v20  ;;  %v1822_v48 = vmul.f32 %v2867_v38, %v4626_v40  ;;  %v3101_v40 = vld [vmem:[%s5381_s26] sm:$0xff]  ;;  %v3130_v20 = vld [vmem:[%s5352_s9 + $0x28] sm:$0xff] }
 0x578   :  { %v1837_v54 = vmul.f32 %v2882_v63, %v1803_v6  ;;  %v1861_v9 = vmul.f32 %v2874_v59, %v1803_v6  ;;  %v1841_v59 = vsub.f32 %v1825_v24, %v1833_v55  ;;  %v1865_v63 = vadd.f32 %v1857_v56, %v1849_v42  ;;  %v3121_v55 = vld [vmem:[%s5352_s9 + $0x40] sm:$0xff]  ;;  %v3122_v56 = vld [vmem:[%s5381_s26 + $0x10] sm:$0xff]  ;;  %v3135_v42 = vld [vmem:[%s5382_s4 + $0x18] sm:$0xff] }
 0x579   :  { %v1864_v6 = vadd.f32 %v1856_v25, %v1848_v7  ;;  %v1863_v47 = vadd.f32 %v1855_v53, %v1847_v27  ;;  %v1838_v10 = vsub.f32 %v1822_v48, %v1830_v36  ;;  %v1862_v57 = vadd.f32 %v1854_v13, %v1846_v60  ;;  %v3131_v25 = vld [vmem:[%s5353_s10 + $0x28] sm:$0xff]  ;;  %v3132_v24 = vld [vmem:[%s5352_s9 + $0x20] sm:$0xff]  ;;  %v3140_v53 = vld [vmem:[%s5353_s10 + $0x10] sm:$0xff] }
 0x57a   :  { %v1845_v21 = vsub.f32 %v1829_v1, %v1837_v54  ;;  %v1869_v46 = vadd.f32 %v1861_v9, %v1853_v8  ;;  %v1955_v52 = vadd.f32 %v1865_v63, %v1841_v59  ;;  %v3102_v8 = vld [vmem:[%s5382_s4] sm:$0xff]  ;;  %v3103_v54 = vld [vmem:[%s5352_s9 + $0x78] sm:$0xff]  ;;  %v3141_v37 = vld [vmem:[%s5352_s9 + $0x8] sm:$0xff] }
 0x57b   :  { %v1954_v19 = vadd.f32 %v1864_v6, %v1840_v5  ;;  %v1953_v62 = vadd.f32 %v1863_v47, %v1839_v22  ;;  %v1952_v1 = vadd.f32 %v1862_v57, %v1838_v10  ;;  %v3104_v9 = vld [vmem:[%s5353_s10 + $0x78] sm:$0xff]  ;;  %v3142_v38 = vld [vmem:[%s5353_s10 + $0x8] sm:$0xff]  ;;  %v3143_v58 = vld [vmem:[%s5352_s9] sm:$0xff] }
 0x57c   :  { %1878 = vmatpush.msra.mxu0 %v1845_v21  ;;  %1919 = vmatpush.msra.mxu1 %v1869_v46  ;;  %v1959_v4 = vadd.f32 %v1869_v46, %v1845_v21  ;;  %v3113_v21 = vld [vmem:[%s5382_s4 + $0x8] sm:$0xff]  ;;  %v3114_v46 = vld [vmem:[%s5352_s9 + $0x58] sm:$0xff]  ;;  %v3144_v7 = vld [vmem:[%s5381_s26 + $0x20] sm:$0xff] }
 0x57d   :  { %v3148_v36 = vld [vmem:[%s5383_s29 + $0x20] sm:$0xff]  ;;  %v3149_v13 = vld [vmem:[%s5359_s11 + $0x70] sm:$0xff]  ;;  %v3151_v27 = vld [vmem:[%s5381_s26 + $0x28] sm:$0xff] }
 0x57e   :  { %1879 = vmatpush.msra.mxu0 %v1844_v45  ;;  %1920 = vmatpush.msra.mxu1 %v1868_v50  ;;  %v3119_v45 = vld [vmem:[%s5352_s9 + $0x48] sm:$0xff]  ;;  %v3156_v60 = vld [vmem:[%s5359_s11 + $0x50] sm:$0xff] }
 0x57f   :  { %1968 = vmatpush.msra.mxu2 %v1959_v4  ;;  %v3120_v50 = vld [vmem:[%s5353_s10 + $0x48] sm:$0xff]  ;;  %v3123_v4 = vld [vmem:[%s5353_s10 + $0x40] sm:$0xff] }
 0x580   :  { %1880 = vmatpush.msra.mxu0 %v1843_v17  ;;  %1921 = vmatpush.msra.mxu1 %v1867_v33  ;;  %v3128_v17 = vld [vmem:[%s5352_s9 + $0x30] sm:$0xff]  ;;  %v3155_v48 = vld [vmem:[%s5383_s29 + $0x28] sm:$0xff] }
 0x581   :  { %1969 = vmatpush.msra.mxu2 %v1958_v32  ;;  %v3129_v33 = vld [vmem:[%s5353_s10 + $0x30] sm:$0xff]  ;;  %v3136_v32 = vld [vmem:[%s5352_s9 + $0x18] sm:$0xff] }
 0x582   :  { %1881 = vmatpush.msra.mxu0 %v1842_v43  ;;  %1922 = vmatpush.msra.mxu1 %v1866_v49  ;;  %v3137_v43 = vld [vmem:[%s5353_s10 + $0x18] sm:$0xff] }
 0x583   :  { %1970 = vmatpush.msra.mxu2 %v1957_v0  ;;  %v3138_v49 = vld [vmem:[%s5383_s29 + $0x18] sm:$0xff]  ;;  %v3145_v0 = vld [vmem:[%s5353_s10] sm:$0xff] }
 0x584   :  { %1882 = vmatpush.msra.mxu0 %v1841_v59  ;;  %1923 = vmatpush.msra.mxu1 %v1865_v63  ;;  %v3146_v59 = vld [vmem:[%s5382_s4 + $0x20] sm:$0xff]  ;;  %v3147_v63 = vld [vmem:[%s5359_s11 + $0x78] sm:$0xff] }
 0x585   :  { %1971 = vmatpush.msra.mxu2 %v1956_v3  ;;  %v3152_v3 = vld [vmem:[%s5359_s11 + $0x60] sm:$0xff] }
 0x586   :  { %1883 = vmatpush.msra.mxu0 %v1840_v5  ;;  %1924 = vmatpush.msra.mxu1 %v1864_v6  ;;  %v3153_v5 = vld [vmem:[%s5382_s4 + $0x28] sm:$0xff]  ;;  %v3154_v6 = vld [vmem:[%s5359_s11 + $0x58] sm:$0xff] }
 0x587   :  { %1972 = vmatpush.msra.mxu2 %v1955_v52  ;;  %v3157_v52 = vld [vmem:[%s5359_s11 + $0x48] sm:$0xff] }
 0x588   :  { %1884 = vmatpush.msra.mxu0 %v1839_v22  ;;  %1925 = vmatpush.msra.mxu1 %v1863_v47  ;;  %v3158_v22 = vld [vmem:[%s5381_s26 + $0x30] sm:$0xff]  ;;  %v3159_v47 = vld [vmem:[%s5359_s11 + $0x40] sm:$0xff] }
 0x589   :  { %1973 = vmatpush.msra.mxu2 %v1954_v19  ;;  %v3160_v19 = vld [vmem:[%s5382_s4 + $0x30] sm:$0xff] }
 0x58a   :  { %1885 = vmatpush.msra.mxu0 %v1838_v10  ;;  %1926 = vmatpush.msra.mxu1 %v1862_v57  ;;  %v3161_v10 = vld [vmem:[%s5359_s11 + $0x38] sm:$0xff]  ;;  %v3162_v57 = vld [vmem:[%s5383_s29 + $0x30] sm:$0xff] }
 0x58b   :  { %1974 = vmatpush.msra.mxu2 %v1953_v62  ;;  %2883 = vmatmul.msk.f32.vlgmr.msra.gmra.mxu0 %vm89_vm0, %v3101_v40  ;;  %v3163_v62 = vld [vmem:[%s5359_s11 + $0x30] sm:$0xff]  ;;  %v3165_v40 = vld [vmem:[%s5381_s26 + $0x38] sm:$0xff] }
 0x58c   :  { %2891 = vmatmul.msk.f32.vlgmr.msra.gmra.mxu1 %vm89_vm0, %v3102_v8  ;;  %2066 = vmatpush.msrb.mxu0 %v3103_v54  ;;  %v3166_v8 = vld [vmem:[%s5359_s11 + $0x20] sm:$0xff]  ;;  %v3167_v54 = vld [vmem:[%s5382_s4 + $0x38] sm:$0xff] }
 0x58d   :  { %1975 = vmatpush.msra.mxu2 %v1952_v1  ;;  %2115 = vmatpush.msrb.mxu1 %v3104_v9  ;;  %v3164_v1 = vld [vmem:[%s5359_s11 + $0x28] sm:$0xff]  ;;  %v3168_v9 = vld [vmem:[%s5359_s11 + $0x18] sm:$0xff] }
 0x58e   :  { %2899 = vmatmul.msk.f32.vlgmr.msra.gmra.mxu2 %vm89_vm0, %v3105_v39  ;;  %2067 = vmatpush.msrb.mxu0 %v3106_v61  ;;  %v3169_v39 = vld [vmem:[%s5383_s29 + $0x38] sm:$0xff]  ;;  %v3170_v61 = vld [vmem:[%s5359_s11 + $0x10] sm:$0xff] }
 0x58f   :  { %2116 = vmatpush.msrb.mxu1 %v3107_v23  ;;  %v3171_v23 = vld [vmem:[%s5359_s11 + $0x8] sm:$0xff] }
 0x590   :  { %2068 = vmatpush.msrb.mxu0 %v3108_v51  ;;  %v3172_v51 = vld [vmem:[%s5359_s11] sm:$0xff] }
 0x591   :  { %2117 = vmatpush.msrb.mxu1 %v3109_v12 }
 0x592   :  { %2069 = vmatpush.msrb.mxu0 %v3110_v26 }
 0x593   :  { %2884 = vmatmul.msk.f32.gmra.mxu0 %vm89_vm0, %v3111_v41  ;;  %2118 = vmatpush.msrb.mxu1 %v3112_v15 }
 0x594   :  { %2892 = vmatmul.msk.f32.gmra.mxu1 %vm89_vm0, %v3113_v21  ;;  %2070 = vmatpush.msrb.mxu0 %v3114_v46 }
 0x595   :  { %2119 = vmatpush.msrb.mxu1 %v3115_v16 }
 0x596   :  { %2900 = vmatmul.msk.f32.gmra.mxu2 %vm89_vm0, %v3116_v18  ;;  %2071 = vmatpush.msrb.mxu0 %v3117_v34 }
 0x597   :  { %2120 = vmatpush.msrb.mxu1 %v3118_v35 }
 0x598   :  { %2072 = vmatpush.msrb.mxu0 %v3119_v45 }
 0x599   :  { %2121 = vmatpush.msrb.mxu1 %v3120_v50 }
 0x59a   :  { %2073 = vmatpush.msrb.mxu0 %v3121_v55 }
 0x59b   :  { %2885 = vmatmul.msk.f32.gmra.mxu0 %vm89_vm0, %v3122_v56  ;;  %2122 = vmatpush.msrb.mxu1 %v3123_v4 }
 0x59c   :  { %2893 = vmatmul.msk.f32.gmra.mxu1 %vm89_vm0, %v3124_v30  ;;  %2074 = vmatpush.msrb.mxu0 %v3125_v2 }
 0x59d   :  { %2123 = vmatpush.msrb.mxu1 %v3126_v11 }
 0x59e   :  { %2901 = vmatmul.msk.f32.gmra.mxu2 %vm89_vm0, %v3127_v14  ;;  %2075 = vmatpush.msrb.mxu0 %v3128_v17 }
 0x59f   :  { %2124 = vmatpush.msrb.mxu1 %v3129_v33 }
 0x5a0   :  { %2076 = vmatpush.msrb.mxu0 %v3130_v20 }
 0x5a1   :  { %2125 = vmatpush.msrb.mxu1 %v3131_v25 }
 0x5a2   :  { %2077 = vmatpush.msrb.mxu0 %v3132_v24 }
 0x5a3   :  { %2886 = vmatmul.msk.f32.gmra.mxu0 %vm89_vm0, %v3133_v28  ;;  %2126 = vmatpush.msrb.mxu1 %v3134_v29 }
 0x5a4   :  { %2894 = vmatmul.msk.f32.gmra.mxu1 %vm89_vm0, %v3135_v42  ;;  %2078 = vmatpush.msrb.mxu0 %v3136_v32 }
 0x5a5   :  { %2127 = vmatpush.msrb.mxu1 %v3137_v43 }
 0x5a6   :  { %2902 = vmatmul.msk.f32.gmra.mxu2 %vm89_vm0, %v3138_v49  ;;  %2079 = vmatpush.msrb.mxu0 %v3139_v31 }
 0x5a7   :  { %2128 = vmatpush.msrb.mxu1 %v3140_v53 }
 0x5a8   :  { %2080 = vmatpush.msrb.mxu0 %v3141_v37 }
 0x5a9   :  { %2129 = vmatpush.msrb.mxu1 %v3142_v38 }
 0x5aa   :  { %2081 = vmatpush.msrb.mxu0 %v3143_v58 }
 0x5ab   :  { %2887 = vmatmul.msk.f32.gmra.mxu0 %vm89_vm0, %v3144_v7  ;;  %2130 = vmatpush.msrb.mxu1 %v3145_v0 }
 0x5ac   :  { %2895 = vmatmul.msk.f32.gmra.mxu1 %vm89_vm0, %v3146_v59 }
 0x5ad   :  { %2401 = vmatpush.msra.mxu1 %v3147_v63 }
 0x5ae   :  { %2903 = vmatmul.msk.f32.gmra.mxu2 %vm89_vm0, %v3148_v36 }
 0x5af   :  { %2402 = vmatpush.msra.mxu1 %v3149_v13 }
 0x5b1   :  { %2403 = vmatpush.msra.mxu1 %v3150_v44 }
 0x5b3   :  { %2888 = vmatmul.msk.f32.gmra.mxu0 %vm89_vm0, %v3151_v27  ;;  %2404 = vmatpush.msra.mxu1 %v3152_v3 }
 0x5b4   :  { %2896 = vmatmul.msk.f32.gmra.mxu1 %vm89_vm0, %v3153_v5 }
 0x5b5   :  { %2405 = vmatpush.msra.mxu1 %v3154_v6 }
 0x5b6   :  { %2904 = vmatmul.msk.f32.gmra.mxu2 %vm89_vm0, %v3155_v48 }
 0x5b7   :  { %2406 = vmatpush.msra.mxu1 %v3156_v60 }
 0x5b9   :  { %2407 = vmatpush.msra.mxu1 %v3157_v52 }
 0x5bb   :  { %2889 = vmatmul.msk.f32.gmra.mxu0 %vm89_vm0, %v3158_v22  ;;  %2408 = vmatpush.msra.mxu1 %v3159_v47 }
 0x5bc   :  { %2897 = vmatmul.msk.f32.gmra.mxu1 %vm89_vm0, %v3160_v19 }
 0x5bd   :  { %2409 = vmatpush.msra.mxu1 %v3161_v10 }
 0x5be   :  { %2905 = vmatmul.msk.f32.gmra.mxu2 %vm89_vm0, %v3162_v57 }
 0x5bf   :  { %2410 = vmatpush.msra.mxu1 %v3163_v62 }
 0x5c1   :  { %2411 = vmatpush.msra.mxu1 %v3164_v1 }
 0x5c3   :  { %2890 = vmatmul.msk.f32.gmra.mxu0 %vm89_vm0, %v3165_v40  ;;  %2412 = vmatpush.msra.mxu1 %v3166_v8 }
 0x5c4   :  { %2898 = vmatmul.msk.f32.gmra.mxu1 %vm89_vm0, %v3167_v54 }
 0x5c5   :  { %2413 = vmatpush.msra.mxu1 %v3168_v9 }
 0x5c6   :  { %2906 = vmatmul.msk.f32.gmra.mxu2 %vm89_vm0, %v3169_v39 }
 0x5c7   :  { %2414 = vmatpush.msra.mxu1 %v3170_v61  ;;  %v2907_v61 = vld [vmem:[%s5354_s14 + $0x80] sm:$0xff] }
 0x5c9   :  { %2415 = vmatpush.msra.mxu1 %v3171_v23  ;;  %v2915_v23 = vld [vmem:[%s5355_s15 + $0x80] sm:$0xff] }
 0x5cb   :  { %2416 = vmatpush.msra.mxu1 %v3172_v51 }
 0x608   :  { %v1887_v12 = vpop.f32.mrf.mxu0 }
 0x609   :  { %v1928_v26 = vpop.f32.mrf.mxu1 }
 0x60a   :  { %v2001_v41 = vsub.f32 %v1887_v12, %v1928_v26 }
 0x60c   :  { %2041 = vmatmul.f32.vlgmr.msra.gmra.mxu3 %v2001_v41 }
 0x610   :  { %v1890_v15 = vpop.f32.mrf.mxu0 }
 0x611   :  { %v1977_v21 = vpop.f32.mrf.mxu2  ;;  %v1931_v46 = vpop.f32.mrf.mxu1 }
 0x612   :  { %v2009_v16 = vsub.f32 %v1977_v21, %v1887_v12  ;;  %v2002_v18 = vsub.f32 %v1890_v15, %v1931_v46 }
 0x614   :  { %v2017_v34 = vsub.f32 %v2009_v16, %v1928_v26  ;;  %2044 = vmatmul.f32.gmra.mxu3 %v2002_v18 }
 0x616   :  { %v2107_v35 = vadd.f32 %v2017_v34, %v2001_v41  ;;  %2082 = vmatmul.f32.vlgmr.msrb.gmra.mxu0 %v2017_v34 }
 0x618   :  { %2131 = vmatmul.f32.vlgmr.msrb.gmra.mxu1 %v2107_v35  ;;  %v1893_v45 = vpop.f32.mrf.mxu0 }
 0x619   :  { %v1980_v50 = vpop.f32.mrf.mxu2  ;;  %v1934_v55 = vpop.f32.mrf.mxu1 }
 0x61a   :  { %v2010_v56 = vsub.f32 %v1980_v50, %v1890_v15  ;;  %v2003_v4 = vsub.f32 %v1893_v45, %v1934_v55 }
 0x61c   :  { %v2018_v30 = vsub.f32 %v2010_v56, %v1931_v46  ;;  %2047 = vmatmul.f32.gmra.mxu3 %v2003_v4 }
 0x61e   :  { %2085 = vmatmul.f32.gmra.mxu0 %v2018_v30  ;;  %v2108_v2 = vadd.f32 %v2018_v30, %v2002_v18 }
 0x620   :  { %2134 = vmatmul.f32.gmra.mxu1 %v2108_v2  ;;  %v1896_v11 = vpop.f32.mrf.mxu0 }
 0x621   :  { %v1983_v14 = vpop.f32.mrf.mxu2  ;;  %v1937_v17 = vpop.f32.mrf.mxu1 }
 0x622   :  { %v2011_v33 = vsub.f32 %v1983_v14, %v1893_v45  ;;  %v2004_v20 = vsub.f32 %v1896_v11, %v1937_v17 }
 0x624   :  { %v2019_v25 = vsub.f32 %v2011_v33, %v1934_v55  ;;  %2050 = vmatmul.f32.gmra.mxu3 %v2004_v20 }
 0x626   :  { %2088 = vmatmul.f32.gmra.mxu0 %v2019_v25  ;;  %v2109_v24 = vadd.f32 %v2019_v25, %v2003_v4 }
 0x628   :  { %2137 = vmatmul.f32.gmra.mxu1 %v2109_v24  ;;  %v1899_v28 = vpop.f32.mrf.mxu0 }
 0x629   :  { %v1986_v29 = vpop.f32.mrf.mxu2  ;;  %v1940_v42 = vpop.f32.mrf.mxu1 }
 0x62a   :  { %v2012_v32 = vsub.f32 %v1986_v29, %v1896_v11  ;;  %v2005_v43 = vsub.f32 %v1899_v28, %v1940_v42 }
 0x62c   :  { %v2020_v49 = vsub.f32 %v2012_v32, %v1937_v17  ;;  %2053 = vmatmul.f32.gmra.mxu3 %v2005_v43 }
 0x62e   :  { %2091 = vmatmul.f32.gmra.mxu0 %v2020_v49  ;;  %v2110_v31 = vadd.f32 %v2020_v49, %v2004_v20 }
 0x630   :  { %2140 = vmatmul.f32.gmra.mxu1 %v2110_v31  ;;  %v1902_v53 = vpop.f32.mrf.mxu0 }
 0x631   :  { %v1989_v37 = vpop.f32.mrf.mxu2  ;;  %v1943_v38 = vpop.f32.mrf.mxu1 }
 0x632   :  { %v2013_v58 = vsub.f32 %v1989_v37, %v1899_v28  ;;  %v2006_v7 = vsub.f32 %v1902_v53, %v1943_v38 }
 0x634   :  { %v2021_v0 = vsub.f32 %v2013_v58, %v1940_v42  ;;  %2056 = vmatmul.f32.gmra.mxu3 %v2006_v7 }
 0x636   :  { %2094 = vmatmul.f32.gmra.mxu0 %v2021_v0  ;;  %v2111_v59 = vadd.f32 %v2021_v0, %v2005_v43 }
 0x638   :  { %2143 = vmatmul.f32.gmra.mxu1 %v2111_v59  ;;  %v1905_v63 = vpop.f32.mrf.mxu0 }
 0x639   :  { %v1992_v36 = vpop.f32.mrf.mxu2  ;;  %v1946_v13 = vpop.f32.mrf.mxu1 }
 0x63a   :  { %v2014_v44 = vsub.f32 %v1992_v36, %v1902_v53  ;;  %v2007_v27 = vsub.f32 %v1905_v63, %v1946_v13 }
 0x63c   :  { %v2022_v3 = vsub.f32 %v2014_v44, %v1943_v38  ;;  %2059 = vmatmul.f32.gmra.mxu3 %v2007_v27 }
 0x63e   :  { %2097 = vmatmul.f32.gmra.mxu0 %v2022_v3  ;;  %v2112_v5 = vadd.f32 %v2022_v3, %v2006_v7  ;;  %v2914_v3 = vld [vmem:[%s5354_s14 + $0xb8] sm:$0xff] }
 0x640   :  { %2146 = vmatmul.f32.gmra.mxu1 %v2112_v5  ;;  %v1908_v6 = vpop.f32.mrf.mxu0  ;;  %v2922_v5 = vld [vmem:[%s5355_s15 + $0xb8] sm:$0xff] }
 0x641   :  { %v1995_v48 = vpop.f32.mrf.mxu2  ;;  %v1949_v60 = vpop.f32.mrf.mxu1 }
 0x642   :  { %v2015_v52 = vsub.f32 %v1995_v48, %v1905_v63  ;;  %v2008_v22 = vsub.f32 %v1908_v6, %v1949_v60 }
 0x644   :  { %v2023_v47 = vsub.f32 %v2015_v52, %v1946_v13  ;;  %2062 = vmatmul.f32.gmra.mxu3 %v2008_v22  ;;  %v2913_v52 = vld [vmem:[%s5354_s14 + $0xb0] sm:$0xff] }
 0x646   :  { %2100 = vmatmul.f32.gmra.mxu0 %v2023_v47  ;;  %v2113_v19 = vadd.f32 %v2023_v47, %v2007_v27 }
 0x648   :  { %2149 = vmatmul.f32.gmra.mxu1 %v2113_v19 }
 0x649   :  { %v1998_v10 = vpop.f32.mrf.mxu2 }
 0x64a   :  { %v2016_v57 = vsub.f32 %v1998_v10, %v1908_v6 }
 0x64c   :  { %v2024_v62 = vsub.f32 %v2016_v57, %v1949_v60 }
 0x64e   :  { %2103 = vmatmul.f32.gmra.mxu0 %v2024_v62  ;;  %v2114_v1 = vadd.f32 %v2024_v62, %v2008_v22  ;;  %v2921_v22 = vld [vmem:[%s5355_s15 + $0xb0] sm:$0xff] }
 0x650   :  { %2152 = vmatmul.f32.gmra.mxu1 %v2114_v1  ;;  %v2912_v1 = vld [vmem:[%s5354_s14 + $0xa8] sm:$0xff] }
 0x68f   :  { %v2042_v40 = vpop.f32.mrf.mxu3 }
 0x693   :  { %v2083_v8 = vpop.f32.mrf.mxu0 }
 0x694   :  { %v2156_v54 = vsub.f32 %v2042_v40, %v2083_v8 }
 0x695   :  { %v2132_v9 = vpop.f32.mrf.mxu1 }
 0x696   :  { %v2164_v39 = vsub.f32 %v2132_v9, %v2042_v40  ;;  %v2198_v26 = vmul.f32 %v2907_v61, %v2156_v54  ;;  %v2222_v41 = vmul.f32 %v2915_v23, %v2156_v54  ;;  %v2920_v40 = vld [vmem:[%s5355_s15 + $0xa8] sm:$0xff] }
 0x697   :  { %v2045_v51 = vpop.f32.mrf.mxu3 }
 0x698   :  { %v2172_v12 = vsub.f32 %v2164_v39, %v2083_v8 }
 0x69a   :  { %v2206_v15 = vmul.f32 %v2915_v23, %v2172_v12  ;;  %v2230_v21 = vmul.f32 %v2907_v61, %v2172_v12  ;;  %v2911_v61 = vld [vmem:[%s5354_s14 + $0xa0] sm:$0xff] }
 0x69b   :  { %v2086_v46 = vpop.f32.mrf.mxu0  ;;  %v2919_v23 = vld [vmem:[%s5355_s15 + $0xa0] sm:$0xff] }
 0x69c   :  { %v4940_v16 = vsub.f32 %v2198_v26, %v2206_v15  ;;  %v4942_v18 = vadd.f32 %v2230_v21, %v2222_v41  ;;  %v4948_v7 = vsub.f32 %v2045_v51, %v2086_v46 }
 0x69d   :  { %v2135_v34 = vpop.f32.mrf.mxu1 }
 0x69e   :  { %v4946_v35 = vadd.f32 %v4942_v18, %v4940_v16  ;;  %v2165_v42 = vsub.f32 %v2135_v34, %v2045_v51 }
 0x69f   :  { %v2048_v45 = vpop.f32.mrf.mxu3 }
 0x6a0   :  { %v4950_v0 = vsub.f32 %v2165_v42, %v2086_v46 }
 0x6a3   :  { %v2089_v50 = vpop.f32.mrf.mxu0 }
 0x6a4   :  { %v4952_v36 = vsub.f32 %v2048_v45, %v2089_v50 }
 0x6a5   :  { %v2138_v55 = vpop.f32.mrf.mxu1 }
 0x6a6   :  { %v2166_v32 = vsub.f32 %v2138_v55, %v2048_v45  ;;  %v2910_v45 = vld [vmem:[%s5354_s14 + $0x98] sm:$0xff] }
 0x6a7   :  { %v2051_v56 = vpop.f32.mrf.mxu3 }
 0x6a8   :  { %v2174_v13 = vsub.f32 %v2166_v32, %v2089_v50  ;;  %v2918_v50 = vld [vmem:[%s5355_s15 + $0x98] sm:$0xff] }
 0x6ab   :  { %v2092_v4 = vpop.f32.mrf.mxu0 }
 0x6ac   :  { %v2159_v6 = vsub.f32 %v2051_v56, %v2092_v4 }
 0x6ad   :  { %v2141_v30 = vpop.f32.mrf.mxu1 }
 0x6ae   :  { %v2167_v53 = vsub.f32 %v2141_v30, %v2051_v56  ;;  %v2201_v32 = vmul.f32 %v2910_v45, %v2159_v6 }
 0x6af   :  { %v2054_v2 = vpop.f32.mrf.mxu3 }
 0x6b0   :  { %v2175_v48 = vsub.f32 %v2167_v53, %v2092_v4 }
 0x6b3   :  { %v2095_v11 = vpop.f32.mrf.mxu0 }
 0x6b4   :  { %v2160_v19 = vsub.f32 %v2054_v2, %v2095_v11 }
 0x6b5   :  { %v2144_v14 = vpop.f32.mrf.mxu1 }
 0x6b6   :  { %v2168_v37 = vsub.f32 %v2144_v14, %v2054_v2  ;;  %v2209_v2 = vmul.f32 %v2918_v50, %v2175_v48 }
 0x6b7   :  { %v2057_v17 = vpop.f32.mrf.mxu3 }
 0x6b8   :  { %v2176_v60 = vsub.f32 %v2168_v37, %v2095_v11  ;;  %v2233_v11 = vmul.f32 %v2910_v45, %v2175_v48  ;;  %v3196_v45 = vld [vmem:[%s5357_s6 + $0x10] sm:$0xff] }
 0x6ba   :  { %v2210_v15 = vmul.f32 %v2919_v23, %v2176_v60  ;;  %v2234_v21 = vmul.f32 %v2911_v61, %v2176_v60 }
 0x6bb   :  { %v2098_v33 = vpop.f32.mrf.mxu0 }
 0x6bc   :  { %v2161_v10 = vsub.f32 %v2057_v17, %v2098_v33 }
 0x6bd   :  { %v2147_v20 = vpop.f32.mrf.mxu1 }
 0x6be   :  { %v2169_v43 = vsub.f32 %v2147_v20, %v2057_v17  ;;  %v2203_v55 = vmul.f32 %v2912_v1, %v2161_v10  ;;  %v2227_v56 = vmul.f32 %v2920_v40, %v2161_v10  ;;  %v2909_v17 = vld [vmem:[%s5354_s14 + $0x90] sm:$0xff]  ;;  %v2202_v20 = vmul.f32 %v2911_v61, %v2160_v19  ;;  %v3174_v10 = vld [vmem:[%s5357_s6] sm:$0xff]  ;;  %v3186_v61 = vld [vmem:[%s5360_s12 + $0x58] sm:$0xff] }
 0x6bf   :  { %v2060_v25 = vpop.f32.mrf.mxu3  ;;  %v2232_v42 = vmul.f32 %v2909_v17, %v2174_v13 }
 0x6c0   :  { %v2177_v44 = vsub.f32 %v2169_v43, %v2098_v33  ;;  %v2917_v33 = vld [vmem:[%s5355_s15 + $0x90] sm:$0xff]  ;;  %v2908_v43 = vld [vmem:[%s5354_s14 + $0x88] sm:$0xff]  ;;  %v2218_v37 = vsub.f32 %v2202_v20, %v2210_v15  ;;  %v3207_v20 = vld [vmem:[%s5357_s6 + $0x18] sm:$0xff] }
 0x6c1   :  { %v3192_v15 = vld [vmem:[%s5384_s27 + $0x48] sm:$0xff] }
 0x6c2   :  { %v2211_v51 = vmul.f32 %v2920_v40, %v2177_v44  ;;  %v2235_v12 = vmul.f32 %v2912_v1, %v2177_v44  ;;  %v3180_v1 = vld [vmem:[%s5360_s12 + $0x68] sm:$0xff] }
 0x6c3   :  { %v2101_v24 = vpop.f32.mrf.mxu0  ;;  %v3181_v40 = vld [vmem:[%s5384_s27 + $0x68] sm:$0xff] }
 0x6c4   :  { %v2162_v27 = vsub.f32 %v2060_v25, %v2101_v24 }
 0x6c5   :  { %v2150_v28 = vpop.f32.mrf.mxu1 }
 0x6c6   :  { %v2170_v29 = vsub.f32 %v2150_v28, %v2060_v25  ;;  %v2204_v26 = vmul.f32 %v2913_v52, %v2162_v27  ;;  %v2228_v41 = vmul.f32 %v2921_v22, %v2162_v27  ;;  %v2226_v25 = vmul.f32 %v2919_v23, %v2160_v19  ;;  %v3187_v23 = vld [vmem:[%s5384_s27 + $0x58] sm:$0xff] }
 0x6c7   :  { %v2063_v49 = vpop.f32.mrf.mxu3  ;;  %v2243_v28 = vadd.f32 %v2235_v12, %v2227_v56  ;;  %v2217_v27 = vsub.f32 %v2201_v32, %v2209_v2  ;;  %v3189_v12 = vld [vmem:[%s5360_s12 + $0x50] sm:$0xff]  ;;  %v3202_v2 = vld [vmem:[%s5360_s12 + $0x28] sm:$0xff] }
 0x6c8   :  { %v2178_v38 = vsub.f32 %v2170_v29, %v2101_v24  ;;  %v2219_v24 = vsub.f32 %v2203_v55, %v2211_v51  ;;  %v2208_v29 = vmul.f32 %v2917_v33, %v2174_v13  ;;  %v2224_v13 = vmul.f32 %v2917_v33, %v4952_v36  ;;  %v3188_v51 = vld [vmem:[%s5358_s7 + $0x8] sm:$0xff]  ;;  %v3198_v55 = vld [vmem:[%s5384_s27 + $0x38] sm:$0xff]  ;;  %v3199_v56 = vld [vmem:[%s5358_s7 + $0x10] sm:$0xff] }
 0x6c9   :  { %v3206_v33 = vld [vmem:[%s5384_s27 + $0x20] sm:$0xff]  ;;  %v3213_v32 = vld [vmem:[%s5360_s12 + $0x8] sm:$0xff] }
 0x6ca   :  { %v2212_v57 = vmul.f32 %v2921_v22, %v2178_v38  ;;  %v2236_v62 = vmul.f32 %v2913_v52, %v2178_v38  ;;  %v2242_v38 = vadd.f32 %v2234_v21, %v2226_v25  ;;  %v2333_v44 = vadd.f32 %v2243_v28, %v2219_v24  ;;  %v3193_v21 = vld [vmem:[%s5360_s12 + $0x40] sm:$0xff]  ;;  %v3208_v25 = vld [vmem:[%s5360_s12 + $0x18] sm:$0xff] }
 0x6cb   :  { %v2104_v31 = vpop.f32.mrf.mxu0 }
 0x6cc   :  { %v2163_v59 = vsub.f32 %v2063_v49, %v2104_v31  ;;  %v2220_v4 = vsub.f32 %v2204_v26, %v2212_v57  ;;  %v2244_v30 = vadd.f32 %v2236_v62, %v2228_v41  ;;  %v2332_v48 = vadd.f32 %v2242_v38, %v2218_v37  ;;  %v3175_v57 = vld [vmem:[%s5360_s12 + $0x78] sm:$0xff]  ;;  %v3178_v62 = vld [vmem:[%s5360_s12 + $0x70] sm:$0xff]  ;;  %v3191_v41 = vld [vmem:[%s5360_s12 + $0x48] sm:$0xff] }
 0x6cd   :  { %v2153_v58 = vpop.f32.mrf.mxu1  ;;  %v3190_v26 = vld [vmem:[%s5384_s27 + $0x50] sm:$0xff] }
 0x6ce   :  { %v2171_v63 = vsub.f32 %v2153_v58, %v2063_v49  ;;  %v2205_v8 = vmul.f32 %v2914_v3, %v2163_v59  ;;  %v2229_v54 = vmul.f32 %v2922_v5, %v2163_v59  ;;  %v2916_v49 = vld [vmem:[%s5355_s15 + $0x88] sm:$0xff]  ;;  %v2334_v53 = vadd.f32 %v2244_v30, %v2220_v4 }
 0x6cf   :  { %v2207_v58 = vmul.f32 %v2916_v49, %v4950_v0  ;;  %v2231_v59 = vmul.f32 %v2908_v43, %v4950_v0  ;;  %v2240_v0 = vadd.f32 %v2232_v42, %v2224_v13  ;;  %v3212_v42 = vld [vmem:[%s5384_s27 + $0x10] sm:$0xff] }
 0x6d0   :  { %v2179_v47 = vsub.f32 %v2171_v63, %v2104_v31  ;;  %v2225_v31 = vmul.f32 %v2918_v50, %v2159_v6  ;;  %v2200_v63 = vmul.f32 %v2909_v17, %v4952_v36  ;;  %v2223_v6 = vmul.f32 %v2916_v49, %v4948_v7  ;;  %v3197_v50 = vld [vmem:[%s5360_s12 + $0x38] sm:$0xff]  ;;  %v3215_v49 = vld [vmem:[%s5360_s12] sm:$0xff]  ;;  %v3223_v13 = vld [vmem:[%s5356_s5 + $0x30] sm:$0xff] }
 0x6d1   :  { %v3205_v17 = vld [vmem:[%s5356_s5 + $0x18] sm:$0xff] }
 0x6d2   :  { %v2213_v9 = vmul.f32 %v2922_v5, %v2179_v47  ;;  %v2237_v39 = vmul.f32 %v2914_v3, %v2179_v47  ;;  %v2241_v3 = vadd.f32 %v2233_v11, %v2225_v31  ;;  %v2199_v5 = vmul.f32 %v2908_v43, %v4948_v7  ;;  %v3173_v7 = vld [vmem:[%s5356_s5] sm:$0xff]  ;;  %v3203_v11 = vld [vmem:[%s5384_s27 + $0x28] sm:$0xff] }
 0x6d3   :  { %v2216_v60 = vsub.f32 %v2200_v63, %v2208_v29  ;;  %v2239_v36 = vadd.f32 %v2231_v59, %v2223_v6  ;;  %v3211_v29 = vld [vmem:[%s5360_s12 + $0x10] sm:$0xff]  ;;  %v3214_v43 = vld [vmem:[%s5384_s27 + $0x8] sm:$0xff]  ;;  %v3216_v31 = vld [vmem:[%s5356_s5 + $0x20] sm:$0xff] }
 0x6d4   :  { %v2221_v46 = vsub.f32 %v2205_v8, %v2213_v9  ;;  %v2245_v34 = vadd.f32 %v2237_v39, %v2229_v54  ;;  %v2331_v52 = vadd.f32 %v2241_v3, %v2217_v27  ;;  %v2215_v22 = vsub.f32 %v2199_v5, %v2207_v58  ;;  %v3182_v8 = vld [vmem:[%s5360_s12 + $0x60] sm:$0xff]  ;;  %v3183_v54 = vld [vmem:[%s5356_s5 + $0x8] sm:$0xff]  ;;  %v3227_v5 = vld [vmem:[%s5357_s6 + $0x38] sm:$0xff] }
 0x6d5   :  { %v2330_v47 = vadd.f32 %v2240_v0, %v2216_v60  ;;  %v3184_v9 = vld [vmem:[%s5384_s27 + $0x60] sm:$0xff]  ;;  %v3185_v39 = vld [vmem:[%s5357_s6 + $0x8] sm:$0xff]  ;;  %v3228_v6 = vld [vmem:[%s5358_s7 + $0x38] sm:$0xff] }
 0x6d6   :  { %2254 = vmatpush.msrb.mxu2 %v2221_v46  ;;  %2295 = vmatpush.msrb.mxu3 %v2245_v34  ;;  %v2335_v14 = vadd.f32 %v2245_v34, %v2221_v46  ;;  %v2329_v19 = vadd.f32 %v2239_v36, %v2215_v22  ;;  %v3194_v46 = vld [vmem:[%s5356_s5 + $0x10] sm:$0xff]  ;;  %v3195_v34 = vld [vmem:[%s5384_s27 + $0x40] sm:$0xff]  ;;  %v3220_v58 = vld [vmem:[%s5356_s5 + $0x28] sm:$0xff] }
 0x6d7   :  { %v3221_v59 = vld [vmem:[%s5357_s6 + $0x28] sm:$0xff] }
 0x6d8   :  { %2255 = vmatpush.msrb.mxu2 %v2220_v4  ;;  %2296 = vmatpush.msrb.mxu3 %v2244_v30  ;;  %v3200_v4 = vld [vmem:[%s5360_s12 + $0x30] sm:$0xff]  ;;  %v3222_v63 = vld [vmem:[%s5358_s7 + $0x28] sm:$0xff] }
 0x6d9   :  { %2344 = vmatpush.msra.mxu0 %v2335_v14  ;;  %v3201_v30 = vld [vmem:[%s5384_s27 + $0x30] sm:$0xff]  ;;  %v3204_v14 = vld [vmem:[%s5360_s12 + $0x20] sm:$0xff] }
 0x6da   :  { %2256 = vmatpush.msrb.mxu2 %v2219_v24  ;;  %2297 = vmatpush.msrb.mxu3 %v2243_v28  ;;  %v3209_v24 = vld [vmem:[%s5384_s27 + $0x18] sm:$0xff] }
 0x6db   :  { %2345 = vmatpush.msra.mxu0 %v2334_v53  ;;  %v3210_v28 = vld [vmem:[%s5358_s7 + $0x18] sm:$0xff]  ;;  %v3217_v53 = vld [vmem:[%s5384_s27] sm:$0xff] }
 0x6dc   :  { %2257 = vmatpush.msrb.mxu2 %v2218_v37  ;;  %2298 = vmatpush.msrb.mxu3 %v2242_v38  ;;  %v3218_v37 = vld [vmem:[%s5357_s6 + $0x20] sm:$0xff] }
 0x6dd   :  { %2346 = vmatpush.msra.mxu0 %v2333_v44  ;;  %v3219_v38 = vld [vmem:[%s5358_s7 + $0x20] sm:$0xff]  ;;  %v3224_v44 = vld [vmem:[%s5357_s6 + $0x30] sm:$0xff] }
 0x6de   :  { %2258 = vmatpush.msrb.mxu2 %v2217_v27  ;;  %2299 = vmatpush.msrb.mxu3 %v2241_v3  ;;  %v3225_v27 = vld [vmem:[%s5358_s7 + $0x30] sm:$0xff]  ;;  %v3226_v3 = vld [vmem:[%s5356_s5 + $0x38] sm:$0xff] }
 0x6df   :  { %2347 = vmatpush.msra.mxu0 %v2332_v48 }
 0x6e0   :  { %2259 = vmatpush.msrb.mxu2 %v2216_v60  ;;  %2300 = vmatpush.msrb.mxu3 %v2240_v0 }
 0x6e1   :  { %2348 = vmatpush.msra.mxu0 %v2331_v52 }
 0x6e2   :  { %2260 = vmatpush.msrb.mxu2 %v2215_v22  ;;  %2301 = vmatpush.msrb.mxu3 %v2239_v36 }
 0x6e3   :  { %2349 = vmatpush.msra.mxu0 %v2330_v47 }
 0x6e4   :  { %2261 = vmatpush.msrb.mxu2 %v4940_v16  ;;  %2302 = vmatpush.msrb.mxu3 %v4942_v18  ;;  %v3176_v16 = vld [vmem:[%s5384_s27 + $0x78] sm:$0xff]  ;;  %v3177_v18 = vld [vmem:[%s5358_s7] sm:$0xff] }
 0x6e5   :  { %2350 = vmatpush.msra.mxu0 %v2329_v19  ;;  %2923 = vmatmul.msk.f32.vlgmr.msrb.gmra.mxu2 %vm89_vm0, %v3173_v7 }
 0x6e6   :  { %2931 = vmatmul.msk.f32.vlgmr.msrb.gmra.mxu3 %vm89_vm0, %v3174_v10  ;;  %2442 = vmatpush.msra.mxu2 %v3175_v57 }
 0x6e7   :  { %2351 = vmatpush.msra.mxu0 %v4946_v35  ;;  %2491 = vmatpush.msra.mxu3 %v3176_v16  ;;  %v3179_v35 = vld [vmem:[%s5384_s27 + $0x70] sm:$0xff] }
 0x6e8   :  { %2939 = vmatmul.msk.f32.vlgmr.msra.gmra.mxu0 %vm89_vm0, %v3177_v18  ;;  %2443 = vmatpush.msra.mxu2 %v3178_v62 }
 0x6e9   :  { %2492 = vmatpush.msra.mxu3 %v3179_v35 }
 0x6ea   :  { %2444 = vmatpush.msra.mxu2 %v3180_v1 }
 0x6eb   :  { %2493 = vmatpush.msra.mxu3 %v3181_v40 }
 0x6ec   :  { %2445 = vmatpush.msra.mxu2 %v3182_v8 }
 0x6ed   :  { %2924 = vmatmul.msk.f32.gmra.mxu2 %vm89_vm0, %v3183_v54  ;;  %2494 = vmatpush.msra.mxu3 %v3184_v9 }
 0x6ee   :  { %2932 = vmatmul.msk.f32.gmra.mxu3 %vm89_vm0, %v3185_v39  ;;  %2446 = vmatpush.msra.mxu2 %v3186_v61 }
 0x6ef   :  { %2495 = vmatpush.msra.mxu3 %v3187_v23 }
 0x6f0   :  { %2940 = vmatmul.msk.f32.gmra.mxu0 %vm89_vm0, %v3188_v51  ;;  %2447 = vmatpush.msra.mxu2 %v3189_v12 }
 0x6f1   :  { %2496 = vmatpush.msra.mxu3 %v3190_v26 }
 0x6f2   :  { %2448 = vmatpush.msra.mxu2 %v3191_v41 }
 0x6f3   :  { %2497 = vmatpush.msra.mxu3 %v3192_v15 }
 0x6f4   :  { %2449 = vmatpush.msra.mxu2 %v3193_v21 }
 0x6f5   :  { %2925 = vmatmul.msk.f32.gmra.mxu2 %vm89_vm0, %v3194_v46  ;;  %2498 = vmatpush.msra.mxu3 %v3195_v34 }
 0x6f6   :  { %2933 = vmatmul.msk.f32.gmra.mxu3 %vm89_vm0, %v3196_v45  ;;  %2450 = vmatpush.msra.mxu2 %v3197_v50 }
 0x6f7   :  { %2499 = vmatpush.msra.mxu3 %v3198_v55 }
 0x6f8   :  { %2941 = vmatmul.msk.f32.gmra.mxu0 %vm89_vm0, %v3199_v56  ;;  %2451 = vmatpush.msra.mxu2 %v3200_v4 }
 0x6f9   :  { %2500 = vmatpush.msra.mxu3 %v3201_v30 }
 0x6fa   :  { %2452 = vmatpush.msra.mxu2 %v3202_v2 }
 0x6fb   :  { %2501 = vmatpush.msra.mxu3 %v3203_v11 }
 0x6fc   :  { %2453 = vmatpush.msra.mxu2 %v3204_v14 }
 0x6fd   :  { %2926 = vmatmul.msk.f32.gmra.mxu2 %vm89_vm0, %v3205_v17  ;;  %2502 = vmatpush.msra.mxu3 %v3206_v33 }
 0x6fe   :  { %2934 = vmatmul.msk.f32.gmra.mxu3 %vm89_vm0, %v3207_v20  ;;  %2454 = vmatpush.msra.mxu2 %v3208_v25 }
 0x6ff   :  { %2503 = vmatpush.msra.mxu3 %v3209_v24 }
 0x700   :  { %2942 = vmatmul.msk.f32.gmra.mxu0 %vm89_vm0, %v3210_v28  ;;  %2455 = vmatpush.msra.mxu2 %v3211_v29 }
 0x701   :  { %2504 = vmatpush.msra.mxu3 %v3212_v42 }
 0x702   :  { %2456 = vmatpush.msra.mxu2 %v3213_v32 }
 0x703   :  { %2505 = vmatpush.msra.mxu3 %v3214_v43 }
 0x704   :  { %2457 = vmatpush.msra.mxu2 %v3215_v49 }
 0x705   :  { %2927 = vmatmul.msk.f32.gmra.mxu2 %vm89_vm0, %v3216_v31  ;;  %2506 = vmatpush.msra.mxu3 %v3217_v53 }
 0x706   :  { %2935 = vmatmul.msk.f32.gmra.mxu3 %vm89_vm0, %v3218_v37 }
 0x708   :  { %2943 = vmatmul.msk.f32.gmra.mxu0 %vm89_vm0, %v3219_v38 }
 0x70d   :  { %2928 = vmatmul.msk.f32.gmra.mxu2 %vm89_vm0, %v3220_v58 }
 0x70e   :  { %2936 = vmatmul.msk.f32.gmra.mxu3 %vm89_vm0, %v3221_v59 }
 0x710   :  { %2944 = vmatmul.msk.f32.gmra.mxu0 %vm89_vm0, %v3222_v63 }
 0x715   :  { %2929 = vmatmul.msk.f32.gmra.mxu2 %vm89_vm0, %v3223_v13 }
 0x716   :  { %2937 = vmatmul.msk.f32.gmra.mxu3 %vm89_vm0, %v3224_v44 }
 0x718   :  { %2945 = vmatmul.msk.f32.gmra.mxu0 %vm89_vm0, %v3225_v27 }
 0x71d   :  { %2930 = vmatmul.msk.f32.gmra.mxu2 %vm89_vm0, %v3226_v3 }
 0x71e   :  { %2938 = vmatmul.msk.f32.gmra.mxu3 %vm89_vm0, %v3227_v5 }
 0x720   :  { %2946 = vmatmul.msk.f32.gmra.mxu0 %vm89_vm0, %v3228_v6 }
 0x765   :  { %v2353_v48 = vpop.f32.mrf.mxu0 }
 0x768   :  { %v2263_v60 = vpop.f32.mrf.mxu2 }
 0x769   :  { %v2304_v0 = vpop.f32.mrf.mxu3  ;;  %v2385_v52 = vsub.f32 %v2353_v48, %v2263_v60 }
 0x76a   :  { %v2377_v22 = vsub.f32 %v2263_v60, %v2304_v0 }
 0x76b   :  { %v2393_v36 = vsub.f32 %v2385_v52, %v2304_v0 }
 0x76c   :  { %2417 = vmatmul.f32.vlgmr.msra.gmra.mxu1 %v2377_v22 }
 0x76d   :  { %v2483_v47 = vadd.f32 %v2393_v36, %v2377_v22  ;;  %2458 = vmatmul.f32.vlgmr.msra.gmra.mxu2 %v2393_v36  ;;  %v2356_v19 = vpop.f32.mrf.mxu0 }
 0x76f   :  { %2507 = vmatmul.f32.vlgmr.msra.gmra.mxu3 %v2483_v47 }
 0x770   :  { %v2266_v7 = vpop.f32.mrf.mxu2 }
 0x771   :  { %v2307_v10 = vpop.f32.mrf.mxu3  ;;  %v2386_v57 = vsub.f32 %v2356_v19, %v2266_v7 }
 0x772   :  { %v2378_v16 = vsub.f32 %v2266_v7, %v2307_v10 }
 0x773   :  { %v2394_v18 = vsub.f32 %v2386_v57, %v2307_v10 }
 0x774   :  { %2420 = vmatmul.f32.gmra.mxu1 %v2378_v16 }
 0x775   :  { %2461 = vmatmul.f32.gmra.mxu2 %v2394_v18  ;;  %v2484_v62 = vadd.f32 %v2394_v18, %v2378_v16  ;;  %v2359_v35 = vpop.f32.mrf.mxu0 }
 0x777   :  { %2510 = vmatmul.f32.gmra.mxu3 %v2484_v62 }
 0x778   :  { %v2269_v1 = vpop.f32.mrf.mxu2 }
 0x779   :  { %v2310_v40 = vpop.f32.mrf.mxu3  ;;  %v2387_v8 = vsub.f32 %v2359_v35, %v2269_v1 }
 0x77a   :  { %v2379_v54 = vsub.f32 %v2269_v1, %v2310_v40 }
 0x77b   :  { %v2395_v9 = vsub.f32 %v2387_v8, %v2310_v40 }
 0x77c   :  { %2423 = vmatmul.f32.gmra.mxu1 %v2379_v54 }
 0x77d   :  { %2464 = vmatmul.f32.gmra.mxu2 %v2395_v9  ;;  %v2485_v39 = vadd.f32 %v2395_v9, %v2379_v54  ;;  %v2362_v61 = vpop.f32.mrf.mxu0 }
 0x77f   :  { %2513 = vmatmul.f32.gmra.mxu3 %v2485_v39 }
 0x780   :  { %v2272_v23 = vpop.f32.mrf.mxu2 }
 0x781   :  { %v2313_v51 = vpop.f32.mrf.mxu3  ;;  %v2388_v12 = vsub.f32 %v2362_v61, %v2272_v23 }
 0x782   :  { %v2380_v26 = vsub.f32 %v2272_v23, %v2313_v51 }
 0x783   :  { %v2396_v41 = vsub.f32 %v2388_v12, %v2313_v51 }
 0x784   :  { %2426 = vmatmul.f32.gmra.mxu1 %v2380_v26 }
 0x785   :  { %2467 = vmatmul.f32.gmra.mxu2 %v2396_v41  ;;  %v2486_v15 = vadd.f32 %v2396_v41, %v2380_v26  ;;  %v2365_v21 = vpop.f32.mrf.mxu0 }
 0x787   :  { %2516 = vmatmul.f32.gmra.mxu3 %v2486_v15 }
 0x788   :  { %v2275_v46 = vpop.f32.mrf.mxu2 }
 0x789   :  { %v2316_v34 = vpop.f32.mrf.mxu3  ;;  %v2389_v45 = vsub.f32 %v2365_v21, %v2275_v46 }
 0x78a   :  { %v2381_v50 = vsub.f32 %v2275_v46, %v2316_v34 }
 0x78b   :  { %v2397_v55 = vsub.f32 %v2389_v45, %v2316_v34 }
 0x78c   :  { %2429 = vmatmul.f32.gmra.mxu1 %v2381_v50 }
 0x78d   :  { %2470 = vmatmul.f32.gmra.mxu2 %v2397_v55  ;;  %v2487_v56 = vadd.f32 %v2397_v55, %v2381_v50  ;;  %v2368_v4 = vpop.f32.mrf.mxu0 }
 0x78f   :  { %2519 = vmatmul.f32.gmra.mxu3 %v2487_v56 }
 0x790   :  { %v2278_v30 = vpop.f32.mrf.mxu2 }
 0x791   :  { %v2319_v2 = vpop.f32.mrf.mxu3  ;;  %v2390_v11 = vsub.f32 %v2368_v4, %v2278_v30 }
 0x792   :  { %v2382_v14 = vsub.f32 %v2278_v30, %v2319_v2 }
 0x793   :  { %v2398_v17 = vsub.f32 %v2390_v11, %v2319_v2 }
 0x794   :  { %2432 = vmatmul.f32.gmra.mxu1 %v2382_v14 }
 0x795   :  { %2473 = vmatmul.f32.gmra.mxu2 %v2398_v17  ;;  %v2488_v33 = vadd.f32 %v2398_v17, %v2382_v14  ;;  %v2371_v20 = vpop.f32.mrf.mxu0 }
 0x797   :  { %2522 = vmatmul.f32.gmra.mxu3 %v2488_v33 }
 0x798   :  { %v2281_v25 = vpop.f32.mrf.mxu2 }
 0x799   :  { %v2322_v24 = vpop.f32.mrf.mxu3  ;;  %v2391_v28 = vsub.f32 %v2371_v20, %v2281_v25 }
 0x79a   :  { %v2383_v29 = vsub.f32 %v2281_v25, %v2322_v24 }
 0x79b   :  { %v2399_v42 = vsub.f32 %v2391_v28, %v2322_v24 }
 0x79c   :  { %2435 = vmatmul.f32.gmra.mxu1 %v2383_v29 }
 0x79d   :  { %2476 = vmatmul.f32.gmra.mxu2 %v2399_v42  ;;  %v2489_v32 = vadd.f32 %v2399_v42, %v2383_v29  ;;  %v2374_v43 = vpop.f32.mrf.mxu0 }
 0x79f   :  { %2525 = vmatmul.f32.gmra.mxu3 %v2489_v32 }
 0x7a0   :  { %v2284_v49 = vpop.f32.mrf.mxu2 }
 0x7a1   :  { %v2325_v31 = vpop.f32.mrf.mxu3  ;;  %v2392_v53 = vsub.f32 %v2374_v43, %v2284_v49 }
 0x7a2   :  { %v2384_v37 = vsub.f32 %v2284_v49, %v2325_v31 }
 0x7a3   :  { %v2400_v38 = vsub.f32 %v2392_v53, %v2325_v31 }
 0x7a4   :  { %2438 = vmatmul.f32.gmra.mxu1 %v2384_v37 }
 0x7a5   :  { %2479 = vmatmul.f32.gmra.mxu2 %v2400_v38  ;;  %v2490_v58 = vadd.f32 %v2400_v38, %v2384_v37 }
 0x7a7   :  { %2528 = vmatmul.f32.gmra.mxu3 %v2490_v58 }
 0x7e9   :  { %v2418_v59 = vpop.f32.mrf.mxu1 }
 0x7f0   :  { %v2459_v63 = vpop.f32.mrf.mxu2 }
 0x7f1   :  { %v2421_v13 = vpop.f32.mrf.mxu1  ;;  %v2532_v44 = vsub.f32 %v2418_v59, %v2459_v63 }
 0x7f2   :  { %v2508_v27 = vpop.f32.mrf.mxu3 }
 0x7f3   :  { %v2540_v3 = vsub.f32 %v2508_v27, %v2418_v59  ;;  %v2556_v6 = vmul.f32 %v2532_v44, %v2532_v44 }
 0x7f5   :  { %v2548_v5 = vsub.f32 %v2540_v3, %v2459_v63 }
 0x7f7   :  { %v2564_v48 = vmul.f32 %v2548_v5, %v2548_v5 }
 0x7f8   :  { %v2462_v60 = vpop.f32.mrf.mxu2 }
 0x7f9   :  { %v5197_v0 = vadd.f32 %v2564_v48, %v2556_v6  ;;  %v2424_v52 = vpop.f32.mrf.mxu1  ;;  %v2533_v25 = vsub.f32 %v2421_v13, %v2462_v60 }
 0x7fa   :  { %v2511_v22 = vpop.f32.mrf.mxu3 }
 0x7fb   :  { %v2541_v51 = vsub.f32 %v2511_v22, %v2421_v13  ;;  %v2557_v37 = vmul.f32 %v2533_v25, %v2533_v25  ;;  %vm2587_vm14 = vcmp.eq.f32.partialorder %v5197_v0, inf }
 0x7fd   :  { %v2549_v55 = vsub.f32 %v2541_v51, %v2462_v60 }
 0x7ff   :  { %v2565_v32 = vmul.f32 %v2549_v55, %v2549_v55 }
 0x800   :  { %v2465_v36 = vpop.f32.mrf.mxu2 }
 0x801   :  { %v2427_v47 = vpop.f32.mrf.mxu1  ;;  %v2534_v56 = vsub.f32 %v2424_v52, %v2465_v36  ;;  %v5212_v63 = vadd.f32 %v2565_v32, %v2557_v37 }
 0x802   :  { %v2514_v19 = vpop.f32.mrf.mxu3 }
 0x803   :  { %v2542_v9 = vsub.f32 %v2514_v19, %v2424_v52  ;;  %v2558_v29 = vmul.f32 %v2534_v56, %v2534_v56  ;;  %vm2599_vm12 = vcmp.eq.f32.partialorder %v5212_v63, inf  ;;  %vm2601_vm15 = vcmp.eq.f32.partialorder %v5212_v63, 0.0 }
 0x805   :  { %v2550_v15 = vsub.f32 %v2542_v9, %v2465_v36  ;;  %v2721_v9 = vld [vmem:[%s5364_s19 + $0x70] sm:$0xff] }
 0x807   :  { %v2566_v33 = vmul.f32 %v2550_v15, %v2550_v15 }
 0x808   :  { %v2468_v7 = vpop.f32.mrf.mxu2 }
 0x809   :  { %v2430_v57 = vpop.f32.mrf.mxu1  ;;  %v2535_v21 = vsub.f32 %v2427_v47, %v2468_v7  ;;  %v5206_v31 = vadd.f32 %v2566_v33, %v2558_v29 }
 0x80a   :  { %v2517_v10 = vpop.f32.mrf.mxu3 }
 0x80b   :  { %v2543_v40 = vsub.f32 %v2517_v10, %v2427_v47  ;;  %v2559_v20 = vmul.f32 %v2535_v21, %v2535_v21  ;;  %vm2611_vm10 = vcmp.eq.f32.partialorder %v5206_v31, inf  ;;  %vm2613_vm13 = vcmp.eq.f32.partialorder %v5206_v31, 0.0 }
 0x80d   :  { %v2551_v12 = vsub.f32 %v2543_v40, %v2468_v7 }
 0x80f   :  { %v2567_v4 = vmul.f32 %v2551_v12, %v2551_v12 }
 0x810   :  { %v2471_v16 = vpop.f32.mrf.mxu2 }
 0x811   :  { %v2433_v62 = vpop.f32.mrf.mxu1  ;;  %v2536_v26 = vsub.f32 %v2430_v57, %v2471_v16  ;;  %v5203_v42 = vadd.f32 %v2567_v4, %v2559_v20  ;;  %v2717_v20 = vld [vmem:[%s5364_s19 + $0x50] sm:$0xff] }
 0x812   :  { %v2520_v18 = vpop.f32.mrf.mxu3 }
 0x813   :  { %v2544_v1 = vsub.f32 %v2520_v18, %v2430_v57  ;;  %v2560_v2 = vmul.f32 %v2536_v26, %v2536_v26  ;;  %v2720_v26 = vld [vmem:[%s5364_s19 + $0x68] sm:$0xff]  ;;  %vm2623_vm8 = vcmp.eq.f32.partialorder %v5203_v42, inf  ;;  %vm2625_vm11 = vcmp.eq.f32.partialorder %v5203_v42, 0.0 }
 0x815   :  { %v2552_v39 = vsub.f32 %v2544_v1, %v2471_v16 }
 0x817   :  { %v2568_v45 = vmul.f32 %v2552_v39, %v2552_v39 }
 0x818   :  { %v2474_v35 = vpop.f32.mrf.mxu2 }
 0x819   :  { %v2537_v61 = vsub.f32 %v2433_v62, %v2474_v35  ;;  %v2436_v46 = vpop.f32.mrf.mxu1  ;;  %v5201_v24 = vadd.f32 %v2568_v45, %v2560_v2 }
 0x81a   :  { %v2523_v8 = vpop.f32.mrf.mxu3 }
 0x81b   :  { %v2545_v54 = vsub.f32 %v2523_v8, %v2433_v62  ;;  %v2561_v50 = vmul.f32 %v2537_v61, %v2537_v61  ;;  %vm2635_vm6 = vcmp.eq.f32.partialorder %v5201_v24, inf  ;;  %vm2637_vm9 = vcmp.eq.f32.partialorder %v5201_v24, 0.0 }
 0x81d   :  { %v2553_v23 = vsub.f32 %v2545_v54, %v2474_v35  ;;  %v2722_v54 = vld [vmem:[%s5364_s19 + $0x78] sm:$0xff] }
 0x81e   :  { %2723 = vmatpush.msrb.mxu1 %v2722_v54 }
 0x81f   :  { %v2569_v41 = vmul.f32 %v2553_v23, %v2553_v23 }
 0x820   :  { %v2477_v34 = vpop.f32.mrf.mxu2  ;;  %2724 = vmatpush.msrb.mxu1 %v2721_v9  ;;  %v2638_v9 = vand.u32 2147483648, %v5201_v24 }
 0x821   :  { %v5199_v11 = vadd.f32 %v2569_v41, %v2561_v50  ;;  %v2538_v14 = vsub.f32 %v2436_v46, %v2477_v34  ;;  %v2439_v58 = vpop.f32.mrf.mxu1 }
 0x822   :  { %v2526_v30 = vpop.f32.mrf.mxu3  ;;  %2725 = vmatpush.msrb.mxu1 %v2720_v26 }
 0x823   :  { %v2546_v17 = vsub.f32 %v2526_v30, %v2436_v46  ;;  %v2562_v43 = vmul.f32 %v2538_v14, %v2538_v14  ;;  %2957 = vrsqrt.f32 %v5199_v11  ;;  %v2718_v30 = vld [vmem:[%s5364_s19 + $0x58] sm:$0xff]  ;;  %vm2647_vm4 = vcmp.eq.f32.partialorder %v5199_v11, inf }
 0x824   :  { %2959 = vrsqrt.f32 %v5201_v24  ;;  %vm2649_vm7 = vcmp.eq.f32.partialorder %v5199_v11, 0.0 }
 0x825   :  { %v2554_v28 = vsub.f32 %v2546_v17, %v2477_v34  ;;  %2961 = vrsqrt.f32 %v5203_v42  ;;  %v2719_v34 = vld [vmem:[%s5364_s19 + $0x60] sm:$0xff] }
 0x826   :  { %2726 = vmatpush.msrb.mxu1 %v2719_v34 }
 0x827   :  { %v2570_v49 = vmul.f32 %v2554_v28, %v2554_v28 }
 0x828   :  { %v2480_v53 = vpop.f32.mrf.mxu2  ;;  %2727 = vmatpush.msrb.mxu1 %v2718_v30 }
 0x829   :  { %v5208_v38 = vadd.f32 %v2570_v49, %v2562_v43  ;;  %v2539_v13 = vsub.f32 %v2439_v58, %v2480_v53  ;;  %v2958_v27 = vpop.eup %2957  ;;  %v2716_v49 = vld [vmem:[%s5364_s19 + $0x48] sm:$0xff] }
 0x82a   :  { %v2529_v59 = vpop.f32.mrf.mxu3  ;;  %v2960_v5 = vpop.eup %2959  ;;  %v2641_v52 = vmul.f32 %v2958_v27, %v5199_v11  ;;  %2728 = vmatpush.msrb.mxu1 %v2717_v20 }
 0x82b   :  { %v2547_v44 = vsub.f32 %v2529_v59, %v2439_v58  ;;  %2963 = vrsqrt.f32 %v5208_v38  ;;  %v2563_v6 = vmul.f32 %v2539_v13, %v2539_v13  ;;  %v2962_v60 = vpop.eup %2961  ;;  %v2629_v7 = vmul.f32 %v2960_v5, %v5201_v24  ;;  %v2715_v13 = vld [vmem:[%s5364_s19 + $0x40] sm:$0xff] }
 0x82c   :  { %2965 = vrsqrt.f32 %v5206_v31  ;;  %v2642_v16 = vmul.f32 %v2958_v27, %v2641_v52  ;;  %v2617_v18 = vmul.f32 %v2962_v60, %v5203_v42  ;;  %2729 = vmatpush.msrb.mxu1 %v2716_v49  ;;  %vm2659_vm2 = vcmp.eq.f32.partialorder %v5208_v38, inf }
 0x82d   :  { %v2555_v3 = vsub.f32 %v2547_v44, %v2480_v53  ;;  %2967 = vrsqrt.f32 %v5197_v0  ;;  %v2630_v40 = vmul.f32 %v2960_v5, %v2629_v7  ;;  %vm2661_vm5 = vcmp.eq.f32.partialorder %v5208_v38, 0.0 }
 0x82e   :  { %2969 = vrsqrt.f32 %v5212_v63  ;;  %v2643_v39 = vmul.f32 0.5, %v2642_v16  ;;  %v2618_v61 = vmul.f32 %v2962_v60, %v2617_v18  ;;  %2730 = vmatpush.msrb.mxu1 %v2715_v13  ;;  %v2713_v18 = vld [vmem:[%s5364_s19 + $0x30] sm:$0xff] }
 0x82f   :  { %v2571_v48 = vmul.f32 %v2555_v3, %v2555_v3  ;;  %v2631_v21 = vmul.f32 0.5, %v2630_v40 }
 0x830   :  { %v2644_v50 = vsub.f32 1.5, %v2643_v39  ;;  %v2619_v55 = vmul.f32 0.5, %v2618_v61 }
 0x831   :  { %v2964_v22 = vpop.eup %2963  ;;  %v5219_v36 = vadd.f32 %v2571_v48, %v2563_v6  ;;  %v2632_v17 = vsub.f32 1.5, %v2631_v21 }
 0x832   :  { %v5221_v47 = vpop.eup %2965  ;;  %v2653_v19 = vmul.f32 %v2964_v22, %v5208_v38  ;;  %v2645_v28 = vmul.f32 %v2958_v27, %v2644_v50  ;;  %v2620_v29 = vsub.f32 1.5, %v2619_v55  ;;  %v2590_v50 = vand.u32 2147483648, %v5197_v0  ;;  %v2676_v55 = vld [vmem:[%s5365_s18] sm:$0xff] }
 0x833   :  { %2971 = vrsqrt.f32 %v5219_v36  ;;  %v5226_v10 = vpop.eup %2967  ;;  %v2605_v35 = vmul.f32 %v5221_v47, %v5206_v31  ;;  %v2633_v58 = vmul.f32 %v2960_v5, %v2632_v17  ;;  %vm2671_vm1 = vcmp.eq.f32.partialorder %v5219_v36, inf }
 0x834   :  { %v2654_v57 = vmul.f32 %v2964_v22, %v2653_v19  ;;  %v5229_v62 = vpop.eup %2969  ;;  %v2581_v8 = vmul.f32 %v5226_v10, %v5197_v0  ;;  %v2646_v27 = vmul.f32 %v2645_v28, %v5199_v11  ;;  %v2621_v3 = vmul.f32 %v2962_v60, %v2620_v29  ;;  %v2714_v60 = vld [vmem:[%s5364_s19 + $0x38] sm:$0xff] }
 0x835   :  { %v2593_v23 = vmul.f32 %v5229_v62, %v5212_v63  ;;  %v2606_v12 = vmul.f32 %v5221_v47, %v2605_v35  ;;  %v2674_v48 = vand.u32 2147483648, %v5219_v36  ;;  %vm2673_vm3 = vcmp.eq.f32.partialorder %v5219_v36, 0.0  ;;  %2731 = vmatpush.msrb.mxu1 %v2714_v60 }
 0x836   :  { %v2655_v1 = vmul.f32 0.5, %v2654_v57  ;;  %v2582_v46 = vmul.f32 %v5226_v10, %v2581_v8  ;;  %v2634_v19 = vmul.f32 %v2633_v58, %v5201_v24  ;;  %v2662_v57 = vand.u32 2147483648, %v5208_v38  ;;  %v2712_v8 = vld [vmem:[%s5364_s19 + $0x28] sm:$0xff] }
 0x837   :  { %v2594_v56 = vmul.f32 %v5229_v62, %v2593_v23  ;;  %v2607_v4 = vmul.f32 0.5, %v2606_v12  ;;  %2732 = vmatpush.msrb.mxu1 %v2713_v18  ;;  %v2626_v23 = vand.u32 2147483648, %v5203_v42  ;;  %v2710_v12 = vld [vmem:[%s5364_s19 + $0x18] sm:$0xff] }
 0x838   :  { %v2656_v15 = vsub.f32 1.5, %v2655_v1  ;;  %v2583_v33 = vmul.f32 0.5, %v2582_v46  ;;  %v2650_v1 = vand.u32 2147483648, %v5199_v11  ;;  %v2602_v46 = vand.u32 2147483648, %v5212_v63 }
 0x839   :  { %v2972_v51 = vpop.eup %2971  ;;  %v2595_v32 = vmul.f32 0.5, %v2594_v56  ;;  %v2608_v43 = vsub.f32 1.5, %v2607_v4  ;;  %2733 = vmatpush.msrb.mxu1 %v2712_v8  ;;  %v2707_v4 = vld [vmem:[%s5364_s19] sm:$0xff] }
 0x83a   :  { %v2665_v41 = vmul.f32 %v2972_v51, %v5219_v36  ;;  %v2657_v14 = vmul.f32 %v2964_v22, %v2656_v15  ;;  %v2584_v59 = vsub.f32 1.5, %v2583_v33  ;;  %v2709_v15 = vld [vmem:[%s5364_s19 + $0x10] sm:$0xff] }
 0x83b   :  { %v2596_v6 = vsub.f32 1.5, %v2595_v32  ;;  %v2609_v5 = vmul.f32 %v5221_v47, %v2608_v43  ;;  %v2622_v47 = vmul.f32 %v2621_v3, %v5203_v42 }
 0x83c   :  { %v2666_v45 = vmul.f32 %v2972_v51, %v2665_v41  ;;  %v2658_v37 = vmul.f32 %v2657_v14, %v5208_v38  ;;  %v2614_v41 = vand.u32 2147483648, %v5206_v31 }
 0x83d   :  { %v2597_v16 = vmul.f32 %v5229_v62, %v2596_v6  ;;  %v2610_v40 = vmul.f32 %v2609_v5, %v5206_v31  ;;  %v2585_v62 = vmul.f32 %v5226_v10, %v2584_v59  ;;  %v2711_v10 = vld [vmem:[%s5364_s19 + $0x20] sm:$0xff] }
 0x83e   :  { %v2667_v2 = vmul.f32 0.5, %v2666_v45  ;;  %v2660_v22 = vsel %vm2659_vm2, %v5208_v38, %v2658_v37  ;;  %v2636_v38 = vsel %vm2635_vm6, %v5201_v24, %v2634_v19  ;;  %2734 = vmatpush.msrb.mxu1 %v2711_v10  ;;  %vm2748_vm2 = vcmask 261120  }
 0x83f   :  { %v2663_v35 = vsel %vm2661_vm5, %v2662_v57, %v2660_v22  ;;  %v2598_v39 = vmul.f32 %v2597_v16, %v5212_v63  ;;  %v2639_v61 = vsel %vm2637_vm9, %v2638_v9, %v2636_v38  ;;  %v2612_v24 = vsel %vm2611_vm10, %v5206_v31, %v2610_v40  ;;  %v2708_v31 = vld [vmem:[%s5364_s19 + $0x8] sm:$0xff] }
 0x840   :  { %v2668_v25 = vsub.f32 1.5, %v2667_v2  ;;  %v2615_v21 = vsel %vm2613_vm13, %v2614_v41, %v2612_v24  ;;  %2735 = vmatpush.msrb.mxu1 %v2710_v12 }
 0x842   :  { %v2669_v53 = vmul.f32 %v2972_v51, %v2668_v25  ;;  %v2586_v51 = vmul.f32 %v2585_v62, %v5197_v0  ;;  %2736 = vmatpush.msrb.mxu1 %v2709_v15 }
 0x844   :  { %v2670_v44 = vmul.f32 %v2669_v53, %v5219_v36  ;;  %v2588_v34 = vsel %vm2587_vm14, %v5197_v0, %v2586_v51  ;;  %2737 = vmatpush.msrb.mxu1 %v2708_v31 }
 0x846   :  { %v2672_v52 = vsel %vm2671_vm1, %v5219_v36, %v2670_v44  ;;  %v2648_v36 = vsel %vm2647_vm4, %v5199_v11, %v2646_v27  ;;  %v2624_v11 = vsel %vm2623_vm8, %v5203_v42, %v2622_v47  ;;  %v2600_v42 = vsel %vm2599_vm12, %v5212_v63, %v2598_v39  ;;  %v2677_v63 = vld [vmem:[%s5365_s18 + $0x8] sm:$0xff]  ;;  %2738 = vmatpush.msrb.mxu1 %v2707_v4 }
 0x847   :  { %v2675_v7 = vsel %vm2673_vm3, %v2674_v48, %v2672_v52  ;;  %v2651_v54 = vsel %vm2649_vm7, %v2650_v1, %v2648_v36  ;;  %v2627_v26 = vsel %vm2625_vm11, %v2626_v23, %v2624_v11  ;;  %v2603_v45 = vsel %vm2601_vm15, %v2602_v46, %v2600_v42 }
 0x848   :  { %2692 = vmatpush.msrb.mxu0 %v2675_v7  ;;  %2949 = vmatpush.msrb.mxu2 %v2675_v7  ;;  %vm2589_vm1 = vcmp.eq.f32.partialorder %v5197_v0, 0.0 }
 0x849   :  { %v2591_v56 = vsel %vm2589_vm1, %v2590_v50, %v2588_v34 }
 0x84a   :  { %2693 = vmatpush.msrb.mxu0 %v2663_v35  ;;  %2950 = vmatpush.msrb.mxu2 %v2663_v35 }
 0x84c   :  { %2694 = vmatpush.msrb.mxu0 %v2651_v54  ;;  %2951 = vmatpush.msrb.mxu2 %v2651_v54 }
 0x84e   :  { %2695 = vmatpush.msrb.mxu0 %v2639_v61  ;;  %2952 = vmatpush.msrb.mxu2 %v2639_v61 }
 0x850   :  { %2696 = vmatpush.msrb.mxu0 %v2627_v26  ;;  %2953 = vmatpush.msrb.mxu2 %v2627_v26 }
 0x852   :  { %2697 = vmatpush.msrb.mxu0 %v2615_v21  ;;  %2954 = vmatpush.msrb.mxu2 %v2615_v21 }
 0x854   :  { %2698 = vmatpush.msrb.mxu0 %v2603_v45  ;;  %2955 = vmatpush.msrb.mxu2 %v2603_v45 }
 0x856   :  { %2699 = vmatpush.msrb.mxu0 %v2591_v56  ;;  %2956 = vmatpush.msrb.mxu2 %v2591_v56 }
 0x857   :  { %2947 = vmatmul.msk.f32.vlgmr.msrb.gmra.mxu0 %vm89_vm0, %v2676_v55  ;;  %2948 = vmatmul.msk.f32.vlgmr.msrb.gmra.mxu2 %vm89_vm0, %v2677_v63 }
 0x8d4   :  { %v2701_v0 = vpop.f32.mrf.mxu0 }
 0x8d5   :  { %2739 = vmatmul.f32.vlgmr.msrb.gmra.mxu1 %v2701_v0 }
 0x8da   :  { %v2704_v30 = vpop.f32.mrf.mxu2 }
 0x8dd   :  { %2742 = vmatmul.f32.gmra.mxu1 %v2704_v30 }
 0x952   :  { %v2740_v2 = vpop.f32.mrf.mxu1 }
 0x953   :  { %v2746_v14 = vmul.f32 %v2740_v2, %v2740_v2 }
 0x955   :  { %2749 = vst.msk [vmem:[%s5366_s20] sm:$0xff] %vm2748_vm2, %v2746_v14 }
 0x95a   :  { %v2743_v17 = vpop.f32.mrf.mxu1 }
 0x95b   :  { %v2747_v33 = vmul.f32 %v2743_v17, %v2743_v17 }
 0x95d   :  { %2750 = vst.msk [vmem:[%s5366_s20 + $0x8] sm:$0xff] %vm2748_vm2, %v2747_v33 }

</bundles_post_ra>
